<compile_context>
chip_gen: v7x
topology: tpu7x:2x2x1
jax: 0.10.0
libtpu: 0.0.40
codegen_flags: <defaults>
</compile_context>

<pallas_src>
import jax
import jax.numpy as jnp
from jax.experimental import pallas as pl
from jax.experimental.pallas import tpu as pltpu

NEG_SLOPE = 0.01  # nn.LeakyReLU default


def _leaky(x):
    return jnp.where(x >= 0, x, NEG_SLOPE * x)


# ---------------------------------------------------------------------------
# Host-side packing: weight slabs, 1x1 weights, pre-broadcast biases, tap masks.
# ---------------------------------------------------------------------------
def pack_params(all_params, D, H, W):
    """all_params: 3 tuples (w1, b1, w2, b2, w3, b3); w1/w3 DHWIO, w2 (Cin, Cout)."""
    C = all_params[0][0].shape[-2]            # in_ch (== out_ch for this module)
    CP = ((C + 7) // 8) * 8                   # pad channels to a full sublane group
    K = 27 * CP
    K_PAD = ((K + 127) // 128) * 128          # pad contraction depth for the MXU
    M = D * H * W

    def slab_3x3(w):                          # w: (3,3,3,Cin,Cout) DHWIO
        w27 = w.reshape(27, C, C)             # (tap, ci, co), tap = ((kd*3)+kh)*3+kw
        full = jnp.zeros((27, CP, CP), jnp.float32).at[:, :C, :C].set(w27)
        s = jnp.transpose(full, (2, 0, 1)).reshape(CP, K)   # [co, tap*CP + ci]
        return jnp.pad(s, ((0, 0), (0, K_PAD - K)))

    wa = jnp.stack([slab_3x3(p[0]) for p in all_params])    # (3, CP, K_PAD)
    wb = jnp.stack([slab_3x3(p[4]) for p in all_params])    # (3, CP, K_PAD)
    wm = jnp.stack([jnp.zeros((CP, CP), jnp.float32).at[:C, :C].set(p[2].T)
                    for p in all_params])                   # (3, CP, CP)  (out, in)

    bias = jnp.stack([jnp.pad(b, (0, CP - C))
                      for p in all_params for b in (p[1], p[3], p[5])])  # (9, CP)
    bias = jnp.broadcast_to(bias[:, :, None], (9, CP, M)).astype(jnp.float32)

    # Per-tap 'same'-padding validity masks in the flattened (d,h,w) order.
    dd_, hh_, ww_ = jnp.meshgrid(jnp.arange(D), jnp.arange(H), jnp.arange(W),
                                 indexing="ij")
    rows = []
    for kd in (-1, 0, 1):
        for kh in (-1, 0, 1):
            for kw in (-1, 0, 1):
                v = ((dd_ + kd >= 0) & (dd_ + kd < D) &
                     (hh_ + kh >= 0) & (hh_ + kh < H) &
                     (ww_ + kw >= 0) & (ww_ + kw < W))
                rows.append(v.reshape(-1))
    masks = jnp.stack(rows).astype(jnp.float32)              # (27, M)
    masks = jnp.broadcast_to(masks[:, None, :], (27, CP, M))
    return wa, wb, wm, bias, masks


# ---------------------------------------------------------------------------
# Fused forward: x in PyTorch NCDHW layout, returns NCDHW.
# ---------------------------------------------------------------------------
def res_part_3d_forward(x_ncdhw, packed):
    N, C, D, H, W = x_ncdhw.shape
    M = D * H * W
    wa, wb, wm, bias, masks = packed
    CP, K_PAD = wa.shape[1], wa.shape[2]

    xf = x_ncdhw.reshape(N, C, M)             # free: row-major identical to NCDHW
    if CP != C:                               # zero-pad channels to the padded layout
        xf = jnp.concatenate([xf, jnp.zeros((N, CP - C, M), xf.dtype)], axis=1)

    def kernel(x_ref, wa_ref, wb_ref, wm_ref, b_ref, mask_ref, out_ref):
        f32 = jnp.float32
        HW = H * W
        n_zero = K_PAD - 27 * CP
        kpad_zeros = jnp.zeros((n_zero, M), f32) if n_zero else None

        def conv3x3(h, w_slab):
            # h: (CP, M) f32; w_slab: (CP, K_PAD).  One im2col MXU matmul.
            rows = []
            t = 0
            for kd in (-1, 0, 1):
                for kh in (-1, 0, 1):
                    for kw in (-1, 0, 1):
                        delta = kd * HW + kh * W + kw
                        if delta == 0:
                            rows.append(h)                       # center tap, valid
                        else:
                            shifted = pltpu.roll(h, (-delta) % M, axis=1)  # XLU
                            rows.append(shifted * mask_ref[t])   # zero 'same' padding
                        t += 1
            if kpad_zeros is not None:
                rows.append(kpad_zeros)
            patch = jnp.concatenate(rows, axis=0)                # (K_PAD, M), lane-dense
            return jnp.dot(w_slab, patch, preferred_element_type=f32)   # (CP, M)

        cur = x_ref[...].astype(f32)                             # resident activation
        for blk in range(3):
            h = _leaky(conv3x3(cur, wa_ref[blk]) + b_ref[3 * blk + 0])   # 3x3x3 + LReLU
            h = _leaky(jnp.dot(wm_ref[blk], h,
                               preferred_element_type=f32) + b_ref[3 * blk + 1])  # 1x1x1
            h = conv3x3(h, wb_ref[blk]) + b_ref[3 * blk + 2]             # 3x3x3
            cur = cur + h                                                # residual
        out_ref[...] = cur.astype(out_ref.dtype)                 # lane-dense store

    yf = pl.pallas_call(
        kernel,
        out_shape=jax.ShapeDtypeStruct((N, CP, M), x_ncdhw.dtype),
        grid=(N,),
        in_specs=[
            pl.BlockSpec((None, CP, M), lambda n: (n, 0, 0)),     # activations
            pl.BlockSpec((3, CP, K_PAD), lambda n: (0, 0, 0)),    # conv-A weight slabs
            pl.BlockSpec((3, CP, K_PAD), lambda n: (0, 0, 0)),    # conv-B weight slabs
            pl.BlockSpec((3, CP, CP), lambda n: (0, 0, 0)),       # 1x1 weights (out,in)
            pl.BlockSpec((9, CP, M), lambda n: (0, 0, 0)),        # pre-broadcast biases
            pl.BlockSpec((27, CP, M), lambda n: (0, 0, 0)),       # per-tap masks
        ],
        out_specs=pl.BlockSpec((None, CP, M), lambda n: (n, 0, 0)),
        compiler_params=pltpu.CompilerParams(
            dimension_semantics=("parallel",),        # batch -> both TCs on v7x
            vmem_limit_bytes=32 * 1024 * 1024),       # explicit, safe on v5e/v6e/v7x
    )(xf, wa, wb, wm, bias, masks)

    return yf[:, :C, :].reshape(N, C, D, H, W)


# ---------------------------------------------------------------------------
# Deterministic parameter init (PyTorch Conv3d default: U(-1/sqrt(fan_in), ...))
# ---------------------------------------------------------------------------
def init_conv3d_params(key, cin, cout, k):
    fan_in = cin * k * k * k
    bound = float(fan_in) ** -0.5
    kw, kb = jax.random.split(key)
    if k == 1:
        w = jax.random.uniform(kw, (cin, cout), jnp.float32, -bound, bound)
    else:
        w = jax.random.uniform(kw, (k, k, k, cin, cout), jnp.float32, -bound, bound)
    b = jax.random.uniform(kb, (cout,), jnp.float32, -bound, bound)
    return w, b


# ---------------------------------------------------------------------------
# Pure-JAX reference (NCDHW, for correctness check)
# ---------------------------------------------------------------------------
def _ref_conv3d(x, w, b, padding):
    w5 = w if w.ndim == 5 else w.reshape(1, 1, 1, *w.shape)
    y = jax.lax.conv_general_dilated(
        x, w5, window_strides=(1, 1, 1),
        padding=[(padding, padding)] * 3,
        dimension_numbers=("NCDHW", "DHWIO", "NCDHW"))
    return y + b.reshape(1, -1, 1, 1, 1)


def ref_forward(x, all_params):
    for (w1, b1, w2, b2, w3, b3) in all_params:
        h = _leaky(_ref_conv3d(x, w1, b1, 1))
        h = _leaky(_ref_conv3d(h, w2, b2, 0))
        h = _ref_conv3d(h, w3, b3, 1)
        x = h + x
    return x


if __name__ == "__main__":
    in_ch = out_ch = 4          # module requires in_ch == out_ch to be runnable
    N, D, H, W = 2, 4, 8, 8     # M = D*H*W = 256 (lane-dense, multiple of 128)

    key = jax.random.PRNGKey(0)
    kx, kp = jax.random.split(key)

    # PyTorch-convention NCDHW input — consumed directly (no wrapper transpose).
    x = jax.random.normal(kx, (N, in_ch, D, H, W), jnp.float32)

    all_params = []
    keys = jax.random.split(kp, 9)
    ki = 0
    for _ in range(3):          # conv1, conv2, conv3 Sequentials
        w1, b1 = init_conv3d_params(keys[ki], in_ch, in_ch, 3); ki += 1
        w2, b2 = init_conv3d_params(keys[ki], in_ch, out_ch, 1); ki += 1
        w3, b3 = init_conv3d_params(keys[ki], in_ch, in_ch, 3); ki += 1
        all_params.append((w1, b1, w2, b2, w3, b3))

    packed = pack_params(all_params, D, H, W)
    y = res_part_3d_forward(x, packed)
    y = jax.block_until_ready(y)

    y_ref = ref_forward(x, all_params)
    # Tolerance covers default-precision (bf16-pass) MXU matmuls inside the kernel
    # vs. the XLA conv reference; indexing/layout bugs would show up as O(1) errors.
    max_err = float(jnp.max(jnp.abs(y - y_ref)))
    assert jnp.allclose(y, y_ref, atol=3e-2, rtol=3e-2), max_err

    print("KERNEL_OK")
</pallas_src>

<mosaic_0001>
module attributes {stable_mosaic.version = 11 : i64} {
  func.func @kernel(%arg0: i32, %arg1: memref<1x8x256xf32, #tpu.memory_space<vmem>>, %arg2: memref<3x8x256xf32, #tpu.memory_space<vmem>>, %arg3: memref<3x8x256xf32, #tpu.memory_space<vmem>>, %arg4: memref<3x8x8xf32, #tpu.memory_space<vmem>>, %arg5: memref<9x8x256xf32, #tpu.memory_space<vmem>>, %arg6: memref<27x8x256xf32, #tpu.memory_space<vmem>>, %arg7: memref<1x8x256xf32, #tpu.memory_space<vmem>>) attributes {dimension_semantics = [#tpu.dimension_semantics<parallel>], iteration_bounds = array<i64: 2>, scalar_prefetch = 0 : i64, scratch_operands = 0 : i64, tpu.core_type = #tpu.core_type<tc>, window_params = [{transform_indices = @transform_0, window_bounds = array<i64: 1, 8, 256>}, {pipeline_mode = #tpu.pipeline_mode<synchronous>, transform_indices = @transform_1, window_bounds = array<i64: 3, 8, 256>}, {pipeline_mode = #tpu.pipeline_mode<synchronous>, transform_indices = @transform_2, window_bounds = array<i64: 3, 8, 256>}, {pipeline_mode = #tpu.pipeline_mode<synchronous>, transform_indices = @transform_3, window_bounds = array<i64: 3, 8, 8>}, {pipeline_mode = #tpu.pipeline_mode<synchronous>, transform_indices = @transform_4, window_bounds = array<i64: 9, 8, 256>}, {pipeline_mode = #tpu.pipeline_mode<synchronous>, transform_indices = @transform_5, window_bounds = array<i64: 27, 8, 256>}, {transform_indices = @transform_6, window_bounds = array<i64: 1, 8, 256>}]} {
    %cst = arith.constant 0.000000e+00 : f32
    %0 = vector.broadcast %cst : f32 to vector<40x256xf32>
    %c0 = arith.constant 0 : index
    %c0_0 = arith.constant 0 : index
    %c0_1 = arith.constant 0 : index
    %1 = vector.load %arg1[%c0, %c0_0, %c0_1] : memref<1x8x256xf32, #tpu.memory_space<vmem>>, vector<1x8x256xf32>
    %2 = vector.shape_cast %1 : vector<1x8x256xf32> to vector<8x256xf32>
    %c0_2 = arith.constant 0 : index
    %c0_3 = arith.constant 0 : index
    %c0_4 = arith.constant 0 : index
    %3 = vector.load %arg2[%c0_2, %c0_3, %c0_4] : memref<3x8x256xf32, #tpu.memory_space<vmem>>, vector<1x8x256xf32>
    %4 = vector.shape_cast %3 : vector<1x8x256xf32> to vector<8x256xf32>
    %c73_i32 = arith.constant 73 : i32
    %5 = tpu.dynamic_rotate %2 by %c73_i32 dim 1 : vector<8x256xf32>, i32 -> vector<8x256xf32>
    %c0_5 = arith.constant 0 : index
    %c0_6 = arith.constant 0 : index
    %c0_7 = arith.constant 0 : index
    %6 = vector.load %arg6[%c0_5, %c0_6, %c0_7] : memref<27x8x256xf32, #tpu.memory_space<vmem>>, vector<1x8x256xf32>
    %7 = vector.shape_cast %6 : vector<1x8x256xf32> to vector<8x256xf32>
    %8 = arith.mulf %5, %7 : vector<8x256xf32>
    %c72_i32 = arith.constant 72 : i32
    %9 = tpu.dynamic_rotate %2 by %c72_i32 dim 1 : vector<8x256xf32>, i32 -> vector<8x256xf32>
    %c1 = arith.constant 1 : index
    %c0_8 = arith.constant 0 : index
    %c0_9 = arith.constant 0 : index
    %10 = vector.load %arg6[%c1, %c0_8, %c0_9] : memref<27x8x256xf32, #tpu.memory_space<vmem>>, vector<1x8x256xf32>
    %11 = vector.shape_cast %10 : vector<1x8x256xf32> to vector<8x256xf32>
    %12 = arith.mulf %9, %11 : vector<8x256xf32>
    %c71_i32 = arith.constant 71 : i32
    %13 = tpu.dynamic_rotate %2 by %c71_i32 dim 1 : vector<8x256xf32>, i32 -> vector<8x256xf32>
    %c2 = arith.constant 2 : index
    %c0_10 = arith.constant 0 : index
    %c0_11 = arith.constant 0 : index
    %14 = vector.load %arg6[%c2, %c0_10, %c0_11] : memref<27x8x256xf32, #tpu.memory_space<vmem>>, vector<1x8x256xf32>
    %15 = vector.shape_cast %14 : vector<1x8x256xf32> to vector<8x256xf32>
    %16 = arith.mulf %13, %15 : vector<8x256xf32>
    %c65_i32 = arith.constant 65 : i32
    %17 = tpu.dynamic_rotate %2 by %c65_i32 dim 1 : vector<8x256xf32>, i32 -> vector<8x256xf32>
    %c3 = arith.constant 3 : index
    %c0_12 = arith.constant 0 : index
    %c0_13 = arith.constant 0 : index
    %18 = vector.load %arg6[%c3, %c0_12, %c0_13] : memref<27x8x256xf32, #tpu.memory_space<vmem>>, vector<1x8x256xf32>
    %19 = vector.shape_cast %18 : vector<1x8x256xf32> to vector<8x256xf32>
    %20 = arith.mulf %17, %19 : vector<8x256xf32>
    %c64_i32 = arith.constant 64 : i32
    %21 = tpu.dynamic_rotate %2 by %c64_i32 dim 1 : vector<8x256xf32>, i32 -> vector<8x256xf32>
    %c4 = arith.constant 4 : index
    %c0_14 = arith.constant 0 : index
    %c0_15 = arith.constant 0 : index
    %22 = vector.load %arg6[%c4, %c0_14, %c0_15] : memref<27x8x256xf32, #tpu.memory_space<vmem>>, vector<1x8x256xf32>
    %23 = vector.shape_cast %22 : vector<1x8x256xf32> to vector<8x256xf32>
    %24 = arith.mulf %21, %23 : vector<8x256xf32>
    %c63_i32 = arith.constant 63 : i32
    %25 = tpu.dynamic_rotate %2 by %c63_i32 dim 1 : vector<8x256xf32>, i32 -> vector<8x256xf32>
    %c5 = arith.constant 5 : index
    %c0_16 = arith.constant 0 : index
    %c0_17 = arith.constant 0 : index
    %26 = vector.load %arg6[%c5, %c0_16, %c0_17] : memref<27x8x256xf32, #tpu.memory_space<vmem>>, vector<1x8x256xf32>
    %27 = vector.shape_cast %26 : vector<1x8x256xf32> to vector<8x256xf32>
    %28 = arith.mulf %25, %27 : vector<8x256xf32>
    %c57_i32 = arith.constant 57 : i32
    %29 = tpu.dynamic_rotate %2 by %c57_i32 dim 1 : vector<8x256xf32>, i32 -> vector<8x256xf32>
    %c6 = arith.constant 6 : index
    %c0_18 = arith.constant 0 : index
    %c0_19 = arith.constant 0 : index
    %30 = vector.load %arg6[%c6, %c0_18, %c0_19] : memref<27x8x256xf32, #tpu.memory_space<vmem>>, vector<1x8x256xf32>
    %31 = vector.shape_cast %30 : vector<1x8x256xf32> to vector<8x256xf32>
    %32 = arith.mulf %29, %31 : vector<8x256xf32>
    %c56_i32 = arith.constant 56 : i32
    %33 = tpu.dynamic_rotate %2 by %c56_i32 dim 1 : vector<8x256xf32>, i32 -> vector<8x256xf32>
    %c7 = arith.constant 7 : index
    %c0_20 = arith.constant 0 : index
    %c0_21 = arith.constant 0 : index
    %34 = vector.load %arg6[%c7, %c0_20, %c0_21] : memref<27x8x256xf32, #tpu.memory_space<vmem>>, vector<1x8x256xf32>
    %35 = vector.shape_cast %34 : vector<1x8x256xf32> to vector<8x256xf32>
    %36 = arith.mulf %33, %35 : vector<8x256xf32>
    %c55_i32 = arith.constant 55 : i32
    %37 = tpu.dynamic_rotate %2 by %c55_i32 dim 1 : vector<8x256xf32>, i32 -> vector<8x256xf32>
    %c8 = arith.constant 8 : index
    %c0_22 = arith.constant 0 : index
    %c0_23 = arith.constant 0 : index
    %38 = vector.load %arg6[%c8, %c0_22, %c0_23] : memref<27x8x256xf32, #tpu.memory_space<vmem>>, vector<1x8x256xf32>
    %39 = vector.shape_cast %38 : vector<1x8x256xf32> to vector<8x256xf32>
    %40 = arith.mulf %37, %39 : vector<8x256xf32>
    %c9_i32 = arith.constant 9 : i32
    %41 = tpu.dynamic_rotate %2 by %c9_i32 dim 1 : vector<8x256xf32>, i32 -> vector<8x256xf32>
    %c9 = arith.constant 9 : index
    %c0_24 = arith.constant 0 : index
    %c0_25 = arith.constant 0 : index
    %42 = vector.load %arg6[%c9, %c0_24, %c0_25] : memref<27x8x256xf32, #tpu.memory_space<vmem>>, vector<1x8x256xf32>
    %43 = vector.shape_cast %42 : vector<1x8x256xf32> to vector<8x256xf32>
    %44 = arith.mulf %41, %43 : vector<8x256xf32>
    %c8_i32 = arith.constant 8 : i32
    %45 = tpu.dynamic_rotate %2 by %c8_i32 dim 1 : vector<8x256xf32>, i32 -> vector<8x256xf32>
    %c10 = arith.constant 10 : index
    %c0_26 = arith.constant 0 : index
    %c0_27 = arith.constant 0 : index
    %46 = vector.load %arg6[%c10, %c0_26, %c0_27] : memref<27x8x256xf32, #tpu.memory_space<vmem>>, vector<1x8x256xf32>
    %47 = vector.shape_cast %46 : vector<1x8x256xf32> to vector<8x256xf32>
    %48 = arith.mulf %45, %47 : vector<8x256xf32>
    %c7_i32 = arith.constant 7 : i32
    %49 = tpu.dynamic_rotate %2 by %c7_i32 dim 1 : vector<8x256xf32>, i32 -> vector<8x256xf32>
    %c11 = arith.constant 11 : index
    %c0_28 = arith.constant 0 : index
    %c0_29 = arith.constant 0 : index
    %50 = vector.load %arg6[%c11, %c0_28, %c0_29] : memref<27x8x256xf32, #tpu.memory_space<vmem>>, vector<1x8x256xf32>
    %51 = vector.shape_cast %50 : vector<1x8x256xf32> to vector<8x256xf32>
    %52 = arith.mulf %49, %51 : vector<8x256xf32>
    %c1_i32 = arith.constant 1 : i32
    %53 = tpu.dynamic_rotate %2 by %c1_i32 dim 1 : vector<8x256xf32>, i32 -> vector<8x256xf32>
    %c12 = arith.constant 12 : index
    %c0_30 = arith.constant 0 : index
    %c0_31 = arith.constant 0 : index
    %54 = vector.load %arg6[%c12, %c0_30, %c0_31] : memref<27x8x256xf32, #tpu.memory_space<vmem>>, vector<1x8x256xf32>
    %55 = vector.shape_cast %54 : vector<1x8x256xf32> to vector<8x256xf32>
    %56 = arith.mulf %53, %55 : vector<8x256xf32>
    %c255_i32 = arith.constant 255 : i32
    %57 = tpu.dynamic_rotate %2 by %c255_i32 dim 1 : vector<8x256xf32>, i32 -> vector<8x256xf32>
    %c14 = arith.constant 14 : index
    %c0_32 = arith.constant 0 : index
    %c0_33 = arith.constant 0 : index
    %58 = vector.load %arg6[%c14, %c0_32, %c0_33] : memref<27x8x256xf32, #tpu.memory_space<vmem>>, vector<1x8x256xf32>
    %59 = vector.shape_cast %58 : vector<1x8x256xf32> to vector<8x256xf32>
    %60 = arith.mulf %57, %59 : vector<8x256xf32>
    %c249_i32 = arith.constant 249 : i32
    %61 = tpu.dynamic_rotate %2 by %c249_i32 dim 1 : vector<8x256xf32>, i32 -> vector<8x256xf32>
    %c15 = arith.constant 15 : index
    %c0_34 = arith.constant 0 : index
    %c0_35 = arith.constant 0 : index
    %62 = vector.load %arg6[%c15, %c0_34, %c0_35] : memref<27x8x256xf32, #tpu.memory_space<vmem>>, vector<1x8x256xf32>
    %63 = vector.shape_cast %62 : vector<1x8x256xf32> to vector<8x256xf32>
    %64 = arith.mulf %61, %63 : vector<8x256xf32>
    %c248_i32 = arith.constant 248 : i32
    %65 = tpu.dynamic_rotate %2 by %c248_i32 dim 1 : vector<8x256xf32>, i32 -> vector<8x256xf32>
    %c16 = arith.constant 16 : index
    %c0_36 = arith.constant 0 : index
    %c0_37 = arith.constant 0 : index
    %66 = vector.load %arg6[%c16, %c0_36, %c0_37] : memref<27x8x256xf32, #tpu.memory_space<vmem>>, vector<1x8x256xf32>
    %67 = vector.shape_cast %66 : vector<1x8x256xf32> to vector<8x256xf32>
    %68 = arith.mulf %65, %67 : vector<8x256xf32>
    %c247_i32 = arith.constant 247 : i32
    %69 = tpu.dynamic_rotate %2 by %c247_i32 dim 1 : vector<8x256xf32>, i32 -> vector<8x256xf32>
    %c17 = arith.constant 17 : index
    %c0_38 = arith.constant 0 : index
    %c0_39 = arith.constant 0 : index
    %70 = vector.load %arg6[%c17, %c0_38, %c0_39] : memref<27x8x256xf32, #tpu.memory_space<vmem>>, vector<1x8x256xf32>
    %71 = vector.shape_cast %70 : vector<1x8x256xf32> to vector<8x256xf32>
    %72 = arith.mulf %69, %71 : vector<8x256xf32>
    %c201_i32 = arith.constant 201 : i32
    %73 = tpu.dynamic_rotate %2 by %c201_i32 dim 1 : vector<8x256xf32>, i32 -> vector<8x256xf32>
    %c18 = arith.constant 18 : index
    %c0_40 = arith.constant 0 : index
    %c0_41 = arith.constant 0 : index
    %74 = vector.load %arg6[%c18, %c0_40, %c0_41] : memref<27x8x256xf32, #tpu.memory_space<vmem>>, vector<1x8x256xf32>
    %75 = vector.shape_cast %74 : vector<1x8x256xf32> to vector<8x256xf32>
    %76 = arith.mulf %73, %75 : vector<8x256xf32>
    %c200_i32 = arith.constant 200 : i32
    %77 = tpu.dynamic_rotate %2 by %c200_i32 dim 1 : vector<8x256xf32>, i32 -> vector<8x256xf32>
    %c19 = arith.constant 19 : index
    %c0_42 = arith.constant 0 : index
    %c0_43 = arith.constant 0 : index
    %78 = vector.load %arg6[%c19, %c0_42, %c0_43] : memref<27x8x256xf32, #tpu.memory_space<vmem>>, vector<1x8x256xf32>
    %79 = vector.shape_cast %78 : vector<1x8x256xf32> to vector<8x256xf32>
    %80 = arith.mulf %77, %79 : vector<8x256xf32>
    %c199_i32 = arith.constant 199 : i32
    %81 = tpu.dynamic_rotate %2 by %c199_i32 dim 1 : vector<8x256xf32>, i32 -> vector<8x256xf32>
    %c20 = arith.constant 20 : index
    %c0_44 = arith.constant 0 : index
    %c0_45 = arith.constant 0 : index
    %82 = vector.load %arg6[%c20, %c0_44, %c0_45] : memref<27x8x256xf32, #tpu.memory_space<vmem>>, vector<1x8x256xf32>
    %83 = vector.shape_cast %82 : vector<1x8x256xf32> to vector<8x256xf32>
    %84 = arith.mulf %81, %83 : vector<8x256xf32>
    %c193_i32 = arith.constant 193 : i32
    %85 = tpu.dynamic_rotate %2 by %c193_i32 dim 1 : vector<8x256xf32>, i32 -> vector<8x256xf32>
    %c21 = arith.constant 21 : index
    %c0_46 = arith.constant 0 : index
    %c0_47 = arith.constant 0 : index
    %86 = vector.load %arg6[%c21, %c0_46, %c0_47] : memref<27x8x256xf32, #tpu.memory_space<vmem>>, vector<1x8x256xf32>
    %87 = vector.shape_cast %86 : vector<1x8x256xf32> to vector<8x256xf32>
    %88 = arith.mulf %85, %87 : vector<8x256xf32>
    %c192_i32 = arith.constant 192 : i32
    %89 = tpu.dynamic_rotate %2 by %c192_i32 dim 1 : vector<8x256xf32>, i32 -> vector<8x256xf32>
    %c22 = arith.constant 22 : index
    %c0_48 = arith.constant 0 : index
    %c0_49 = arith.constant 0 : index
    %90 = vector.load %arg6[%c22, %c0_48, %c0_49] : memref<27x8x256xf32, #tpu.memory_space<vmem>>, vector<1x8x256xf32>
    %91 = vector.shape_cast %90 : vector<1x8x256xf32> to vector<8x256xf32>
    %92 = arith.mulf %89, %91 : vector<8x256xf32>
    %c191_i32 = arith.constant 191 : i32
    %93 = tpu.dynamic_rotate %2 by %c191_i32 dim 1 : vector<8x256xf32>, i32 -> vector<8x256xf32>
    %c23 = arith.constant 23 : index
    %c0_50 = arith.constant 0 : index
    %c0_51 = arith.constant 0 : index
    %94 = vector.load %arg6[%c23, %c0_50, %c0_51] : memref<27x8x256xf32, #tpu.memory_space<vmem>>, vector<1x8x256xf32>
    %95 = vector.shape_cast %94 : vector<1x8x256xf32> to vector<8x256xf32>
    %96 = arith.mulf %93, %95 : vector<8x256xf32>
    %c185_i32 = arith.constant 185 : i32
    %97 = tpu.dynamic_rotate %2 by %c185_i32 dim 1 : vector<8x256xf32>, i32 -> vector<8x256xf32>
    %c24 = arith.constant 24 : index
    %c0_52 = arith.constant 0 : index
    %c0_53 = arith.constant 0 : index
    %98 = vector.load %arg6[%c24, %c0_52, %c0_53] : memref<27x8x256xf32, #tpu.memory_space<vmem>>, vector<1x8x256xf32>
    %99 = vector.shape_cast %98 : vector<1x8x256xf32> to vector<8x256xf32>
    %100 = arith.mulf %97, %99 : vector<8x256xf32>
    %c184_i32 = arith.constant 184 : i32
    %101 = tpu.dynamic_rotate %2 by %c184_i32 dim 1 : vector<8x256xf32>, i32 -> vector<8x256xf32>
    %c25 = arith.constant 25 : index
    %c0_54 = arith.constant 0 : index
    %c0_55 = arith.constant 0 : index
    %102 = vector.load %arg6[%c25, %c0_54, %c0_55] : memref<27x8x256xf32, #tpu.memory_space<vmem>>, vector<1x8x256xf32>
    %103 = vector.shape_cast %102 : vector<1x8x256xf32> to vector<8x256xf32>
    %104 = arith.mulf %101, %103 : vector<8x256xf32>
    %c183_i32 = arith.constant 183 : i32
    %105 = tpu.dynamic_rotate %2 by %c183_i32 dim 1 : vector<8x256xf32>, i32 -> vector<8x256xf32>
    %c26 = arith.constant 26 : index
    %c0_56 = arith.constant 0 : index
    %c0_57 = arith.constant 0 : index
    %106 = vector.load %arg6[%c26, %c0_56, %c0_57] : memref<27x8x256xf32, #tpu.memory_space<vmem>>, vector<1x8x256xf32>
    %107 = vector.shape_cast %106 : vector<1x8x256xf32> to vector<8x256xf32>
    %108 = arith.mulf %105, %107 : vector<8x256xf32>
    %109 = tpu.concatenate %8, %12, %16, %20, %24, %28, %32, %36, %40, %44, %48, %52, %56, %2, %60, %64 in 0 : vector<8x256xf32>, vector<8x256xf32>, vector<8x256xf32>, vector<8x256xf32>, vector<8x256xf32>, vector<8x256xf32>, vector<8x256xf32>, vector<8x256xf32>, vector<8x256xf32>, vector<8x256xf32>, vector<8x256xf32>, vector<8x256xf32>, vector<8x256xf32>, vector<8x256xf32>, vector<8x256xf32>, vector<8x256xf32> -> vector<128x256xf32>
    %110 = tpu.concatenate %68, %72, %76, %80, %84, %88, %92, %96, %100, %104, %108, %0 in 0 : vector<8x256xf32>, vector<8x256xf32>, vector<8x256xf32>, vector<8x256xf32>, vector<8x256xf32>, vector<8x256xf32>, vector<8x256xf32>, vector<8x256xf32>, vector<8x256xf32>, vector<8x256xf32>, vector<8x256xf32>, vector<40x256xf32> -> vector<128x256xf32>
    %111 = tpu.concatenate %109, %110 in 0 : vector<128x256xf32>, vector<128x256xf32> -> vector<256x256xf32>
    %cst_58 = arith.constant dense<0.000000e+00> : vector<8x256xf32>
    %112 = tpu.matmul %4, %111, %cst_58 {dimension_numbers = #tpu.dot_dimension_numbers<[1], [0], [0], [1], [0, 0, 1, 1], [], []>} : vector<8x256xf32>, vector<256x256xf32>, vector<8x256xf32> -> vector<8x256xf32>
    %c0_59 = arith.constant 0 : index
    %c0_60 = arith.constant 0 : index
    %c0_61 = arith.constant 0 : index
    %113 = vector.load %arg5[%c0_59, %c0_60, %c0_61] : memref<9x8x256xf32, #tpu.memory_space<vmem>>, vector<1x8x256xf32>
    %114 = vector.shape_cast %113 : vector<1x8x256xf32> to vector<8x256xf32>
    %115 = arith.addf %112, %114 : vector<8x256xf32>
    %cst_62 = arith.constant 0.000000e+00 : f32
    %116 = vector.broadcast %cst_62 : f32 to vector<8x256xf32>
    %117 = arith.cmpf oge, %115, %116 : vector<8x256xf32>
    %cst_63 = arith.constant 0.00999999977 : f32
    %118 = vector.broadcast %cst_63 : f32 to vector<8x256xf32>
    %119 = arith.mulf %118, %115 : vector<8x256xf32>
    %120 = arith.select %117, %115, %119 : vector<8x256xi1>, vector<8x256xf32>
    %c0_64 = arith.constant 0 : index
    %c0_65 = arith.constant 0 : index
    %c0_66 = arith.constant 0 : index
    %121 = vector.load %arg4[%c0_64, %c0_65, %c0_66] : memref<3x8x8xf32, #tpu.memory_space<vmem>>, vector<1x8x8xf32>
    %122 = vector.shape_cast %121 : vector<1x8x8xf32> to vector<8x8xf32>
    %cst_67 = arith.constant dense<0.000000e+00> : vector<8x256xf32>
    %123 = tpu.matmul %122, %120, %cst_67 {dimension_numbers = #tpu.dot_dimension_numbers<[1], [0], [0], [1], [0, 0, 1, 1], [], []>} : vector<8x8xf32>, vector<8x256xf32>, vector<8x256xf32> -> vector<8x256xf32>
    %c1_68 = arith.constant 1 : index
    %c0_69 = arith.constant 0 : index
    %c0_70 = arith.constant 0 : index
    %124 = vector.load %arg5[%c1_68, %c0_69, %c0_70] : memref<9x8x256xf32, #tpu.memory_space<vmem>>, vector<1x8x256xf32>
    %125 = vector.shape_cast %124 : vector<1x8x256xf32> to vector<8x256xf32>
    %126 = arith.addf %123, %125 : vector<8x256xf32>
    %cst_71 = arith.constant 0.000000e+00 : f32
    %127 = vector.broadcast %cst_71 : f32 to vector<8x256xf32>
    %128 = arith.cmpf oge, %126, %127 : vector<8x256xf32>
    %cst_72 = arith.constant 0.00999999977 : f32
    %129 = vector.broadcast %cst_72 : f32 to vector<8x256xf32>
    %130 = arith.mulf %129, %126 : vector<8x256xf32>
    %131 = arith.select %128, %126, %130 : vector<8x256xi1>, vector<8x256xf32>
    %c0_73 = arith.constant 0 : index
    %c0_74 = arith.constant 0 : index
    %c0_75 = arith.constant 0 : index
    %132 = vector.load %arg3[%c0_73, %c0_74, %c0_75] : memref<3x8x256xf32, #tpu.memory_space<vmem>>, vector<1x8x256xf32>
    %133 = vector.shape_cast %132 : vector<1x8x256xf32> to vector<8x256xf32>
    %c73_i32_76 = arith.constant 73 : i32
    %134 = tpu.dynamic_rotate %131 by %c73_i32_76 dim 1 : vector<8x256xf32>, i32 -> vector<8x256xf32>
    %c0_77 = arith.constant 0 : index
    %c0_78 = arith.constant 0 : index
    %c0_79 = arith.constant 0 : index
    %135 = vector.load %arg6[%c0_77, %c0_78, %c0_79] : memref<27x8x256xf32, #tpu.memory_space<vmem>>, vector<1x8x256xf32>
    %136 = vector.shape_cast %135 : vector<1x8x256xf32> to vector<8x256xf32>
    %137 = arith.mulf %134, %136 : vector<8x256xf32>
    %c72_i32_80 = arith.constant 72 : i32
    %138 = tpu.dynamic_rotate %131 by %c72_i32_80 dim 1 : vector<8x256xf32>, i32 -> vector<8x256xf32>
    %c1_81 = arith.constant 1 : index
    %c0_82 = arith.constant 0 : index
    %c0_83 = arith.constant 0 : index
    %139 = vector.load %arg6[%c1_81, %c0_82, %c0_83] : memref<27x8x256xf32, #tpu.memory_space<vmem>>, vector<1x8x256xf32>
    %140 = vector.shape_cast %139 : vector<1x8x256xf32> to vector<8x256xf32>
    %141 = arith.mulf %138, %140 : vector<8x256xf32>
    %c71_i32_84 = arith.constant 71 : i32
    %142 = tpu.dynamic_rotate %131 by %c71_i32_84 dim 1 : vector<8x256xf32>, i32 -> vector<8x256xf32>
    %c2_85 = arith.constant 2 : index
    %c0_86 = arith.constant 0 : index
    %c0_87 = arith.constant 0 : index
    %143 = vector.load %arg6[%c2_85, %c0_86, %c0_87] : memref<27x8x256xf32, #tpu.memory_space<vmem>>, vector<1x8x256xf32>
    %144 = vector.shape_cast %143 : vector<1x8x256xf32> to vector<8x256xf32>
    %145 = arith.mulf %142, %144 : vector<8x256xf32>
    %c65_i32_88 = arith.constant 65 : i32
    %146 = tpu.dynamic_rotate %131 by %c65_i32_88 dim 1 : vector<8x256xf32>, i32 -> vector<8x256xf32>
    %c3_89 = arith.constant 3 : index
    %c0_90 = arith.constant 0 : index
    %c0_91 = arith.constant 0 : index
    %147 = vector.load %arg6[%c3_89, %c0_90, %c0_91] : memref<27x8x256xf32, #tpu.memory_space<vmem>>, vector<1x8x256xf32>
    %148 = vector.shape_cast %147 : vector<1x8x256xf32> to vector<8x256xf32>
    %149 = arith.mulf %146, %148 : vector<8x256xf32>
    %c64_i32_92 = arith.constant 64 : i32
    %150 = tpu.dynamic_rotate %131 by %c64_i32_92 dim 1 : vector<8x256xf32>, i32 -> vector<8x256xf32>
    %c4_93 = arith.constant 4 : index
    %c0_94 = arith.constant 0 : index
    %c0_95 = arith.constant 0 : index
    %151 = vector.load %arg6[%c4_93, %c0_94, %c0_95] : memref<27x8x256xf32, #tpu.memory_space<vmem>>, vector<1x8x256xf32>
    %152 = vector.shape_cast %151 : vector<1x8x256xf32> to vector<8x256xf32>
    %153 = arith.mulf %150, %152 : vector<8x256xf32>
    %c63_i32_96 = arith.constant 63 : i32
    %154 = tpu.dynamic_rotate %131 by %c63_i32_96 dim 1 : vector<8x256xf32>, i32 -> vector<8x256xf32>
    %c5_97 = arith.constant 5 : index
    %c0_98 = arith.constant 0 : index
    %c0_99 = arith.constant 0 : index
    %155 = vector.load %arg6[%c5_97, %c0_98, %c0_99] : memref<27x8x256xf32, #tpu.memory_space<vmem>>, vector<1x8x256xf32>
    %156 = vector.shape_cast %155 : vector<1x8x256xf32> to vector<8x256xf32>
    %157 = arith.mulf %154, %156 : vector<8x256xf32>
    %c57_i32_100 = arith.constant 57 : i32
    %158 = tpu.dynamic_rotate %131 by %c57_i32_100 dim 1 : vector<8x256xf32>, i32 -> vector<8x256xf32>
    %c6_101 = arith.constant 6 : index
    %c0_102 = arith.constant 0 : index
    %c0_103 = arith.constant 0 : index
    %159 = vector.load %arg6[%c6_101, %c0_102, %c0_103] : memref<27x8x256xf32, #tpu.memory_space<vmem>>, vector<1x8x256xf32>
    %160 = vector.shape_cast %159 : vector<1x8x256xf32> to vector<8x256xf32>
    %161 = arith.mulf %158, %160 : vector<8x256xf32>
    %c56_i32_104 = arith.constant 56 : i32
    %162 = tpu.dynamic_rotate %131 by %c56_i32_104 dim 1 : vector<8x256xf32>, i32 -> vector<8x256xf32>
    %c7_105 = arith.constant 7 : index
    %c0_106 = arith.constant 0 : index
    %c0_107 = arith.constant 0 : index
    %163 = vector.load %arg6[%c7_105, %c0_106, %c0_107] : memref<27x8x256xf32, #tpu.memory_space<vmem>>, vector<1x8x256xf32>
    %164 = vector.shape_cast %163 : vector<1x8x256xf32> to vector<8x256xf32>
    %165 = arith.mulf %162, %164 : vector<8x256xf32>
    %c55_i32_108 = arith.constant 55 : i32
    %166 = tpu.dynamic_rotate %131 by %c55_i32_108 dim 1 : vector<8x256xf32>, i32 -> vector<8x256xf32>
    %c8_109 = arith.constant 8 : index
    %c0_110 = arith.constant 0 : index
    %c0_111 = arith.constant 0 : index
    %167 = vector.load %arg6[%c8_109, %c0_110, %c0_111] : memref<27x8x256xf32, #tpu.memory_space<vmem>>, vector<1x8x256xf32>
    %168 = vector.shape_cast %167 : vector<1x8x256xf32> to vector<8x256xf32>
    %169 = arith.mulf %166, %168 : vector<8x256xf32>
    %c9_i32_112 = arith.constant 9 : i32
    %170 = tpu.dynamic_rotate %131 by %c9_i32_112 dim 1 : vector<8x256xf32>, i32 -> vector<8x256xf32>
    %c9_113 = arith.constant 9 : index
    %c0_114 = arith.constant 0 : index
    %c0_115 = arith.constant 0 : index
    %171 = vector.load %arg6[%c9_113, %c0_114, %c0_115] : memref<27x8x256xf32, #tpu.memory_space<vmem>>, vector<1x8x256xf32>
    %172 = vector.shape_cast %171 : vector<1x8x256xf32> to vector<8x256xf32>
    %173 = arith.mulf %170, %172 : vector<8x256xf32>
    %c8_i32_116 = arith.constant 8 : i32
    %174 = tpu.dynamic_rotate %131 by %c8_i32_116 dim 1 : vector<8x256xf32>, i32 -> vector<8x256xf32>
    %c10_117 = arith.constant 10 : index
    %c0_118 = arith.constant 0 : index
    %c0_119 = arith.constant 0 : index
    %175 = vector.load %arg6[%c10_117, %c0_118, %c0_119] : memref<27x8x256xf32, #tpu.memory_space<vmem>>, vector<1x8x256xf32>
    %176 = vector.shape_cast %175 : vector<1x8x256xf32> to vector<8x256xf32>
    %177 = arith.mulf %174, %176 : vector<8x256xf32>
    %c7_i32_120 = arith.constant 7 : i32
    %178 = tpu.dynamic_rotate %131 by %c7_i32_120 dim 1 : vector<8x256xf32>, i32 -> vector<8x256xf32>
    %c11_121 = arith.constant 11 : index
    %c0_122 = arith.constant 0 : index
    %c0_123 = arith.constant 0 : index
    %179 = vector.load %arg6[%c11_121, %c0_122, %c0_123] : memref<27x8x256xf32, #tpu.memory_space<vmem>>, vector<1x8x256xf32>
    %180 = vector.shape_cast %179 : vector<1x8x256xf32> to vector<8x256xf32>
    %181 = arith.mulf %178, %180 : vector<8x256xf32>
    %c1_i32_124 = arith.constant 1 : i32
    %182 = tpu.dynamic_rotate %131 by %c1_i32_124 dim 1 : vector<8x256xf32>, i32 -> vector<8x256xf32>
    %c12_125 = arith.constant 12 : index
    %c0_126 = arith.constant 0 : index
    %c0_127 = arith.constant 0 : index
    %183 = vector.load %arg6[%c12_125, %c0_126, %c0_127] : memref<27x8x256xf32, #tpu.memory_space<vmem>>, vector<1x8x256xf32>
    %184 = vector.shape_cast %183 : vector<1x8x256xf32> to vector<8x256xf32>
    %185 = arith.mulf %182, %184 : vector<8x256xf32>
    %c255_i32_128 = arith.constant 255 : i32
    %186 = tpu.dynamic_rotate %131 by %c255_i32_128 dim 1 : vector<8x256xf32>, i32 -> vector<8x256xf32>
    %c14_129 = arith.constant 14 : index
    %c0_130 = arith.constant 0 : index
    %c0_131 = arith.constant 0 : index
    %187 = vector.load %arg6[%c14_129, %c0_130, %c0_131] : memref<27x8x256xf32, #tpu.memory_space<vmem>>, vector<1x8x256xf32>
    %188 = vector.shape_cast %187 : vector<1x8x256xf32> to vector<8x256xf32>
    %189 = arith.mulf %186, %188 : vector<8x256xf32>
    %c249_i32_132 = arith.constant 249 : i32
    %190 = tpu.dynamic_rotate %131 by %c249_i32_132 dim 1 : vector<8x256xf32>, i32 -> vector<8x256xf32>
    %c15_133 = arith.constant 15 : index
    %c0_134 = arith.constant 0 : index
    %c0_135 = arith.constant 0 : index
    %191 = vector.load %arg6[%c15_133, %c0_134, %c0_135] : memref<27x8x256xf32, #tpu.memory_space<vmem>>, vector<1x8x256xf32>
    %192 = vector.shape_cast %191 : vector<1x8x256xf32> to vector<8x256xf32>
    %193 = arith.mulf %190, %192 : vector<8x256xf32>
    %c248_i32_136 = arith.constant 248 : i32
    %194 = tpu.dynamic_rotate %131 by %c248_i32_136 dim 1 : vector<8x256xf32>, i32 -> vector<8x256xf32>
    %c16_137 = arith.constant 16 : index
    %c0_138 = arith.constant 0 : index
    %c0_139 = arith.constant 0 : index
    %195 = vector.load %arg6[%c16_137, %c0_138, %c0_139] : memref<27x8x256xf32, #tpu.memory_space<vmem>>, vector<1x8x256xf32>
    %196 = vector.shape_cast %195 : vector<1x8x256xf32> to vector<8x256xf32>
    %197 = arith.mulf %194, %196 : vector<8x256xf32>
    %c247_i32_140 = arith.constant 247 : i32
    %198 = tpu.dynamic_rotate %131 by %c247_i32_140 dim 1 : vector<8x256xf32>, i32 -> vector<8x256xf32>
    %c17_141 = arith.constant 17 : index
    %c0_142 = arith.constant 0 : index
    %c0_143 = arith.constant 0 : index
    %199 = vector.load %arg6[%c17_141, %c0_142, %c0_143] : memref<27x8x256xf32, #tpu.memory_space<vmem>>, vector<1x8x256xf32>
    %200 = vector.shape_cast %199 : vector<1x8x256xf32> to vector<8x256xf32>
    %201 = arith.mulf %198, %200 : vector<8x256xf32>
    %c201_i32_144 = arith.constant 201 : i32
    %202 = tpu.dynamic_rotate %131 by %c201_i32_144 dim 1 : vector<8x256xf32>, i32 -> vector<8x256xf32>
    %c18_145 = arith.constant 18 : index
    %c0_146 = arith.constant 0 : index
    %c0_147 = arith.constant 0 : index
    %203 = vector.load %arg6[%c18_145, %c0_146, %c0_147] : memref<27x8x256xf32, #tpu.memory_space<vmem>>, vector<1x8x256xf32>
    %204 = vector.shape_cast %203 : vector<1x8x256xf32> to vector<8x256xf32>
    %205 = arith.mulf %202, %204 : vector<8x256xf32>
    %c200_i32_148 = arith.constant 200 : i32
    %206 = tpu.dynamic_rotate %131 by %c200_i32_148 dim 1 : vector<8x256xf32>, i32 -> vector<8x256xf32>
    %c19_149 = arith.constant 19 : index
    %c0_150 = arith.constant 0 : index
    %c0_151 = arith.constant 0 : index
    %207 = vector.load %arg6[%c19_149, %c0_150, %c0_151] : memref<27x8x256xf32, #tpu.memory_space<vmem>>, vector<1x8x256xf32>
    %208 = vector.shape_cast %207 : vector<1x8x256xf32> to vector<8x256xf32>
    %209 = arith.mulf %206, %208 : vector<8x256xf32>
    %c199_i32_152 = arith.constant 199 : i32
    %210 = tpu.dynamic_rotate %131 by %c199_i32_152 dim 1 : vector<8x256xf32>, i32 -> vector<8x256xf32>
    %c20_153 = arith.constant 20 : index
    %c0_154 = arith.constant 0 : index
    %c0_155 = arith.constant 0 : index
    %211 = vector.load %arg6[%c20_153, %c0_154, %c0_155] : memref<27x8x256xf32, #tpu.memory_space<vmem>>, vector<1x8x256xf32>
    %212 = vector.shape_cast %211 : vector<1x8x256xf32> to vector<8x256xf32>
    %213 = arith.mulf %210, %212 : vector<8x256xf32>
    %c193_i32_156 = arith.constant 193 : i32
    %214 = tpu.dynamic_rotate %131 by %c193_i32_156 dim 1 : vector<8x256xf32>, i32 -> vector<8x256xf32>
    %c21_157 = arith.constant 21 : index
    %c0_158 = arith.constant 0 : index
    %c0_159 = arith.constant 0 : index
    %215 = vector.load %arg6[%c21_157, %c0_158, %c0_159] : memref<27x8x256xf32, #tpu.memory_space<vmem>>, vector<1x8x256xf32>
    %216 = vector.shape_cast %215 : vector<1x8x256xf32> to vector<8x256xf32>
    %217 = arith.mulf %214, %216 : vector<8x256xf32>
    %c192_i32_160 = arith.constant 192 : i32
    %218 = tpu.dynamic_rotate %131 by %c192_i32_160 dim 1 : vector<8x256xf32>, i32 -> vector<8x256xf32>
    %c22_161 = arith.constant 22 : index
    %c0_162 = arith.constant 0 : index
    %c0_163 = arith.constant 0 : index
    %219 = vector.load %arg6[%c22_161, %c0_162, %c0_163] : memref<27x8x256xf32, #tpu.memory_space<vmem>>, vector<1x8x256xf32>
    %220 = vector.shape_cast %219 : vector<1x8x256xf32> to vector<8x256xf32>
    %221 = arith.mulf %218, %220 : vector<8x256xf32>
    %c191_i32_164 = arith.constant 191 : i32
    %222 = tpu.dynamic_rotate %131 by %c191_i32_164 dim 1 : vector<8x256xf32>, i32 -> vector<8x256xf32>
    %c23_165 = arith.constant 23 : index
    %c0_166 = arith.constant 0 : index
    %c0_167 = arith.constant 0 : index
    %223 = vector.load %arg6[%c23_165, %c0_166, %c0_167] : memref<27x8x256xf32, #tpu.memory_space<vmem>>, vector<1x8x256xf32>
    %224 = vector.shape_cast %223 : vector<1x8x256xf32> to vector<8x256xf32>
    %225 = arith.mulf %222, %224 : vector<8x256xf32>
    %c185_i32_168 = arith.constant 185 : i32
    %226 = tpu.dynamic_rotate %131 by %c185_i32_168 dim 1 : vector<8x256xf32>, i32 -> vector<8x256xf32>
    %c24_169 = arith.constant 24 : index
    %c0_170 = arith.constant 0 : index
    %c0_171 = arith.constant 0 : index
    %227 = vector.load %arg6[%c24_169, %c0_170, %c0_171] : memref<27x8x256xf32, #tpu.memory_space<vmem>>, vector<1x8x256xf32>
    %228 = vector.shape_cast %227 : vector<1x8x256xf32> to vector<8x256xf32>
    %229 = arith.mulf %226, %228 : vector<8x256xf32>
    %c184_i32_172 = arith.constant 184 : i32
    %230 = tpu.dynamic_rotate %131 by %c184_i32_172 dim 1 : vector<8x256xf32>, i32 -> vector<8x256xf32>
    %c25_173 = arith.constant 25 : index
    %c0_174 = arith.constant 0 : index
    %c0_175 = arith.constant 0 : index
    %231 = vector.load %arg6[%c25_173, %c0_174, %c0_175] : memref<27x8x256xf32, #tpu.memory_space<vmem>>, vector<1x8x256xf32>
    %232 = vector.shape_cast %231 : vector<1x8x256xf32> to vector<8x256xf32>
    %233 = arith.mulf %230, %232 : vector<8x256xf32>
    %c183_i32_176 = arith.constant 183 : i32
    %234 = tpu.dynamic_rotate %131 by %c183_i32_176 dim 1 : vector<8x256xf32>, i32 -> vector<8x256xf32>
    %c26_177 = arith.constant 26 : index
    %c0_178 = arith.constant 0 : index
    %c0_179 = arith.constant 0 : index
    %235 = vector.load %arg6[%c26_177, %c0_178, %c0_179] : memref<27x8x256xf32, #tpu.memory_space<vmem>>, vector<1x8x256xf32>
    %236 = vector.shape_cast %235 : vector<1x8x256xf32> to vector<8x256xf32>
    %237 = arith.mulf %234, %236 : vector<8x256xf32>
    %238 = tpu.concatenate %137, %141, %145, %149, %153, %157, %161, %165, %169, %173, %177, %181, %185, %131, %189, %193 in 0 : vector<8x256xf32>, vector<8x256xf32>, vector<8x256xf32>, vector<8x256xf32>, vector<8x256xf32>, vector<8x256xf32>, vector<8x256xf32>, vector<8x256xf32>, vector<8x256xf32>, vector<8x256xf32>, vector<8x256xf32>, vector<8x256xf32>, vector<8x256xf32>, vector<8x256xf32>, vector<8x256xf32>, vector<8x256xf32> -> vector<128x256xf32>
    %239 = tpu.concatenate %197, %201, %205, %209, %213, %217, %221, %225, %229, %233, %237, %0 in 0 : vector<8x256xf32>, vector<8x256xf32>, vector<8x256xf32>, vector<8x256xf32>, vector<8x256xf32>, vector<8x256xf32>, vector<8x256xf32>, vector<8x256xf32>, vector<8x256xf32>, vector<8x256xf32>, vector<8x256xf32>, vector<40x256xf32> -> vector<128x256xf32>
    %240 = tpu.concatenate %238, %239 in 0 : vector<128x256xf32>, vector<128x256xf32> -> vector<256x256xf32>
    %cst_180 = arith.constant dense<0.000000e+00> : vector<8x256xf32>
    %241 = tpu.matmul %133, %240, %cst_180 {dimension_numbers = #tpu.dot_dimension_numbers<[1], [0], [0], [1], [0, 0, 1, 1], [], []>} : vector<8x256xf32>, vector<256x256xf32>, vector<8x256xf32> -> vector<8x256xf32>
    %c2_181 = arith.constant 2 : index
    %c0_182 = arith.constant 0 : index
    %c0_183 = arith.constant 0 : index
    %242 = vector.load %arg5[%c2_181, %c0_182, %c0_183] : memref<9x8x256xf32, #tpu.memory_space<vmem>>, vector<1x8x256xf32>
    %243 = vector.shape_cast %242 : vector<1x8x256xf32> to vector<8x256xf32>
    %244 = arith.addf %241, %243 : vector<8x256xf32>
    %245 = arith.addf %2, %244 : vector<8x256xf32>
    %c1_184 = arith.constant 1 : index
    %c0_185 = arith.constant 0 : index
    %c0_186 = arith.constant 0 : index
    %246 = vector.load %arg2[%c1_184, %c0_185, %c0_186] : memref<3x8x256xf32, #tpu.memory_space<vmem>>, vector<1x8x256xf32>
    %247 = vector.shape_cast %246 : vector<1x8x256xf32> to vector<8x256xf32>
    %c73_i32_187 = arith.constant 73 : i32
    %248 = tpu.dynamic_rotate %245 by %c73_i32_187 dim 1 : vector<8x256xf32>, i32 -> vector<8x256xf32>
    %c0_188 = arith.constant 0 : index
    %c0_189 = arith.constant 0 : index
    %c0_190 = arith.constant 0 : index
    %249 = vector.load %arg6[%c0_188, %c0_189, %c0_190] : memref<27x8x256xf32, #tpu.memory_space<vmem>>, vector<1x8x256xf32>
    %250 = vector.shape_cast %249 : vector<1x8x256xf32> to vector<8x256xf32>
    %251 = arith.mulf %248, %250 : vector<8x256xf32>
    %c72_i32_191 = arith.constant 72 : i32
    %252 = tpu.dynamic_rotate %245 by %c72_i32_191 dim 1 : vector<8x256xf32>, i32 -> vector<8x256xf32>
    %c1_192 = arith.constant 1 : index
    %c0_193 = arith.constant 0 : index
    %c0_194 = arith.constant 0 : index
    %253 = vector.load %arg6[%c1_192, %c0_193, %c0_194] : memref<27x8x256xf32, #tpu.memory_space<vmem>>, vector<1x8x256xf32>
    %254 = vector.shape_cast %253 : vector<1x8x256xf32> to vector<8x256xf32>
    %255 = arith.mulf %252, %254 : vector<8x256xf32>
    %c71_i32_195 = arith.constant 71 : i32
    %256 = tpu.dynamic_rotate %245 by %c71_i32_195 dim 1 : vector<8x256xf32>, i32 -> vector<8x256xf32>
    %c2_196 = arith.constant 2 : index
    %c0_197 = arith.constant 0 : index
    %c0_198 = arith.constant 0 : index
    %257 = vector.load %arg6[%c2_196, %c0_197, %c0_198] : memref<27x8x256xf32, #tpu.memory_space<vmem>>, vector<1x8x256xf32>
    %258 = vector.shape_cast %257 : vector<1x8x256xf32> to vector<8x256xf32>
    %259 = arith.mulf %256, %258 : vector<8x256xf32>
    %c65_i32_199 = arith.constant 65 : i32
    %260 = tpu.dynamic_rotate %245 by %c65_i32_199 dim 1 : vector<8x256xf32>, i32 -> vector<8x256xf32>
    %c3_200 = arith.constant 3 : index
    %c0_201 = arith.constant 0 : index
    %c0_202 = arith.constant 0 : index
    %261 = vector.load %arg6[%c3_200, %c0_201, %c0_202] : memref<27x8x256xf32, #tpu.memory_space<vmem>>, vector<1x8x256xf32>
    %262 = vector.shape_cast %261 : vector<1x8x256xf32> to vector<8x256xf32>
    %263 = arith.mulf %260, %262 : vector<8x256xf32>
    %c64_i32_203 = arith.constant 64 : i32
    %264 = tpu.dynamic_rotate %245 by %c64_i32_203 dim 1 : vector<8x256xf32>, i32 -> vector<8x256xf32>
    %c4_204 = arith.constant 4 : index
    %c0_205 = arith.constant 0 : index
    %c0_206 = arith.constant 0 : index
    %265 = vector.load %arg6[%c4_204, %c0_205, %c0_206] : memref<27x8x256xf32, #tpu.memory_space<vmem>>, vector<1x8x256xf32>
    %266 = vector.shape_cast %265 : vector<1x8x256xf32> to vector<8x256xf32>
    %267 = arith.mulf %264, %266 : vector<8x256xf32>
    %c63_i32_207 = arith.constant 63 : i32
    %268 = tpu.dynamic_rotate %245 by %c63_i32_207 dim 1 : vector<8x256xf32>, i32 -> vector<8x256xf32>
    %c5_208 = arith.constant 5 : index
    %c0_209 = arith.constant 0 : index
    %c0_210 = arith.constant 0 : index
    %269 = vector.load %arg6[%c5_208, %c0_209, %c0_210] : memref<27x8x256xf32, #tpu.memory_space<vmem>>, vector<1x8x256xf32>
    %270 = vector.shape_cast %269 : vector<1x8x256xf32> to vector<8x256xf32>
    %271 = arith.mulf %268, %270 : vector<8x256xf32>
    %c57_i32_211 = arith.constant 57 : i32
    %272 = tpu.dynamic_rotate %245 by %c57_i32_211 dim 1 : vector<8x256xf32>, i32 -> vector<8x256xf32>
    %c6_212 = arith.constant 6 : index
    %c0_213 = arith.constant 0 : index
    %c0_214 = arith.constant 0 : index
    %273 = vector.load %arg6[%c6_212, %c0_213, %c0_214] : memref<27x8x256xf32, #tpu.memory_space<vmem>>, vector<1x8x256xf32>
    %274 = vector.shape_cast %273 : vector<1x8x256xf32> to vector<8x256xf32>
    %275 = arith.mulf %272, %274 : vector<8x256xf32>
    %c56_i32_215 = arith.constant 56 : i32
    %276 = tpu.dynamic_rotate %245 by %c56_i32_215 dim 1 : vector<8x256xf32>, i32 -> vector<8x256xf32>
    %c7_216 = arith.constant 7 : index
    %c0_217 = arith.constant 0 : index
    %c0_218 = arith.constant 0 : index
    %277 = vector.load %arg6[%c7_216, %c0_217, %c0_218] : memref<27x8x256xf32, #tpu.memory_space<vmem>>, vector<1x8x256xf32>
    %278 = vector.shape_cast %277 : vector<1x8x256xf32> to vector<8x256xf32>
    %279 = arith.mulf %276, %278 : vector<8x256xf32>
    %c55_i32_219 = arith.constant 55 : i32
    %280 = tpu.dynamic_rotate %245 by %c55_i32_219 dim 1 : vector<8x256xf32>, i32 -> vector<8x256xf32>
    %c8_220 = arith.constant 8 : index
    %c0_221 = arith.constant 0 : index
    %c0_222 = arith.constant 0 : index
    %281 = vector.load %arg6[%c8_220, %c0_221, %c0_222] : memref<27x8x256xf32, #tpu.memory_space<vmem>>, vector<1x8x256xf32>
    %282 = vector.shape_cast %281 : vector<1x8x256xf32> to vector<8x256xf32>
    %283 = arith.mulf %280, %282 : vector<8x256xf32>
    %c9_i32_223 = arith.constant 9 : i32
    %284 = tpu.dynamic_rotate %245 by %c9_i32_223 dim 1 : vector<8x256xf32>, i32 -> vector<8x256xf32>
    %c9_224 = arith.constant 9 : index
    %c0_225 = arith.constant 0 : index
    %c0_226 = arith.constant 0 : index
    %285 = vector.load %arg6[%c9_224, %c0_225, %c0_226] : memref<27x8x256xf32, #tpu.memory_space<vmem>>, vector<1x8x256xf32>
    %286 = vector.shape_cast %285 : vector<1x8x256xf32> to vector<8x256xf32>
    %287 = arith.mulf %284, %286 : vector<8x256xf32>
    %c8_i32_227 = arith.constant 8 : i32
    %288 = tpu.dynamic_rotate %245 by %c8_i32_227 dim 1 : vector<8x256xf32>, i32 -> vector<8x256xf32>
    %c10_228 = arith.constant 10 : index
    %c0_229 = arith.constant 0 : index
    %c0_230 = arith.constant 0 : index
    %289 = vector.load %arg6[%c10_228, %c0_229, %c0_230] : memref<27x8x256xf32, #tpu.memory_space<vmem>>, vector<1x8x256xf32>
    %290 = vector.shape_cast %289 : vector<1x8x256xf32> to vector<8x256xf32>
    %291 = arith.mulf %288, %290 : vector<8x256xf32>
    %c7_i32_231 = arith.constant 7 : i32
    %292 = tpu.dynamic_rotate %245 by %c7_i32_231 dim 1 : vector<8x256xf32>, i32 -> vector<8x256xf32>
    %c11_232 = arith.constant 11 : index
    %c0_233 = arith.constant 0 : index
    %c0_234 = arith.constant 0 : index
    %293 = vector.load %arg6[%c11_232, %c0_233, %c0_234] : memref<27x8x256xf32, #tpu.memory_space<vmem>>, vector<1x8x256xf32>
    %294 = vector.shape_cast %293 : vector<1x8x256xf32> to vector<8x256xf32>
    %295 = arith.mulf %292, %294 : vector<8x256xf32>
    %c1_i32_235 = arith.constant 1 : i32
    %296 = tpu.dynamic_rotate %245 by %c1_i32_235 dim 1 : vector<8x256xf32>, i32 -> vector<8x256xf32>
    %c12_236 = arith.constant 12 : index
    %c0_237 = arith.constant 0 : index
    %c0_238 = arith.constant 0 : index
    %297 = vector.load %arg6[%c12_236, %c0_237, %c0_238] : memref<27x8x256xf32, #tpu.memory_space<vmem>>, vector<1x8x256xf32>
    %298 = vector.shape_cast %297 : vector<1x8x256xf32> to vector<8x256xf32>
    %299 = arith.mulf %296, %298 : vector<8x256xf32>
    %c255_i32_239 = arith.constant 255 : i32
    %300 = tpu.dynamic_rotate %245 by %c255_i32_239 dim 1 : vector<8x256xf32>, i32 -> vector<8x256xf32>
    %c14_240 = arith.constant 14 : index
    %c0_241 = arith.constant 0 : index
    %c0_242 = arith.constant 0 : index
    %301 = vector.load %arg6[%c14_240, %c0_241, %c0_242] : memref<27x8x256xf32, #tpu.memory_space<vmem>>, vector<1x8x256xf32>
    %302 = vector.shape_cast %301 : vector<1x8x256xf32> to vector<8x256xf32>
    %303 = arith.mulf %300, %302 : vector<8x256xf32>
    %c249_i32_243 = arith.constant 249 : i32
    %304 = tpu.dynamic_rotate %245 by %c249_i32_243 dim 1 : vector<8x256xf32>, i32 -> vector<8x256xf32>
    %c15_244 = arith.constant 15 : index
    %c0_245 = arith.constant 0 : index
    %c0_246 = arith.constant 0 : index
    %305 = vector.load %arg6[%c15_244, %c0_245, %c0_246] : memref<27x8x256xf32, #tpu.memory_space<vmem>>, vector<1x8x256xf32>
    %306 = vector.shape_cast %305 : vector<1x8x256xf32> to vector<8x256xf32>
    %307 = arith.mulf %304, %306 : vector<8x256xf32>
    %c248_i32_247 = arith.constant 248 : i32
    %308 = tpu.dynamic_rotate %245 by %c248_i32_247 dim 1 : vector<8x256xf32>, i32 -> vector<8x256xf32>
    %c16_248 = arith.constant 16 : index
    %c0_249 = arith.constant 0 : index
    %c0_250 = arith.constant 0 : index
    %309 = vector.load %arg6[%c16_248, %c0_249, %c0_250] : memref<27x8x256xf32, #tpu.memory_space<vmem>>, vector<1x8x256xf32>
    %310 = vector.shape_cast %309 : vector<1x8x256xf32> to vector<8x256xf32>
    %311 = arith.mulf %308, %310 : vector<8x256xf32>
    %c247_i32_251 = arith.constant 247 : i32
    %312 = tpu.dynamic_rotate %245 by %c247_i32_251 dim 1 : vector<8x256xf32>, i32 -> vector<8x256xf32>
    %c17_252 = arith.constant 17 : index
    %c0_253 = arith.constant 0 : index
    %c0_254 = arith.constant 0 : index
    %313 = vector.load %arg6[%c17_252, %c0_253, %c0_254] : memref<27x8x256xf32, #tpu.memory_space<vmem>>, vector<1x8x256xf32>
    %314 = vector.shape_cast %313 : vector<1x8x256xf32> to vector<8x256xf32>
    %315 = arith.mulf %312, %314 : vector<8x256xf32>
    %c201_i32_255 = arith.constant 201 : i32
    %316 = tpu.dynamic_rotate %245 by %c201_i32_255 dim 1 : vector<8x256xf32>, i32 -> vector<8x256xf32>
    %c18_256 = arith.constant 18 : index
    %c0_257 = arith.constant 0 : index
    %c0_258 = arith.constant 0 : index
    %317 = vector.load %arg6[%c18_256, %c0_257, %c0_258] : memref<27x8x256xf32, #tpu.memory_space<vmem>>, vector<1x8x256xf32>
    %318 = vector.shape_cast %317 : vector<1x8x256xf32> to vector<8x256xf32>
    %319 = arith.mulf %316, %318 : vector<8x256xf32>
    %c200_i32_259 = arith.constant 200 : i32
    %320 = tpu.dynamic_rotate %245 by %c200_i32_259 dim 1 : vector<8x256xf32>, i32 -> vector<8x256xf32>
    %c19_260 = arith.constant 19 : index
    %c0_261 = arith.constant 0 : index
    %c0_262 = arith.constant 0 : index
    %321 = vector.load %arg6[%c19_260, %c0_261, %c0_262] : memref<27x8x256xf32, #tpu.memory_space<vmem>>, vector<1x8x256xf32>
    %322 = vector.shape_cast %321 : vector<1x8x256xf32> to vector<8x256xf32>
    %323 = arith.mulf %320, %322 : vector<8x256xf32>
    %c199_i32_263 = arith.constant 199 : i32
    %324 = tpu.dynamic_rotate %245 by %c199_i32_263 dim 1 : vector<8x256xf32>, i32 -> vector<8x256xf32>
    %c20_264 = arith.constant 20 : index
    %c0_265 = arith.constant 0 : index
    %c0_266 = arith.constant 0 : index
    %325 = vector.load %arg6[%c20_264, %c0_265, %c0_266] : memref<27x8x256xf32, #tpu.memory_space<vmem>>, vector<1x8x256xf32>
    %326 = vector.shape_cast %325 : vector<1x8x256xf32> to vector<8x256xf32>
    %327 = arith.mulf %324, %326 : vector<8x256xf32>
    %c193_i32_267 = arith.constant 193 : i32
    %328 = tpu.dynamic_rotate %245 by %c193_i32_267 dim 1 : vector<8x256xf32>, i32 -> vector<8x256xf32>
    %c21_268 = arith.constant 21 : index
    %c0_269 = arith.constant 0 : index
    %c0_270 = arith.constant 0 : index
    %329 = vector.load %arg6[%c21_268, %c0_269, %c0_270] : memref<27x8x256xf32, #tpu.memory_space<vmem>>, vector<1x8x256xf32>
    %330 = vector.shape_cast %329 : vector<1x8x256xf32> to vector<8x256xf32>
    %331 = arith.mulf %328, %330 : vector<8x256xf32>
    %c192_i32_271 = arith.constant 192 : i32
    %332 = tpu.dynamic_rotate %245 by %c192_i32_271 dim 1 : vector<8x256xf32>, i32 -> vector<8x256xf32>
    %c22_272 = arith.constant 22 : index
    %c0_273 = arith.constant 0 : index
    %c0_274 = arith.constant 0 : index
    %333 = vector.load %arg6[%c22_272, %c0_273, %c0_274] : memref<27x8x256xf32, #tpu.memory_space<vmem>>, vector<1x8x256xf32>
    %334 = vector.shape_cast %333 : vector<1x8x256xf32> to vector<8x256xf32>
    %335 = arith.mulf %332, %334 : vector<8x256xf32>
    %c191_i32_275 = arith.constant 191 : i32
    %336 = tpu.dynamic_rotate %245 by %c191_i32_275 dim 1 : vector<8x256xf32>, i32 -> vector<8x256xf32>
    %c23_276 = arith.constant 23 : index
    %c0_277 = arith.constant 0 : index
    %c0_278 = arith.constant 0 : index
    %337 = vector.load %arg6[%c23_276, %c0_277, %c0_278] : memref<27x8x256xf32, #tpu.memory_space<vmem>>, vector<1x8x256xf32>
    %338 = vector.shape_cast %337 : vector<1x8x256xf32> to vector<8x256xf32>
    %339 = arith.mulf %336, %338 : vector<8x256xf32>
    %c185_i32_279 = arith.constant 185 : i32
    %340 = tpu.dynamic_rotate %245 by %c185_i32_279 dim 1 : vector<8x256xf32>, i32 -> vector<8x256xf32>
    %c24_280 = arith.constant 24 : index
    %c0_281 = arith.constant 0 : index
    %c0_282 = arith.constant 0 : index
    %341 = vector.load %arg6[%c24_280, %c0_281, %c0_282] : memref<27x8x256xf32, #tpu.memory_space<vmem>>, vector<1x8x256xf32>
    %342 = vector.shape_cast %341 : vector<1x8x256xf32> to vector<8x256xf32>
    %343 = arith.mulf %340, %342 : vector<8x256xf32>
    %c184_i32_283 = arith.constant 184 : i32
    %344 = tpu.dynamic_rotate %245 by %c184_i32_283 dim 1 : vector<8x256xf32>, i32 -> vector<8x256xf32>
    %c25_284 = arith.constant 25 : index
    %c0_285 = arith.constant 0 : index
    %c0_286 = arith.constant 0 : index
    %345 = vector.load %arg6[%c25_284, %c0_285, %c0_286] : memref<27x8x256xf32, #tpu.memory_space<vmem>>, vector<1x8x256xf32>
    %346 = vector.shape_cast %345 : vector<1x8x256xf32> to vector<8x256xf32>
    %347 = arith.mulf %344, %346 : vector<8x256xf32>
    %c183_i32_287 = arith.constant 183 : i32
    %348 = tpu.dynamic_rotate %245 by %c183_i32_287 dim 1 : vector<8x256xf32>, i32 -> vector<8x256xf32>
    %c26_288 = arith.constant 26 : index
    %c0_289 = arith.constant 0 : index
    %c0_290 = arith.constant 0 : index
    %349 = vector.load %arg6[%c26_288, %c0_289, %c0_290] : memref<27x8x256xf32, #tpu.memory_space<vmem>>, vector<1x8x256xf32>
    %350 = vector.shape_cast %349 : vector<1x8x256xf32> to vector<8x256xf32>
    %351 = arith.mulf %348, %350 : vector<8x256xf32>
    %352 = tpu.concatenate %251, %255, %259, %263, %267, %271, %275, %279, %283, %287, %291, %295, %299, %245, %303, %307 in 0 : vector<8x256xf32>, vector<8x256xf32>, vector<8x256xf32>, vector<8x256xf32>, vector<8x256xf32>, vector<8x256xf32>, vector<8x256xf32>, vector<8x256xf32>, vector<8x256xf32>, vector<8x256xf32>, vector<8x256xf32>, vector<8x256xf32>, vector<8x256xf32>, vector<8x256xf32>, vector<8x256xf32>, vector<8x256xf32> -> vector<128x256xf32>
    %353 = tpu.concatenate %311, %315, %319, %323, %327, %331, %335, %339, %343, %347, %351, %0 in 0 : vector<8x256xf32>, vector<8x256xf32>, vector<8x256xf32>, vector<8x256xf32>, vector<8x256xf32>, vector<8x256xf32>, vector<8x256xf32>, vector<8x256xf32>, vector<8x256xf32>, vector<8x256xf32>, vector<8x256xf32>, vector<40x256xf32> -> vector<128x256xf32>
    %354 = tpu.concatenate %352, %353 in 0 : vector<128x256xf32>, vector<128x256xf32> -> vector<256x256xf32>
    %cst_291 = arith.constant dense<0.000000e+00> : vector<8x256xf32>
    %355 = tpu.matmul %247, %354, %cst_291 {dimension_numbers = #tpu.dot_dimension_numbers<[1], [0], [0], [1], [0, 0, 1, 1], [], []>} : vector<8x256xf32>, vector<256x256xf32>, vector<8x256xf32> -> vector<8x256xf32>
    %c3_292 = arith.constant 3 : index
    %c0_293 = arith.constant 0 : index
    %c0_294 = arith.constant 0 : index
    %356 = vector.load %arg5[%c3_292, %c0_293, %c0_294] : memref<9x8x256xf32, #tpu.memory_space<vmem>>, vector<1x8x256xf32>
    %357 = vector.shape_cast %356 : vector<1x8x256xf32> to vector<8x256xf32>
    %358 = arith.addf %355, %357 : vector<8x256xf32>
    %cst_295 = arith.constant 0.000000e+00 : f32
    %359 = vector.broadcast %cst_295 : f32 to vector<8x256xf32>
    %360 = arith.cmpf oge, %358, %359 : vector<8x256xf32>
    %cst_296 = arith.constant 0.00999999977 : f32
    %361 = vector.broadcast %cst_296 : f32 to vector<8x256xf32>
    %362 = arith.mulf %361, %358 : vector<8x256xf32>
    %363 = arith.select %360, %358, %362 : vector<8x256xi1>, vector<8x256xf32>
    %c1_297 = arith.constant 1 : index
    %c0_298 = arith.constant 0 : index
    %c0_299 = arith.constant 0 : index
    %364 = vector.load %arg4[%c1_297, %c0_298, %c0_299] : memref<3x8x8xf32, #tpu.memory_space<vmem>>, vector<1x8x8xf32>
    %365 = vector.shape_cast %364 : vector<1x8x8xf32> to vector<8x8xf32>
    %cst_300 = arith.constant dense<0.000000e+00> : vector<8x256xf32>
    %366 = tpu.matmul %365, %363, %cst_300 {dimension_numbers = #tpu.dot_dimension_numbers<[1], [0], [0], [1], [0, 0, 1, 1], [], []>} : vector<8x8xf32>, vector<8x256xf32>, vector<8x256xf32> -> vector<8x256xf32>
    %c4_301 = arith.constant 4 : index
    %c0_302 = arith.constant 0 : index
    %c0_303 = arith.constant 0 : index
    %367 = vector.load %arg5[%c4_301, %c0_302, %c0_303] : memref<9x8x256xf32, #tpu.memory_space<vmem>>, vector<1x8x256xf32>
    %368 = vector.shape_cast %367 : vector<1x8x256xf32> to vector<8x256xf32>
    %369 = arith.addf %366, %368 : vector<8x256xf32>
    %cst_304 = arith.constant 0.000000e+00 : f32
    %370 = vector.broadcast %cst_304 : f32 to vector<8x256xf32>
    %371 = arith.cmpf oge, %369, %370 : vector<8x256xf32>
    %cst_305 = arith.constant 0.00999999977 : f32
    %372 = vector.broadcast %cst_305 : f32 to vector<8x256xf32>
    %373 = arith.mulf %372, %369 : vector<8x256xf32>
    %374 = arith.select %371, %369, %373 : vector<8x256xi1>, vector<8x256xf32>
    %c1_306 = arith.constant 1 : index
    %c0_307 = arith.constant 0 : index
    %c0_308 = arith.constant 0 : index
    %375 = vector.load %arg3[%c1_306, %c0_307, %c0_308] : memref<3x8x256xf32, #tpu.memory_space<vmem>>, vector<1x8x256xf32>
    %376 = vector.shape_cast %375 : vector<1x8x256xf32> to vector<8x256xf32>
    %c73_i32_309 = arith.constant 73 : i32
    %377 = tpu.dynamic_rotate %374 by %c73_i32_309 dim 1 : vector<8x256xf32>, i32 -> vector<8x256xf32>
    %c0_310 = arith.constant 0 : index
    %c0_311 = arith.constant 0 : index
    %c0_312 = arith.constant 0 : index
    %378 = vector.load %arg6[%c0_310, %c0_311, %c0_312] : memref<27x8x256xf32, #tpu.memory_space<vmem>>, vector<1x8x256xf32>
    %379 = vector.shape_cast %378 : vector<1x8x256xf32> to vector<8x256xf32>
    %380 = arith.mulf %377, %379 : vector<8x256xf32>
    %c72_i32_313 = arith.constant 72 : i32
    %381 = tpu.dynamic_rotate %374 by %c72_i32_313 dim 1 : vector<8x256xf32>, i32 -> vector<8x256xf32>
    %c1_314 = arith.constant 1 : index
    %c0_315 = arith.constant 0 : index
    %c0_316 = arith.constant 0 : index
    %382 = vector.load %arg6[%c1_314, %c0_315, %c0_316] : memref<27x8x256xf32, #tpu.memory_space<vmem>>, vector<1x8x256xf32>
    %383 = vector.shape_cast %382 : vector<1x8x256xf32> to vector<8x256xf32>
    %384 = arith.mulf %381, %383 : vector<8x256xf32>
    %c71_i32_317 = arith.constant 71 : i32
    %385 = tpu.dynamic_rotate %374 by %c71_i32_317 dim 1 : vector<8x256xf32>, i32 -> vector<8x256xf32>
    %c2_318 = arith.constant 2 : index
    %c0_319 = arith.constant 0 : index
    %c0_320 = arith.constant 0 : index
    %386 = vector.load %arg6[%c2_318, %c0_319, %c0_320] : memref<27x8x256xf32, #tpu.memory_space<vmem>>, vector<1x8x256xf32>
    %387 = vector.shape_cast %386 : vector<1x8x256xf32> to vector<8x256xf32>
    %388 = arith.mulf %385, %387 : vector<8x256xf32>
    %c65_i32_321 = arith.constant 65 : i32
    %389 = tpu.dynamic_rotate %374 by %c65_i32_321 dim 1 : vector<8x256xf32>, i32 -> vector<8x256xf32>
    %c3_322 = arith.constant 3 : index
    %c0_323 = arith.constant 0 : index
    %c0_324 = arith.constant 0 : index
    %390 = vector.load %arg6[%c3_322, %c0_323, %c0_324] : memref<27x8x256xf32, #tpu.memory_space<vmem>>, vector<1x8x256xf32>
    %391 = vector.shape_cast %390 : vector<1x8x256xf32> to vector<8x256xf32>
    %392 = arith.mulf %389, %391 : vector<8x256xf32>
    %c64_i32_325 = arith.constant 64 : i32
    %393 = tpu.dynamic_rotate %374 by %c64_i32_325 dim 1 : vector<8x256xf32>, i32 -> vector<8x256xf32>
    %c4_326 = arith.constant 4 : index
    %c0_327 = arith.constant 0 : index
    %c0_328 = arith.constant 0 : index
    %394 = vector.load %arg6[%c4_326, %c0_327, %c0_328] : memref<27x8x256xf32, #tpu.memory_space<vmem>>, vector<1x8x256xf32>
    %395 = vector.shape_cast %394 : vector<1x8x256xf32> to vector<8x256xf32>
    %396 = arith.mulf %393, %395 : vector<8x256xf32>
    %c63_i32_329 = arith.constant 63 : i32
    %397 = tpu.dynamic_rotate %374 by %c63_i32_329 dim 1 : vector<8x256xf32>, i32 -> vector<8x256xf32>
    %c5_330 = arith.constant 5 : index
    %c0_331 = arith.constant 0 : index
    %c0_332 = arith.constant 0 : index
    %398 = vector.load %arg6[%c5_330, %c0_331, %c0_332] : memref<27x8x256xf32, #tpu.memory_space<vmem>>, vector<1x8x256xf32>
    %399 = vector.shape_cast %398 : vector<1x8x256xf32> to vector<8x256xf32>
    %400 = arith.mulf %397, %399 : vector<8x256xf32>
    %c57_i32_333 = arith.constant 57 : i32
    %401 = tpu.dynamic_rotate %374 by %c57_i32_333 dim 1 : vector<8x256xf32>, i32 -> vector<8x256xf32>
    %c6_334 = arith.constant 6 : index
    %c0_335 = arith.constant 0 : index
    %c0_336 = arith.constant 0 : index
    %402 = vector.load %arg6[%c6_334, %c0_335, %c0_336] : memref<27x8x256xf32, #tpu.memory_space<vmem>>, vector<1x8x256xf32>
    %403 = vector.shape_cast %402 : vector<1x8x256xf32> to vector<8x256xf32>
    %404 = arith.mulf %401, %403 : vector<8x256xf32>
    %c56_i32_337 = arith.constant 56 : i32
    %405 = tpu.dynamic_rotate %374 by %c56_i32_337 dim 1 : vector<8x256xf32>, i32 -> vector<8x256xf32>
    %c7_338 = arith.constant 7 : index
    %c0_339 = arith.constant 0 : index
    %c0_340 = arith.constant 0 : index
    %406 = vector.load %arg6[%c7_338, %c0_339, %c0_340] : memref<27x8x256xf32, #tpu.memory_space<vmem>>, vector<1x8x256xf32>
    %407 = vector.shape_cast %406 : vector<1x8x256xf32> to vector<8x256xf32>
    %408 = arith.mulf %405, %407 : vector<8x256xf32>
    %c55_i32_341 = arith.constant 55 : i32
    %409 = tpu.dynamic_rotate %374 by %c55_i32_341 dim 1 : vector<8x256xf32>, i32 -> vector<8x256xf32>
    %c8_342 = arith.constant 8 : index
    %c0_343 = arith.constant 0 : index
    %c0_344 = arith.constant 0 : index
    %410 = vector.load %arg6[%c8_342, %c0_343, %c0_344] : memref<27x8x256xf32, #tpu.memory_space<vmem>>, vector<1x8x256xf32>
    %411 = vector.shape_cast %410 : vector<1x8x256xf32> to vector<8x256xf32>
    %412 = arith.mulf %409, %411 : vector<8x256xf32>
    %c9_i32_345 = arith.constant 9 : i32
    %413 = tpu.dynamic_rotate %374 by %c9_i32_345 dim 1 : vector<8x256xf32>, i32 -> vector<8x256xf32>
    %c9_346 = arith.constant 9 : index
    %c0_347 = arith.constant 0 : index
    %c0_348 = arith.constant 0 : index
    %414 = vector.load %arg6[%c9_346, %c0_347, %c0_348] : memref<27x8x256xf32, #tpu.memory_space<vmem>>, vector<1x8x256xf32>
    %415 = vector.shape_cast %414 : vector<1x8x256xf32> to vector<8x256xf32>
    %416 = arith.mulf %413, %415 : vector<8x256xf32>
    %c8_i32_349 = arith.constant 8 : i32
    %417 = tpu.dynamic_rotate %374 by %c8_i32_349 dim 1 : vector<8x256xf32>, i32 -> vector<8x256xf32>
    %c10_350 = arith.constant 10 : index
    %c0_351 = arith.constant 0 : index
    %c0_352 = arith.constant 0 : index
    %418 = vector.load %arg6[%c10_350, %c0_351, %c0_352] : memref<27x8x256xf32, #tpu.memory_space<vmem>>, vector<1x8x256xf32>
    %419 = vector.shape_cast %418 : vector<1x8x256xf32> to vector<8x256xf32>
    %420 = arith.mulf %417, %419 : vector<8x256xf32>
    %c7_i32_353 = arith.constant 7 : i32
    %421 = tpu.dynamic_rotate %374 by %c7_i32_353 dim 1 : vector<8x256xf32>, i32 -> vector<8x256xf32>
    %c11_354 = arith.constant 11 : index
    %c0_355 = arith.constant 0 : index
    %c0_356 = arith.constant 0 : index
    %422 = vector.load %arg6[%c11_354, %c0_355, %c0_356] : memref<27x8x256xf32, #tpu.memory_space<vmem>>, vector<1x8x256xf32>
    %423 = vector.shape_cast %422 : vector<1x8x256xf32> to vector<8x256xf32>
    %424 = arith.mulf %421, %423 : vector<8x256xf32>
    %c1_i32_357 = arith.constant 1 : i32
    %425 = tpu.dynamic_rotate %374 by %c1_i32_357 dim 1 : vector<8x256xf32>, i32 -> vector<8x256xf32>
    %c12_358 = arith.constant 12 : index
    %c0_359 = arith.constant 0 : index
    %c0_360 = arith.constant 0 : index
    %426 = vector.load %arg6[%c12_358, %c0_359, %c0_360] : memref<27x8x256xf32, #tpu.memory_space<vmem>>, vector<1x8x256xf32>
    %427 = vector.shape_cast %426 : vector<1x8x256xf32> to vector<8x256xf32>
    %428 = arith.mulf %425, %427 : vector<8x256xf32>
    %c255_i32_361 = arith.constant 255 : i32
    %429 = tpu.dynamic_rotate %374 by %c255_i32_361 dim 1 : vector<8x256xf32>, i32 -> vector<8x256xf32>
    %c14_362 = arith.constant 14 : index
    %c0_363 = arith.constant 0 : index
    %c0_364 = arith.constant 0 : index
    %430 = vector.load %arg6[%c14_362, %c0_363, %c0_364] : memref<27x8x256xf32, #tpu.memory_space<vmem>>, vector<1x8x256xf32>
    %431 = vector.shape_cast %430 : vector<1x8x256xf32> to vector<8x256xf32>
    %432 = arith.mulf %429, %431 : vector<8x256xf32>
    %c249_i32_365 = arith.constant 249 : i32
    %433 = tpu.dynamic_rotate %374 by %c249_i32_365 dim 1 : vector<8x256xf32>, i32 -> vector<8x256xf32>
    %c15_366 = arith.constant 15 : index
    %c0_367 = arith.constant 0 : index
    %c0_368 = arith.constant 0 : index
    %434 = vector.load %arg6[%c15_366, %c0_367, %c0_368] : memref<27x8x256xf32, #tpu.memory_space<vmem>>, vector<1x8x256xf32>
    %435 = vector.shape_cast %434 : vector<1x8x256xf32> to vector<8x256xf32>
    %436 = arith.mulf %433, %435 : vector<8x256xf32>
    %c248_i32_369 = arith.constant 248 : i32
    %437 = tpu.dynamic_rotate %374 by %c248_i32_369 dim 1 : vector<8x256xf32>, i32 -> vector<8x256xf32>
    %c16_370 = arith.constant 16 : index
    %c0_371 = arith.constant 0 : index
    %c0_372 = arith.constant 0 : index
    %438 = vector.load %arg6[%c16_370, %c0_371, %c0_372] : memref<27x8x256xf32, #tpu.memory_space<vmem>>, vector<1x8x256xf32>
    %439 = vector.shape_cast %438 : vector<1x8x256xf32> to vector<8x256xf32>
    %440 = arith.mulf %437, %439 : vector<8x256xf32>
    %c247_i32_373 = arith.constant 247 : i32
    %441 = tpu.dynamic_rotate %374 by %c247_i32_373 dim 1 : vector<8x256xf32>, i32 -> vector<8x256xf32>
    %c17_374 = arith.constant 17 : index
    %c0_375 = arith.constant 0 : index
    %c0_376 = arith.constant 0 : index
    %442 = vector.load %arg6[%c17_374, %c0_375, %c0_376] : memref<27x8x256xf32, #tpu.memory_space<vmem>>, vector<1x8x256xf32>
    %443 = vector.shape_cast %442 : vector<1x8x256xf32> to vector<8x256xf32>
    %444 = arith.mulf %441, %443 : vector<8x256xf32>
    %c201_i32_377 = arith.constant 201 : i32
    %445 = tpu.dynamic_rotate %374 by %c201_i32_377 dim 1 : vector<8x256xf32>, i32 -> vector<8x256xf32>
    %c18_378 = arith.constant 18 : index
    %c0_379 = arith.constant 0 : index
    %c0_380 = arith.constant 0 : index
    %446 = vector.load %arg6[%c18_378, %c0_379, %c0_380] : memref<27x8x256xf32, #tpu.memory_space<vmem>>, vector<1x8x256xf32>
    %447 = vector.shape_cast %446 : vector<1x8x256xf32> to vector<8x256xf32>
    %448 = arith.mulf %445, %447 : vector<8x256xf32>
    %c200_i32_381 = arith.constant 200 : i32
    %449 = tpu.dynamic_rotate %374 by %c200_i32_381 dim 1 : vector<8x256xf32>, i32 -> vector<8x256xf32>
    %c19_382 = arith.constant 19 : index
    %c0_383 = arith.constant 0 : index
    %c0_384 = arith.constant 0 : index
    %450 = vector.load %arg6[%c19_382, %c0_383, %c0_384] : memref<27x8x256xf32, #tpu.memory_space<vmem>>, vector<1x8x256xf32>
    %451 = vector.shape_cast %450 : vector<1x8x256xf32> to vector<8x256xf32>
    %452 = arith.mulf %449, %451 : vector<8x256xf32>
    %c199_i32_385 = arith.constant 199 : i32
    %453 = tpu.dynamic_rotate %374 by %c199_i32_385 dim 1 : vector<8x256xf32>, i32 -> vector<8x256xf32>
    %c20_386 = arith.constant 20 : index
    %c0_387 = arith.constant 0 : index
    %c0_388 = arith.constant 0 : index
    %454 = vector.load %arg6[%c20_386, %c0_387, %c0_388] : memref<27x8x256xf32, #tpu.memory_space<vmem>>, vector<1x8x256xf32>
    %455 = vector.shape_cast %454 : vector<1x8x256xf32> to vector<8x256xf32>
    %456 = arith.mulf %453, %455 : vector<8x256xf32>
    %c193_i32_389 = arith.constant 193 : i32
    %457 = tpu.dynamic_rotate %374 by %c193_i32_389 dim 1 : vector<8x256xf32>, i32 -> vector<8x256xf32>
    %c21_390 = arith.constant 21 : index
    %c0_391 = arith.constant 0 : index
    %c0_392 = arith.constant 0 : index
    %458 = vector.load %arg6[%c21_390, %c0_391, %c0_392] : memref<27x8x256xf32, #tpu.memory_space<vmem>>, vector<1x8x256xf32>
    %459 = vector.shape_cast %458 : vector<1x8x256xf32> to vector<8x256xf32>
    %460 = arith.mulf %457, %459 : vector<8x256xf32>
    %c192_i32_393 = arith.constant 192 : i32
    %461 = tpu.dynamic_rotate %374 by %c192_i32_393 dim 1 : vector<8x256xf32>, i32 -> vector<8x256xf32>
    %c22_394 = arith.constant 22 : index
    %c0_395 = arith.constant 0 : index
    %c0_396 = arith.constant 0 : index
    %462 = vector.load %arg6[%c22_394, %c0_395, %c0_396] : memref<27x8x256xf32, #tpu.memory_space<vmem>>, vector<1x8x256xf32>
    %463 = vector.shape_cast %462 : vector<1x8x256xf32> to vector<8x256xf32>
    %464 = arith.mulf %461, %463 : vector<8x256xf32>
    %c191_i32_397 = arith.constant 191 : i32
    %465 = tpu.dynamic_rotate %374 by %c191_i32_397 dim 1 : vector<8x256xf32>, i32 -> vector<8x256xf32>
    %c23_398 = arith.constant 23 : index
    %c0_399 = arith.constant 0 : index
    %c0_400 = arith.constant 0 : index
    %466 = vector.load %arg6[%c23_398, %c0_399, %c0_400] : memref<27x8x256xf32, #tpu.memory_space<vmem>>, vector<1x8x256xf32>
    %467 = vector.shape_cast %466 : vector<1x8x256xf32> to vector<8x256xf32>
    %468 = arith.mulf %465, %467 : vector<8x256xf32>
    %c185_i32_401 = arith.constant 185 : i32
    %469 = tpu.dynamic_rotate %374 by %c185_i32_401 dim 1 : vector<8x256xf32>, i32 -> vector<8x256xf32>
    %c24_402 = arith.constant 24 : index
    %c0_403 = arith.constant 0 : index
    %c0_404 = arith.constant 0 : index
    %470 = vector.load %arg6[%c24_402, %c0_403, %c0_404] : memref<27x8x256xf32, #tpu.memory_space<vmem>>, vector<1x8x256xf32>
    %471 = vector.shape_cast %470 : vector<1x8x256xf32> to vector<8x256xf32>
    %472 = arith.mulf %469, %471 : vector<8x256xf32>
    %c184_i32_405 = arith.constant 184 : i32
    %473 = tpu.dynamic_rotate %374 by %c184_i32_405 dim 1 : vector<8x256xf32>, i32 -> vector<8x256xf32>
    %c25_406 = arith.constant 25 : index
    %c0_407 = arith.constant 0 : index
    %c0_408 = arith.constant 0 : index
    %474 = vector.load %arg6[%c25_406, %c0_407, %c0_408] : memref<27x8x256xf32, #tpu.memory_space<vmem>>, vector<1x8x256xf32>
    %475 = vector.shape_cast %474 : vector<1x8x256xf32> to vector<8x256xf32>
    %476 = arith.mulf %473, %475 : vector<8x256xf32>
    %c183_i32_409 = arith.constant 183 : i32
    %477 = tpu.dynamic_rotate %374 by %c183_i32_409 dim 1 : vector<8x256xf32>, i32 -> vector<8x256xf32>
    %c26_410 = arith.constant 26 : index
    %c0_411 = arith.constant 0 : index
    %c0_412 = arith.constant 0 : index
    %478 = vector.load %arg6[%c26_410, %c0_411, %c0_412] : memref<27x8x256xf32, #tpu.memory_space<vmem>>, vector<1x8x256xf32>
    %479 = vector.shape_cast %478 : vector<1x8x256xf32> to vector<8x256xf32>
    %480 = arith.mulf %477, %479 : vector<8x256xf32>
    %481 = tpu.concatenate %380, %384, %388, %392, %396, %400, %404, %408, %412, %416, %420, %424, %428, %374, %432, %436 in 0 : vector<8x256xf32>, vector<8x256xf32>, vector<8x256xf32>, vector<8x256xf32>, vector<8x256xf32>, vector<8x256xf32>, vector<8x256xf32>, vector<8x256xf32>, vector<8x256xf32>, vector<8x256xf32>, vector<8x256xf32>, vector<8x256xf32>, vector<8x256xf32>, vector<8x256xf32>, vector<8x256xf32>, vector<8x256xf32> -> vector<128x256xf32>
    %482 = tpu.concatenate %440, %444, %448, %452, %456, %460, %464, %468, %472, %476, %480, %0 in 0 : vector<8x256xf32>, vector<8x256xf32>, vector<8x256xf32>, vector<8x256xf32>, vector<8x256xf32>, vector<8x256xf32>, vector<8x256xf32>, vector<8x256xf32>, vector<8x256xf32>, vector<8x256xf32>, vector<8x256xf32>, vector<40x256xf32> -> vector<128x256xf32>
    %483 = tpu.concatenate %481, %482 in 0 : vector<128x256xf32>, vector<128x256xf32> -> vector<256x256xf32>
    %cst_413 = arith.constant dense<0.000000e+00> : vector<8x256xf32>
    %484 = tpu.matmul %376, %483, %cst_413 {dimension_numbers = #tpu.dot_dimension_numbers<[1], [0], [0], [1], [0, 0, 1, 1], [], []>} : vector<8x256xf32>, vector<256x256xf32>, vector<8x256xf32> -> vector<8x256xf32>
    %c5_414 = arith.constant 5 : index
    %c0_415 = arith.constant 0 : index
    %c0_416 = arith.constant 0 : index
    %485 = vector.load %arg5[%c5_414, %c0_415, %c0_416] : memref<9x8x256xf32, #tpu.memory_space<vmem>>, vector<1x8x256xf32>
    %486 = vector.shape_cast %485 : vector<1x8x256xf32> to vector<8x256xf32>
    %487 = arith.addf %484, %486 : vector<8x256xf32>
    %488 = arith.addf %245, %487 : vector<8x256xf32>
    %c2_417 = arith.constant 2 : index
    %c0_418 = arith.constant 0 : index
    %c0_419 = arith.constant 0 : index
    %489 = vector.load %arg2[%c2_417, %c0_418, %c0_419] : memref<3x8x256xf32, #tpu.memory_space<vmem>>, vector<1x8x256xf32>
    %490 = vector.shape_cast %489 : vector<1x8x256xf32> to vector<8x256xf32>
    %c73_i32_420 = arith.constant 73 : i32
    %491 = tpu.dynamic_rotate %488 by %c73_i32_420 dim 1 : vector<8x256xf32>, i32 -> vector<8x256xf32>
    %c0_421 = arith.constant 0 : index
    %c0_422 = arith.constant 0 : index
    %c0_423 = arith.constant 0 : index
    %492 = vector.load %arg6[%c0_421, %c0_422, %c0_423] : memref<27x8x256xf32, #tpu.memory_space<vmem>>, vector<1x8x256xf32>
    %493 = vector.shape_cast %492 : vector<1x8x256xf32> to vector<8x256xf32>
    %494 = arith.mulf %491, %493 : vector<8x256xf32>
    %c72_i32_424 = arith.constant 72 : i32
    %495 = tpu.dynamic_rotate %488 by %c72_i32_424 dim 1 : vector<8x256xf32>, i32 -> vector<8x256xf32>
    %c1_425 = arith.constant 1 : index
    %c0_426 = arith.constant 0 : index
    %c0_427 = arith.constant 0 : index
    %496 = vector.load %arg6[%c1_425, %c0_426, %c0_427] : memref<27x8x256xf32, #tpu.memory_space<vmem>>, vector<1x8x256xf32>
    %497 = vector.shape_cast %496 : vector<1x8x256xf32> to vector<8x256xf32>
    %498 = arith.mulf %495, %497 : vector<8x256xf32>
    %c71_i32_428 = arith.constant 71 : i32
    %499 = tpu.dynamic_rotate %488 by %c71_i32_428 dim 1 : vector<8x256xf32>, i32 -> vector<8x256xf32>
    %c2_429 = arith.constant 2 : index
    %c0_430 = arith.constant 0 : index
    %c0_431 = arith.constant 0 : index
    %500 = vector.load %arg6[%c2_429, %c0_430, %c0_431] : memref<27x8x256xf32, #tpu.memory_space<vmem>>, vector<1x8x256xf32>
    %501 = vector.shape_cast %500 : vector<1x8x256xf32> to vector<8x256xf32>
    %502 = arith.mulf %499, %501 : vector<8x256xf32>
    %c65_i32_432 = arith.constant 65 : i32
    %503 = tpu.dynamic_rotate %488 by %c65_i32_432 dim 1 : vector<8x256xf32>, i32 -> vector<8x256xf32>
    %c3_433 = arith.constant 3 : index
    %c0_434 = arith.constant 0 : index
    %c0_435 = arith.constant 0 : index
    %504 = vector.load %arg6[%c3_433, %c0_434, %c0_435] : memref<27x8x256xf32, #tpu.memory_space<vmem>>, vector<1x8x256xf32>
    %505 = vector.shape_cast %504 : vector<1x8x256xf32> to vector<8x256xf32>
    %506 = arith.mulf %503, %505 : vector<8x256xf32>
    %c64_i32_436 = arith.constant 64 : i32
    %507 = tpu.dynamic_rotate %488 by %c64_i32_436 dim 1 : vector<8x256xf32>, i32 -> vector<8x256xf32>
    %c4_437 = arith.constant 4 : index
    %c0_438 = arith.constant 0 : index
    %c0_439 = arith.constant 0 : index
    %508 = vector.load %arg6[%c4_437, %c0_438, %c0_439] : memref<27x8x256xf32, #tpu.memory_space<vmem>>, vector<1x8x256xf32>
    %509 = vector.shape_cast %508 : vector<1x8x256xf32> to vector<8x256xf32>
    %510 = arith.mulf %507, %509 : vector<8x256xf32>
    %c63_i32_440 = arith.constant 63 : i32
    %511 = tpu.dynamic_rotate %488 by %c63_i32_440 dim 1 : vector<8x256xf32>, i32 -> vector<8x256xf32>
    %c5_441 = arith.constant 5 : index
    %c0_442 = arith.constant 0 : index
    %c0_443 = arith.constant 0 : index
    %512 = vector.load %arg6[%c5_441, %c0_442, %c0_443] : memref<27x8x256xf32, #tpu.memory_space<vmem>>, vector<1x8x256xf32>
    %513 = vector.shape_cast %512 : vector<1x8x256xf32> to vector<8x256xf32>
    %514 = arith.mulf %511, %513 : vector<8x256xf32>
    %c57_i32_444 = arith.constant 57 : i32
    %515 = tpu.dynamic_rotate %488 by %c57_i32_444 dim 1 : vector<8x256xf32>, i32 -> vector<8x256xf32>
    %c6_445 = arith.constant 6 : index
    %c0_446 = arith.constant 0 : index
    %c0_447 = arith.constant 0 : index
    %516 = vector.load %arg6[%c6_445, %c0_446, %c0_447] : memref<27x8x256xf32, #tpu.memory_space<vmem>>, vector<1x8x256xf32>
    %517 = vector.shape_cast %516 : vector<1x8x256xf32> to vector<8x256xf32>
    %518 = arith.mulf %515, %517 : vector<8x256xf32>
    %c56_i32_448 = arith.constant 56 : i32
    %519 = tpu.dynamic_rotate %488 by %c56_i32_448 dim 1 : vector<8x256xf32>, i32 -> vector<8x256xf32>
    %c7_449 = arith.constant 7 : index
    %c0_450 = arith.constant 0 : index
    %c0_451 = arith.constant 0 : index
    %520 = vector.load %arg6[%c7_449, %c0_450, %c0_451] : memref<27x8x256xf32, #tpu.memory_space<vmem>>, vector<1x8x256xf32>
    %521 = vector.shape_cast %520 : vector<1x8x256xf32> to vector<8x256xf32>
    %522 = arith.mulf %519, %521 : vector<8x256xf32>
    %c55_i32_452 = arith.constant 55 : i32
    %523 = tpu.dynamic_rotate %488 by %c55_i32_452 dim 1 : vector<8x256xf32>, i32 -> vector<8x256xf32>
    %c8_453 = arith.constant 8 : index
    %c0_454 = arith.constant 0 : index
    %c0_455 = arith.constant 0 : index
    %524 = vector.load %arg6[%c8_453, %c0_454, %c0_455] : memref<27x8x256xf32, #tpu.memory_space<vmem>>, vector<1x8x256xf32>
    %525 = vector.shape_cast %524 : vector<1x8x256xf32> to vector<8x256xf32>
    %526 = arith.mulf %523, %525 : vector<8x256xf32>
    %c9_i32_456 = arith.constant 9 : i32
    %527 = tpu.dynamic_rotate %488 by %c9_i32_456 dim 1 : vector<8x256xf32>, i32 -> vector<8x256xf32>
    %c9_457 = arith.constant 9 : index
    %c0_458 = arith.constant 0 : index
    %c0_459 = arith.constant 0 : index
    %528 = vector.load %arg6[%c9_457, %c0_458, %c0_459] : memref<27x8x256xf32, #tpu.memory_space<vmem>>, vector<1x8x256xf32>
    %529 = vector.shape_cast %528 : vector<1x8x256xf32> to vector<8x256xf32>
    %530 = arith.mulf %527, %529 : vector<8x256xf32>
    %c8_i32_460 = arith.constant 8 : i32
    %531 = tpu.dynamic_rotate %488 by %c8_i32_460 dim 1 : vector<8x256xf32>, i32 -> vector<8x256xf32>
    %c10_461 = arith.constant 10 : index
    %c0_462 = arith.constant 0 : index
    %c0_463 = arith.constant 0 : index
    %532 = vector.load %arg6[%c10_461, %c0_462, %c0_463] : memref<27x8x256xf32, #tpu.memory_space<vmem>>, vector<1x8x256xf32>
    %533 = vector.shape_cast %532 : vector<1x8x256xf32> to vector<8x256xf32>
    %534 = arith.mulf %531, %533 : vector<8x256xf32>
    %c7_i32_464 = arith.constant 7 : i32
    %535 = tpu.dynamic_rotate %488 by %c7_i32_464 dim 1 : vector<8x256xf32>, i32 -> vector<8x256xf32>
    %c11_465 = arith.constant 11 : index
    %c0_466 = arith.constant 0 : index
    %c0_467 = arith.constant 0 : index
    %536 = vector.load %arg6[%c11_465, %c0_466, %c0_467] : memref<27x8x256xf32, #tpu.memory_space<vmem>>, vector<1x8x256xf32>
    %537 = vector.shape_cast %536 : vector<1x8x256xf32> to vector<8x256xf32>
    %538 = arith.mulf %535, %537 : vector<8x256xf32>
    %c1_i32_468 = arith.constant 1 : i32
    %539 = tpu.dynamic_rotate %488 by %c1_i32_468 dim 1 : vector<8x256xf32>, i32 -> vector<8x256xf32>
    %c12_469 = arith.constant 12 : index
    %c0_470 = arith.constant 0 : index
    %c0_471 = arith.constant 0 : index
    %540 = vector.load %arg6[%c12_469, %c0_470, %c0_471] : memref<27x8x256xf32, #tpu.memory_space<vmem>>, vector<1x8x256xf32>
    %541 = vector.shape_cast %540 : vector<1x8x256xf32> to vector<8x256xf32>
    %542 = arith.mulf %539, %541 : vector<8x256xf32>
    %c255_i32_472 = arith.constant 255 : i32
    %543 = tpu.dynamic_rotate %488 by %c255_i32_472 dim 1 : vector<8x256xf32>, i32 -> vector<8x256xf32>
    %c14_473 = arith.constant 14 : index
    %c0_474 = arith.constant 0 : index
    %c0_475 = arith.constant 0 : index
    %544 = vector.load %arg6[%c14_473, %c0_474, %c0_475] : memref<27x8x256xf32, #tpu.memory_space<vmem>>, vector<1x8x256xf32>
    %545 = vector.shape_cast %544 : vector<1x8x256xf32> to vector<8x256xf32>
    %546 = arith.mulf %543, %545 : vector<8x256xf32>
    %c249_i32_476 = arith.constant 249 : i32
    %547 = tpu.dynamic_rotate %488 by %c249_i32_476 dim 1 : vector<8x256xf32>, i32 -> vector<8x256xf32>
    %c15_477 = arith.constant 15 : index
    %c0_478 = arith.constant 0 : index
    %c0_479 = arith.constant 0 : index
    %548 = vector.load %arg6[%c15_477, %c0_478, %c0_479] : memref<27x8x256xf32, #tpu.memory_space<vmem>>, vector<1x8x256xf32>
    %549 = vector.shape_cast %548 : vector<1x8x256xf32> to vector<8x256xf32>
    %550 = arith.mulf %547, %549 : vector<8x256xf32>
    %c248_i32_480 = arith.constant 248 : i32
    %551 = tpu.dynamic_rotate %488 by %c248_i32_480 dim 1 : vector<8x256xf32>, i32 -> vector<8x256xf32>
    %c16_481 = arith.constant 16 : index
    %c0_482 = arith.constant 0 : index
    %c0_483 = arith.constant 0 : index
    %552 = vector.load %arg6[%c16_481, %c0_482, %c0_483] : memref<27x8x256xf32, #tpu.memory_space<vmem>>, vector<1x8x256xf32>
    %553 = vector.shape_cast %552 : vector<1x8x256xf32> to vector<8x256xf32>
    %554 = arith.mulf %551, %553 : vector<8x256xf32>
    %c247_i32_484 = arith.constant 247 : i32
    %555 = tpu.dynamic_rotate %488 by %c247_i32_484 dim 1 : vector<8x256xf32>, i32 -> vector<8x256xf32>
    %c17_485 = arith.constant 17 : index
    %c0_486 = arith.constant 0 : index
    %c0_487 = arith.constant 0 : index
    %556 = vector.load %arg6[%c17_485, %c0_486, %c0_487] : memref<27x8x256xf32, #tpu.memory_space<vmem>>, vector<1x8x256xf32>
    %557 = vector.shape_cast %556 : vector<1x8x256xf32> to vector<8x256xf32>
    %558 = arith.mulf %555, %557 : vector<8x256xf32>
    %c201_i32_488 = arith.constant 201 : i32
    %559 = tpu.dynamic_rotate %488 by %c201_i32_488 dim 1 : vector<8x256xf32>, i32 -> vector<8x256xf32>
    %c18_489 = arith.constant 18 : index
    %c0_490 = arith.constant 0 : index
    %c0_491 = arith.constant 0 : index
    %560 = vector.load %arg6[%c18_489, %c0_490, %c0_491] : memref<27x8x256xf32, #tpu.memory_space<vmem>>, vector<1x8x256xf32>
    %561 = vector.shape_cast %560 : vector<1x8x256xf32> to vector<8x256xf32>
    %562 = arith.mulf %559, %561 : vector<8x256xf32>
    %c200_i32_492 = arith.constant 200 : i32
    %563 = tpu.dynamic_rotate %488 by %c200_i32_492 dim 1 : vector<8x256xf32>, i32 -> vector<8x256xf32>
    %c19_493 = arith.constant 19 : index
    %c0_494 = arith.constant 0 : index
    %c0_495 = arith.constant 0 : index
    %564 = vector.load %arg6[%c19_493, %c0_494, %c0_495] : memref<27x8x256xf32, #tpu.memory_space<vmem>>, vector<1x8x256xf32>
    %565 = vector.shape_cast %564 : vector<1x8x256xf32> to vector<8x256xf32>
    %566 = arith.mulf %563, %565 : vector<8x256xf32>
    %c199_i32_496 = arith.constant 199 : i32
    %567 = tpu.dynamic_rotate %488 by %c199_i32_496 dim 1 : vector<8x256xf32>, i32 -> vector<8x256xf32>
    %c20_497 = arith.constant 20 : index
    %c0_498 = arith.constant 0 : index
    %c0_499 = arith.constant 0 : index
    %568 = vector.load %arg6[%c20_497, %c0_498, %c0_499] : memref<27x8x256xf32, #tpu.memory_space<vmem>>, vector<1x8x256xf32>
    %569 = vector.shape_cast %568 : vector<1x8x256xf32> to vector<8x256xf32>
    %570 = arith.mulf %567, %569 : vector<8x256xf32>
    %c193_i32_500 = arith.constant 193 : i32
    %571 = tpu.dynamic_rotate %488 by %c193_i32_500 dim 1 : vector<8x256xf32>, i32 -> vector<8x256xf32>
    %c21_501 = arith.constant 21 : index
    %c0_502 = arith.constant 0 : index
    %c0_503 = arith.constant 0 : index
    %572 = vector.load %arg6[%c21_501, %c0_502, %c0_503] : memref<27x8x256xf32, #tpu.memory_space<vmem>>, vector<1x8x256xf32>
    %573 = vector.shape_cast %572 : vector<1x8x256xf32> to vector<8x256xf32>
    %574 = arith.mulf %571, %573 : vector<8x256xf32>
    %c192_i32_504 = arith.constant 192 : i32
    %575 = tpu.dynamic_rotate %488 by %c192_i32_504 dim 1 : vector<8x256xf32>, i32 -> vector<8x256xf32>
    %c22_505 = arith.constant 22 : index
    %c0_506 = arith.constant 0 : index
    %c0_507 = arith.constant 0 : index
    %576 = vector.load %arg6[%c22_505, %c0_506, %c0_507] : memref<27x8x256xf32, #tpu.memory_space<vmem>>, vector<1x8x256xf32>
    %577 = vector.shape_cast %576 : vector<1x8x256xf32> to vector<8x256xf32>
    %578 = arith.mulf %575, %577 : vector<8x256xf32>
    %c191_i32_508 = arith.constant 191 : i32
    %579 = tpu.dynamic_rotate %488 by %c191_i32_508 dim 1 : vector<8x256xf32>, i32 -> vector<8x256xf32>
    %c23_509 = arith.constant 23 : index
    %c0_510 = arith.constant 0 : index
    %c0_511 = arith.constant 0 : index
    %580 = vector.load %arg6[%c23_509, %c0_510, %c0_511] : memref<27x8x256xf32, #tpu.memory_space<vmem>>, vector<1x8x256xf32>
    %581 = vector.shape_cast %580 : vector<1x8x256xf32> to vector<8x256xf32>
    %582 = arith.mulf %579, %581 : vector<8x256xf32>
    %c185_i32_512 = arith.constant 185 : i32
    %583 = tpu.dynamic_rotate %488 by %c185_i32_512 dim 1 : vector<8x256xf32>, i32 -> vector<8x256xf32>
    %c24_513 = arith.constant 24 : index
    %c0_514 = arith.constant 0 : index
    %c0_515 = arith.constant 0 : index
    %584 = vector.load %arg6[%c24_513, %c0_514, %c0_515] : memref<27x8x256xf32, #tpu.memory_space<vmem>>, vector<1x8x256xf32>
    %585 = vector.shape_cast %584 : vector<1x8x256xf32> to vector<8x256xf32>
    %586 = arith.mulf %583, %585 : vector<8x256xf32>
    %c184_i32_516 = arith.constant 184 : i32
    %587 = tpu.dynamic_rotate %488 by %c184_i32_516 dim 1 : vector<8x256xf32>, i32 -> vector<8x256xf32>
    %c25_517 = arith.constant 25 : index
    %c0_518 = arith.constant 0 : index
    %c0_519 = arith.constant 0 : index
    %588 = vector.load %arg6[%c25_517, %c0_518, %c0_519] : memref<27x8x256xf32, #tpu.memory_space<vmem>>, vector<1x8x256xf32>
    %589 = vector.shape_cast %588 : vector<1x8x256xf32> to vector<8x256xf32>
    %590 = arith.mulf %587, %589 : vector<8x256xf32>
    %c183_i32_520 = arith.constant 183 : i32
    %591 = tpu.dynamic_rotate %488 by %c183_i32_520 dim 1 : vector<8x256xf32>, i32 -> vector<8x256xf32>
    %c26_521 = arith.constant 26 : index
    %c0_522 = arith.constant 0 : index
    %c0_523 = arith.constant 0 : index
    %592 = vector.load %arg6[%c26_521, %c0_522, %c0_523] : memref<27x8x256xf32, #tpu.memory_space<vmem>>, vector<1x8x256xf32>
    %593 = vector.shape_cast %592 : vector<1x8x256xf32> to vector<8x256xf32>
    %594 = arith.mulf %591, %593 : vector<8x256xf32>
    %595 = tpu.concatenate %494, %498, %502, %506, %510, %514, %518, %522, %526, %530, %534, %538, %542, %488, %546, %550 in 0 : vector<8x256xf32>, vector<8x256xf32>, vector<8x256xf32>, vector<8x256xf32>, vector<8x256xf32>, vector<8x256xf32>, vector<8x256xf32>, vector<8x256xf32>, vector<8x256xf32>, vector<8x256xf32>, vector<8x256xf32>, vector<8x256xf32>, vector<8x256xf32>, vector<8x256xf32>, vector<8x256xf32>, vector<8x256xf32> -> vector<128x256xf32>
    %596 = tpu.concatenate %554, %558, %562, %566, %570, %574, %578, %582, %586, %590, %594, %0 in 0 : vector<8x256xf32>, vector<8x256xf32>, vector<8x256xf32>, vector<8x256xf32>, vector<8x256xf32>, vector<8x256xf32>, vector<8x256xf32>, vector<8x256xf32>, vector<8x256xf32>, vector<8x256xf32>, vector<8x256xf32>, vector<40x256xf32> -> vector<128x256xf32>
    %597 = tpu.concatenate %595, %596 in 0 : vector<128x256xf32>, vector<128x256xf32> -> vector<256x256xf32>
    %cst_524 = arith.constant dense<0.000000e+00> : vector<8x256xf32>
    %598 = tpu.matmul %490, %597, %cst_524 {dimension_numbers = #tpu.dot_dimension_numbers<[1], [0], [0], [1], [0, 0, 1, 1], [], []>} : vector<8x256xf32>, vector<256x256xf32>, vector<8x256xf32> -> vector<8x256xf32>
    %c6_525 = arith.constant 6 : index
    %c0_526 = arith.constant 0 : index
    %c0_527 = arith.constant 0 : index
    %599 = vector.load %arg5[%c6_525, %c0_526, %c0_527] : memref<9x8x256xf32, #tpu.memory_space<vmem>>, vector<1x8x256xf32>
    %600 = vector.shape_cast %599 : vector<1x8x256xf32> to vector<8x256xf32>
    %601 = arith.addf %598, %600 : vector<8x256xf32>
    %cst_528 = arith.constant 0.000000e+00 : f32
    %602 = vector.broadcast %cst_528 : f32 to vector<8x256xf32>
    %603 = arith.cmpf oge, %601, %602 : vector<8x256xf32>
    %cst_529 = arith.constant 0.00999999977 : f32
    %604 = vector.broadcast %cst_529 : f32 to vector<8x256xf32>
    %605 = arith.mulf %604, %601 : vector<8x256xf32>
    %606 = arith.select %603, %601, %605 : vector<8x256xi1>, vector<8x256xf32>
    %c2_530 = arith.constant 2 : index
    %c0_531 = arith.constant 0 : index
    %c0_532 = arith.constant 0 : index
    %607 = vector.load %arg4[%c2_530, %c0_531, %c0_532] : memref<3x8x8xf32, #tpu.memory_space<vmem>>, vector<1x8x8xf32>
    %608 = vector.shape_cast %607 : vector<1x8x8xf32> to vector<8x8xf32>
    %cst_533 = arith.constant dense<0.000000e+00> : vector<8x256xf32>
    %609 = tpu.matmul %608, %606, %cst_533 {dimension_numbers = #tpu.dot_dimension_numbers<[1], [0], [0], [1], [0, 0, 1, 1], [], []>} : vector<8x8xf32>, vector<8x256xf32>, vector<8x256xf32> -> vector<8x256xf32>
    %c7_534 = arith.constant 7 : index
    %c0_535 = arith.constant 0 : index
    %c0_536 = arith.constant 0 : index
    %610 = vector.load %arg5[%c7_534, %c0_535, %c0_536] : memref<9x8x256xf32, #tpu.memory_space<vmem>>, vector<1x8x256xf32>
    %611 = vector.shape_cast %610 : vector<1x8x256xf32> to vector<8x256xf32>
    %612 = arith.addf %609, %611 : vector<8x256xf32>
    %cst_537 = arith.constant 0.000000e+00 : f32
    %613 = vector.broadcast %cst_537 : f32 to vector<8x256xf32>
    %614 = arith.cmpf oge, %612, %613 : vector<8x256xf32>
    %cst_538 = arith.constant 0.00999999977 : f32
    %615 = vector.broadcast %cst_538 : f32 to vector<8x256xf32>
    %616 = arith.mulf %615, %612 : vector<8x256xf32>
    %617 = arith.select %614, %612, %616 : vector<8x256xi1>, vector<8x256xf32>
    %c2_539 = arith.constant 2 : index
    %c0_540 = arith.constant 0 : index
    %c0_541 = arith.constant 0 : index
    %618 = vector.load %arg3[%c2_539, %c0_540, %c0_541] : memref<3x8x256xf32, #tpu.memory_space<vmem>>, vector<1x8x256xf32>
    %619 = vector.shape_cast %618 : vector<1x8x256xf32> to vector<8x256xf32>
    %c73_i32_542 = arith.constant 73 : i32
    %620 = tpu.dynamic_rotate %617 by %c73_i32_542 dim 1 : vector<8x256xf32>, i32 -> vector<8x256xf32>
    %c0_543 = arith.constant 0 : index
    %c0_544 = arith.constant 0 : index
    %c0_545 = arith.constant 0 : index
    %621 = vector.load %arg6[%c0_543, %c0_544, %c0_545] : memref<27x8x256xf32, #tpu.memory_space<vmem>>, vector<1x8x256xf32>
    %622 = vector.shape_cast %621 : vector<1x8x256xf32> to vector<8x256xf32>
    %623 = arith.mulf %620, %622 : vector<8x256xf32>
    %c72_i32_546 = arith.constant 72 : i32
    %624 = tpu.dynamic_rotate %617 by %c72_i32_546 dim 1 : vector<8x256xf32>, i32 -> vector<8x256xf32>
    %c1_547 = arith.constant 1 : index
    %c0_548 = arith.constant 0 : index
    %c0_549 = arith.constant 0 : index
    %625 = vector.load %arg6[%c1_547, %c0_548, %c0_549] : memref<27x8x256xf32, #tpu.memory_space<vmem>>, vector<1x8x256xf32>
    %626 = vector.shape_cast %625 : vector<1x8x256xf32> to vector<8x256xf32>
    %627 = arith.mulf %624, %626 : vector<8x256xf32>
    %c71_i32_550 = arith.constant 71 : i32
    %628 = tpu.dynamic_rotate %617 by %c71_i32_550 dim 1 : vector<8x256xf32>, i32 -> vector<8x256xf32>
    %c2_551 = arith.constant 2 : index
    %c0_552 = arith.constant 0 : index
    %c0_553 = arith.constant 0 : index
    %629 = vector.load %arg6[%c2_551, %c0_552, %c0_553] : memref<27x8x256xf32, #tpu.memory_space<vmem>>, vector<1x8x256xf32>
    %630 = vector.shape_cast %629 : vector<1x8x256xf32> to vector<8x256xf32>
    %631 = arith.mulf %628, %630 : vector<8x256xf32>
    %c65_i32_554 = arith.constant 65 : i32
    %632 = tpu.dynamic_rotate %617 by %c65_i32_554 dim 1 : vector<8x256xf32>, i32 -> vector<8x256xf32>
    %c3_555 = arith.constant 3 : index
    %c0_556 = arith.constant 0 : index
    %c0_557 = arith.constant 0 : index
    %633 = vector.load %arg6[%c3_555, %c0_556, %c0_557] : memref<27x8x256xf32, #tpu.memory_space<vmem>>, vector<1x8x256xf32>
    %634 = vector.shape_cast %633 : vector<1x8x256xf32> to vector<8x256xf32>
    %635 = arith.mulf %632, %634 : vector<8x256xf32>
    %c64_i32_558 = arith.constant 64 : i32
    %636 = tpu.dynamic_rotate %617 by %c64_i32_558 dim 1 : vector<8x256xf32>, i32 -> vector<8x256xf32>
    %c4_559 = arith.constant 4 : index
    %c0_560 = arith.constant 0 : index
    %c0_561 = arith.constant 0 : index
    %637 = vector.load %arg6[%c4_559, %c0_560, %c0_561] : memref<27x8x256xf32, #tpu.memory_space<vmem>>, vector<1x8x256xf32>
    %638 = vector.shape_cast %637 : vector<1x8x256xf32> to vector<8x256xf32>
    %639 = arith.mulf %636, %638 : vector<8x256xf32>
    %c63_i32_562 = arith.constant 63 : i32
    %640 = tpu.dynamic_rotate %617 by %c63_i32_562 dim 1 : vector<8x256xf32>, i32 -> vector<8x256xf32>
    %c5_563 = arith.constant 5 : index
    %c0_564 = arith.constant 0 : index
    %c0_565 = arith.constant 0 : index
    %641 = vector.load %arg6[%c5_563, %c0_564, %c0_565] : memref<27x8x256xf32, #tpu.memory_space<vmem>>, vector<1x8x256xf32>
    %642 = vector.shape_cast %641 : vector<1x8x256xf32> to vector<8x256xf32>
    %643 = arith.mulf %640, %642 : vector<8x256xf32>
    %c57_i32_566 = arith.constant 57 : i32
    %644 = tpu.dynamic_rotate %617 by %c57_i32_566 dim 1 : vector<8x256xf32>, i32 -> vector<8x256xf32>
    %c6_567 = arith.constant 6 : index
    %c0_568 = arith.constant 0 : index
    %c0_569 = arith.constant 0 : index
    %645 = vector.load %arg6[%c6_567, %c0_568, %c0_569] : memref<27x8x256xf32, #tpu.memory_space<vmem>>, vector<1x8x256xf32>
    %646 = vector.shape_cast %645 : vector<1x8x256xf32> to vector<8x256xf32>
    %647 = arith.mulf %644, %646 : vector<8x256xf32>
    %c56_i32_570 = arith.constant 56 : i32
    %648 = tpu.dynamic_rotate %617 by %c56_i32_570 dim 1 : vector<8x256xf32>, i32 -> vector<8x256xf32>
    %c7_571 = arith.constant 7 : index
    %c0_572 = arith.constant 0 : index
    %c0_573 = arith.constant 0 : index
    %649 = vector.load %arg6[%c7_571, %c0_572, %c0_573] : memref<27x8x256xf32, #tpu.memory_space<vmem>>, vector<1x8x256xf32>
    %650 = vector.shape_cast %649 : vector<1x8x256xf32> to vector<8x256xf32>
    %651 = arith.mulf %648, %650 : vector<8x256xf32>
    %c55_i32_574 = arith.constant 55 : i32
    %652 = tpu.dynamic_rotate %617 by %c55_i32_574 dim 1 : vector<8x256xf32>, i32 -> vector<8x256xf32>
    %c8_575 = arith.constant 8 : index
    %c0_576 = arith.constant 0 : index
    %c0_577 = arith.constant 0 : index
    %653 = vector.load %arg6[%c8_575, %c0_576, %c0_577] : memref<27x8x256xf32, #tpu.memory_space<vmem>>, vector<1x8x256xf32>
    %654 = vector.shape_cast %653 : vector<1x8x256xf32> to vector<8x256xf32>
    %655 = arith.mulf %652, %654 : vector<8x256xf32>
    %c9_i32_578 = arith.constant 9 : i32
    %656 = tpu.dynamic_rotate %617 by %c9_i32_578 dim 1 : vector<8x256xf32>, i32 -> vector<8x256xf32>
    %c9_579 = arith.constant 9 : index
    %c0_580 = arith.constant 0 : index
    %c0_581 = arith.constant 0 : index
    %657 = vector.load %arg6[%c9_579, %c0_580, %c0_581] : memref<27x8x256xf32, #tpu.memory_space<vmem>>, vector<1x8x256xf32>
    %658 = vector.shape_cast %657 : vector<1x8x256xf32> to vector<8x256xf32>
    %659 = arith.mulf %656, %658 : vector<8x256xf32>
    %c8_i32_582 = arith.constant 8 : i32
    %660 = tpu.dynamic_rotate %617 by %c8_i32_582 dim 1 : vector<8x256xf32>, i32 -> vector<8x256xf32>
    %c10_583 = arith.constant 10 : index
    %c0_584 = arith.constant 0 : index
    %c0_585 = arith.constant 0 : index
    %661 = vector.load %arg6[%c10_583, %c0_584, %c0_585] : memref<27x8x256xf32, #tpu.memory_space<vmem>>, vector<1x8x256xf32>
    %662 = vector.shape_cast %661 : vector<1x8x256xf32> to vector<8x256xf32>
    %663 = arith.mulf %660, %662 : vector<8x256xf32>
    %c7_i32_586 = arith.constant 7 : i32
    %664 = tpu.dynamic_rotate %617 by %c7_i32_586 dim 1 : vector<8x256xf32>, i32 -> vector<8x256xf32>
    %c11_587 = arith.constant 11 : index
    %c0_588 = arith.constant 0 : index
    %c0_589 = arith.constant 0 : index
    %665 = vector.load %arg6[%c11_587, %c0_588, %c0_589] : memref<27x8x256xf32, #tpu.memory_space<vmem>>, vector<1x8x256xf32>
    %666 = vector.shape_cast %665 : vector<1x8x256xf32> to vector<8x256xf32>
    %667 = arith.mulf %664, %666 : vector<8x256xf32>
    %c1_i32_590 = arith.constant 1 : i32
    %668 = tpu.dynamic_rotate %617 by %c1_i32_590 dim 1 : vector<8x256xf32>, i32 -> vector<8x256xf32>
    %c12_591 = arith.constant 12 : index
    %c0_592 = arith.constant 0 : index
    %c0_593 = arith.constant 0 : index
    %669 = vector.load %arg6[%c12_591, %c0_592, %c0_593] : memref<27x8x256xf32, #tpu.memory_space<vmem>>, vector<1x8x256xf32>
    %670 = vector.shape_cast %669 : vector<1x8x256xf32> to vector<8x256xf32>
    %671 = arith.mulf %668, %670 : vector<8x256xf32>
    %c255_i32_594 = arith.constant 255 : i32
    %672 = tpu.dynamic_rotate %617 by %c255_i32_594 dim 1 : vector<8x256xf32>, i32 -> vector<8x256xf32>
    %c14_595 = arith.constant 14 : index
    %c0_596 = arith.constant 0 : index
    %c0_597 = arith.constant 0 : index
    %673 = vector.load %arg6[%c14_595, %c0_596, %c0_597] : memref<27x8x256xf32, #tpu.memory_space<vmem>>, vector<1x8x256xf32>
    %674 = vector.shape_cast %673 : vector<1x8x256xf32> to vector<8x256xf32>
    %675 = arith.mulf %672, %674 : vector<8x256xf32>
    %c249_i32_598 = arith.constant 249 : i32
    %676 = tpu.dynamic_rotate %617 by %c249_i32_598 dim 1 : vector<8x256xf32>, i32 -> vector<8x256xf32>
    %c15_599 = arith.constant 15 : index
    %c0_600 = arith.constant 0 : index
    %c0_601 = arith.constant 0 : index
    %677 = vector.load %arg6[%c15_599, %c0_600, %c0_601] : memref<27x8x256xf32, #tpu.memory_space<vmem>>, vector<1x8x256xf32>
    %678 = vector.shape_cast %677 : vector<1x8x256xf32> to vector<8x256xf32>
    %679 = arith.mulf %676, %678 : vector<8x256xf32>
    %c248_i32_602 = arith.constant 248 : i32
    %680 = tpu.dynamic_rotate %617 by %c248_i32_602 dim 1 : vector<8x256xf32>, i32 -> vector<8x256xf32>
    %c16_603 = arith.constant 16 : index
    %c0_604 = arith.constant 0 : index
    %c0_605 = arith.constant 0 : index
    %681 = vector.load %arg6[%c16_603, %c0_604, %c0_605] : memref<27x8x256xf32, #tpu.memory_space<vmem>>, vector<1x8x256xf32>
    %682 = vector.shape_cast %681 : vector<1x8x256xf32> to vector<8x256xf32>
    %683 = arith.mulf %680, %682 : vector<8x256xf32>
    %c247_i32_606 = arith.constant 247 : i32
    %684 = tpu.dynamic_rotate %617 by %c247_i32_606 dim 1 : vector<8x256xf32>, i32 -> vector<8x256xf32>
    %c17_607 = arith.constant 17 : index
    %c0_608 = arith.constant 0 : index
    %c0_609 = arith.constant 0 : index
    %685 = vector.load %arg6[%c17_607, %c0_608, %c0_609] : memref<27x8x256xf32, #tpu.memory_space<vmem>>, vector<1x8x256xf32>
    %686 = vector.shape_cast %685 : vector<1x8x256xf32> to vector<8x256xf32>
    %687 = arith.mulf %684, %686 : vector<8x256xf32>
    %c201_i32_610 = arith.constant 201 : i32
    %688 = tpu.dynamic_rotate %617 by %c201_i32_610 dim 1 : vector<8x256xf32>, i32 -> vector<8x256xf32>
    %c18_611 = arith.constant 18 : index
    %c0_612 = arith.constant 0 : index
    %c0_613 = arith.constant 0 : index
    %689 = vector.load %arg6[%c18_611, %c0_612, %c0_613] : memref<27x8x256xf32, #tpu.memory_space<vmem>>, vector<1x8x256xf32>
    %690 = vector.shape_cast %689 : vector<1x8x256xf32> to vector<8x256xf32>
    %691 = arith.mulf %688, %690 : vector<8x256xf32>
    %c200_i32_614 = arith.constant 200 : i32
    %692 = tpu.dynamic_rotate %617 by %c200_i32_614 dim 1 : vector<8x256xf32>, i32 -> vector<8x256xf32>
    %c19_615 = arith.constant 19 : index
    %c0_616 = arith.constant 0 : index
    %c0_617 = arith.constant 0 : index
    %693 = vector.load %arg6[%c19_615, %c0_616, %c0_617] : memref<27x8x256xf32, #tpu.memory_space<vmem>>, vector<1x8x256xf32>
    %694 = vector.shape_cast %693 : vector<1x8x256xf32> to vector<8x256xf32>
    %695 = arith.mulf %692, %694 : vector<8x256xf32>
    %c199_i32_618 = arith.constant 199 : i32
    %696 = tpu.dynamic_rotate %617 by %c199_i32_618 dim 1 : vector<8x256xf32>, i32 -> vector<8x256xf32>
    %c20_619 = arith.constant 20 : index
    %c0_620 = arith.constant 0 : index
    %c0_621 = arith.constant 0 : index
    %697 = vector.load %arg6[%c20_619, %c0_620, %c0_621] : memref<27x8x256xf32, #tpu.memory_space<vmem>>, vector<1x8x256xf32>
    %698 = vector.shape_cast %697 : vector<1x8x256xf32> to vector<8x256xf32>
    %699 = arith.mulf %696, %698 : vector<8x256xf32>
    %c193_i32_622 = arith.constant 193 : i32
    %700 = tpu.dynamic_rotate %617 by %c193_i32_622 dim 1 : vector<8x256xf32>, i32 -> vector<8x256xf32>
    %c21_623 = arith.constant 21 : index
    %c0_624 = arith.constant 0 : index
    %c0_625 = arith.constant 0 : index
    %701 = vector.load %arg6[%c21_623, %c0_624, %c0_625] : memref<27x8x256xf32, #tpu.memory_space<vmem>>, vector<1x8x256xf32>
    %702 = vector.shape_cast %701 : vector<1x8x256xf32> to vector<8x256xf32>
    %703 = arith.mulf %700, %702 : vector<8x256xf32>
    %c192_i32_626 = arith.constant 192 : i32
    %704 = tpu.dynamic_rotate %617 by %c192_i32_626 dim 1 : vector<8x256xf32>, i32 -> vector<8x256xf32>
    %c22_627 = arith.constant 22 : index
    %c0_628 = arith.constant 0 : index
    %c0_629 = arith.constant 0 : index
    %705 = vector.load %arg6[%c22_627, %c0_628, %c0_629] : memref<27x8x256xf32, #tpu.memory_space<vmem>>, vector<1x8x256xf32>
    %706 = vector.shape_cast %705 : vector<1x8x256xf32> to vector<8x256xf32>
    %707 = arith.mulf %704, %706 : vector<8x256xf32>
    %c191_i32_630 = arith.constant 191 : i32
    %708 = tpu.dynamic_rotate %617 by %c191_i32_630 dim 1 : vector<8x256xf32>, i32 -> vector<8x256xf32>
    %c23_631 = arith.constant 23 : index
    %c0_632 = arith.constant 0 : index
    %c0_633 = arith.constant 0 : index
    %709 = vector.load %arg6[%c23_631, %c0_632, %c0_633] : memref<27x8x256xf32, #tpu.memory_space<vmem>>, vector<1x8x256xf32>
    %710 = vector.shape_cast %709 : vector<1x8x256xf32> to vector<8x256xf32>
    %711 = arith.mulf %708, %710 : vector<8x256xf32>
    %c185_i32_634 = arith.constant 185 : i32
    %712 = tpu.dynamic_rotate %617 by %c185_i32_634 dim 1 : vector<8x256xf32>, i32 -> vector<8x256xf32>
    %c24_635 = arith.constant 24 : index
    %c0_636 = arith.constant 0 : index
    %c0_637 = arith.constant 0 : index
    %713 = vector.load %arg6[%c24_635, %c0_636, %c0_637] : memref<27x8x256xf32, #tpu.memory_space<vmem>>, vector<1x8x256xf32>
    %714 = vector.shape_cast %713 : vector<1x8x256xf32> to vector<8x256xf32>
    %715 = arith.mulf %712, %714 : vector<8x256xf32>
    %c184_i32_638 = arith.constant 184 : i32
    %716 = tpu.dynamic_rotate %617 by %c184_i32_638 dim 1 : vector<8x256xf32>, i32 -> vector<8x256xf32>
    %c25_639 = arith.constant 25 : index
    %c0_640 = arith.constant 0 : index
    %c0_641 = arith.constant 0 : index
    %717 = vector.load %arg6[%c25_639, %c0_640, %c0_641] : memref<27x8x256xf32, #tpu.memory_space<vmem>>, vector<1x8x256xf32>
    %718 = vector.shape_cast %717 : vector<1x8x256xf32> to vector<8x256xf32>
    %719 = arith.mulf %716, %718 : vector<8x256xf32>
    %c183_i32_642 = arith.constant 183 : i32
    %720 = tpu.dynamic_rotate %617 by %c183_i32_642 dim 1 : vector<8x256xf32>, i32 -> vector<8x256xf32>
    %c26_643 = arith.constant 26 : index
    %c0_644 = arith.constant 0 : index
    %c0_645 = arith.constant 0 : index
    %721 = vector.load %arg6[%c26_643, %c0_644, %c0_645] : memref<27x8x256xf32, #tpu.memory_space<vmem>>, vector<1x8x256xf32>
    %722 = vector.shape_cast %721 : vector<1x8x256xf32> to vector<8x256xf32>
    %723 = arith.mulf %720, %722 : vector<8x256xf32>
    %724 = tpu.concatenate %623, %627, %631, %635, %639, %643, %647, %651, %655, %659, %663, %667, %671, %617, %675, %679 in 0 : vector<8x256xf32>, vector<8x256xf32>, vector<8x256xf32>, vector<8x256xf32>, vector<8x256xf32>, vector<8x256xf32>, vector<8x256xf32>, vector<8x256xf32>, vector<8x256xf32>, vector<8x256xf32>, vector<8x256xf32>, vector<8x256xf32>, vector<8x256xf32>, vector<8x256xf32>, vector<8x256xf32>, vector<8x256xf32> -> vector<128x256xf32>
    %725 = tpu.concatenate %683, %687, %691, %695, %699, %703, %707, %711, %715, %719, %723, %0 in 0 : vector<8x256xf32>, vector<8x256xf32>, vector<8x256xf32>, vector<8x256xf32>, vector<8x256xf32>, vector<8x256xf32>, vector<8x256xf32>, vector<8x256xf32>, vector<8x256xf32>, vector<8x256xf32>, vector<8x256xf32>, vector<40x256xf32> -> vector<128x256xf32>
    %726 = tpu.concatenate %724, %725 in 0 : vector<128x256xf32>, vector<128x256xf32> -> vector<256x256xf32>
    %cst_646 = arith.constant dense<0.000000e+00> : vector<8x256xf32>
    %727 = tpu.matmul %619, %726, %cst_646 {dimension_numbers = #tpu.dot_dimension_numbers<[1], [0], [0], [1], [0, 0, 1, 1], [], []>} : vector<8x256xf32>, vector<256x256xf32>, vector<8x256xf32> -> vector<8x256xf32>
    %c8_647 = arith.constant 8 : index
    %c0_648 = arith.constant 0 : index
    %c0_649 = arith.constant 0 : index
    %728 = vector.load %arg5[%c8_647, %c0_648, %c0_649] : memref<9x8x256xf32, #tpu.memory_space<vmem>>, vector<1x8x256xf32>
    %729 = vector.shape_cast %728 : vector<1x8x256xf32> to vector<8x256xf32>
    %730 = arith.addf %727, %729 : vector<8x256xf32>
    %731 = arith.addf %488, %730 : vector<8x256xf32>
    %c0_650 = arith.constant 0 : index
    %c0_651 = arith.constant 0 : index
    %c0_652 = arith.constant 0 : index
    %732 = vector.load %arg7[%c0_650, %c0_651, %c0_652] : memref<1x8x256xf32, #tpu.memory_space<vmem>>, vector<1x8x256xf32>
    %733 = vector.shape_cast %732 : vector<1x8x256xf32> to vector<8x256xf32>
    %734 = vector.shape_cast %731 : vector<8x256xf32> to vector<1x8x256xf32>
    tpu.vector_store %arg7[%c0_650, %c0_651, %c0_652], %734 {strides = array<i32>} : memref<1x8x256xf32, #tpu.memory_space<vmem>>, vector<1x8x256xf32>,
    return
  }
  func.func @transform_0(%arg0: i32) -> (i32, i32, i32) {
    %c0_i32 = arith.constant 0 : i32
    %c0_i32_0 = arith.constant 0 : i32
    %c0_i32_1 = arith.constant 0 : i32
    return %arg0, %c0_i32, %c0_i32_0 : i32, i32, i32
  }
  func.func @transform_1(%arg0: i32) -> (i32, i32, i32) {
    %c0_i32 = arith.constant 0 : i32
    %c0_i32_0 = arith.constant 0 : i32
    %c0_i32_1 = arith.constant 0 : i32
    %c0_i32_2 = arith.constant 0 : i32
    return %c0_i32, %c0_i32_0, %c0_i32_1 : i32, i32, i32
  }
  func.func @transform_2(%arg0: i32) -> (i32, i32, i32) {
    %c0_i32 = arith.constant 0 : i32
    %c0_i32_0 = arith.constant 0 : i32
    %c0_i32_1 = arith.constant 0 : i32
    %c0_i32_2 = arith.constant 0 : i32
    return %c0_i32, %c0_i32_0, %c0_i32_1 : i32, i32, i32
  }
  func.func @transform_3(%arg0: i32) -> (i32, i32, i32) {
    %c0_i32 = arith.constant 0 : i32
    %c0_i32_0 = arith.constant 0 : i32
    %c0_i32_1 = arith.constant 0 : i32
    %c0_i32_2 = arith.constant 0 : i32
    return %c0_i32, %c0_i32_0, %c0_i32_1 : i32, i32, i32
  }
  func.func @transform_4(%arg0: i32) -> (i32, i32, i32) {
    %c0_i32 = arith.constant 0 : i32
    %c0_i32_0 = arith.constant 0 : i32
    %c0_i32_1 = arith.constant 0 : i32
    %c0_i32_2 = arith.constant 0 : i32
    return %c0_i32, %c0_i32_0, %c0_i32_1 : i32, i32, i32
  }
  func.func @transform_5(%arg0: i32) -> (i32, i32, i32) {
    %c0_i32 = arith.constant 0 : i32
    %c0_i32_0 = arith.constant 0 : i32
    %c0_i32_1 = arith.constant 0 : i32
    %c0_i32_2 = arith.constant 0 : i32
    return %c0_i32, %c0_i32_0, %c0_i32_1 : i32, i32, i32
  }
  func.func @transform_6(%arg0: i32) -> (i32, i32, i32) {
    %c0_i32 = arith.constant 0 : i32
    %c0_i32_0 = arith.constant 0 : i32
    %c0_i32_1 = arith.constant 0 : i32
    return %arg0, %c0_i32, %c0_i32_0 : i32, i32, i32
  }
}

</mosaic_0001>

<bundles_post_ra>
// kernel: tpu_custom_call.1
= control target key start
LH: loop header
LB: loop body
LE: loop exit
PB: predicated region body
PF: predicated region fallthrough
CT: control target
= control target key end

     0   :  { %s5217_s0 = inlined_call_operand.hbm [shape: f32[2,8,256], index: 0, kind: input, shape index: {}]   ;;  %s5218_s1 = inlined_call_operand.hbm [shape: f32[3,8,256], index: 1, kind: input, shape index: {}]   ;;  %s5219_s2 = inlined_call_operand.hbm [shape: f32[3,8,256], index: 2, kind: input, shape index: {}]   ;;  %s5220_s3 = inlined_call_operand.hbm [shape: f32[3,8,8], index: 3, kind: input, shape index: {}]   ;;  %s5221_s4 = inlined_call_operand.hbm [shape: f32[9,8,256], index: 4, kind: input, shape index: {}]   ;;  %s5222_s5 = inlined_call_operand.hbm [shape: f32[27,8,256], index: 5, kind: input, shape index: {}]   ;;  %s5223_s6 = inlined_call_operand.hbm [shape: f32[2,8,256], index: 6, kind: output, shape index: {}]  }
   0x1   :  { %5348 = sst [smem:[#allocation42_spill]] %s5217_s0 }
   0x2   :  { %5349 = sst [smem:[#allocation43_spill]] %s5218_s1 }
   0x3   :  { %5350 = sst [smem:[#allocation44_spill]] %s5219_s2 }
   0x4   :  { %11 = vsyncpa [#allocation3], 0 }
   0x5   :  { %13 = vsyncpa [#allocation3 + $0x1], 0 }
   0x6   :  { %14 = vsyncpa [#allocation6], 0 }
   0x7   :  { %15 = vsyncpa [#allocation9], 0 }
   0x8   :  { %16 = vsyncpa [#allocation12], 0 }
   0x9   :  { %17 = vsyncpa [#allocation4], 0 }
   0xa   :  { %19 = vsyncpa [#allocation4 + $0x1], 0  ;;  %s3083_s21 = smov 0   ;;  %s3085_s22 = smov 0  }
   0xb   :  { %s3087_s23 = smov 0   ;;  %s3089_s24 = smov 0  }
   0xc LB: > { %s3019_s25 = smov [#allocation5]   ;;  %s3104_s27 = sadd.s32 4294967295, %s3017_s24   ;;  %s3017_s24 = sphi %s3089_s24, %s5548_s24   ;;  %s3013_s23 = sphi %s3087_s23, %s5547_s23   ;;  %s3009_s22 = sphi %s3085_s22, %s5546_s22   ;;  %s3005_s21 = sphi %s3083_s21, %s5545_s21  }
   0xd   : > { %s199_s26 = sshll.u32 %s3019_s25, 4  ;;  %p2237_p0 = scmp.ge.s32.totalorder %s3017_s24, 1  ;;  %s3109_s26 = int_to_ptr.vmem [resolvable:$true] %s199_s26 }
   0xe   : > { %p5224_p1 = scmp.eq.s32.totalorder %s3104_s27, 0  ;;  %p187_p2 = scmp.lt.s32.totalorder %s3017_s24, 3 }
   0xf   : > { %s3020_s29 = smov [#allocation8]   ;;  %s3021_s8 = smov [#allocation7]  }
  0x10   : > { %p3111_p3 = pnand %p2237_p0, %p187_p2  ;;  %s225_s30 = sshll.u32 %s3020_s29, 4  ;;  %s3124_s30 = int_to_ptr.vmem [resolvable:$true] %s225_s30 }
  0x11   : > { %s3126_s9 = sshll.u32 %s3021_s8, 4  ;;  %s5353_s1 = sld [smem:[#allocation43_spill]]  ;;  %s213_s9 = int_to_ptr.vmem [resolvable:$true] %s3126_s9 }
  0x12   : > { %s5351_s28 = scalar_select %p3111_p3, 1, 0 }
  0x13   : > { %p2601_p5 = pneg %p3111_p3 }
  0x15   : > { %p3120_p6 = pnand %p2601_p5, %p5224_p1 }
  0x17   : > { %s2769_s12 = scalar_lea.hbm %s5353_s1, 768  ;;  %p3136_p8 = pneg %p3120_p6 }
  0x18   : > { %p2770_p7 = scmp.ne.s32.totalorder %s5353_s1, %s2769_s12  ;;  %p2776_p11 = scmp.lt.u32.totalorder %s2769_s12, %s5353_s1 }
  0x1a   : > { %p2772_p9 = pnand %p3136_p8, %p2770_p7 }
  0x1c   : > { %p2773_p10 = pneg %p2772_p9 }
  0x1e   : > { %p2778_p12 = pnand %p2776_p11, %p2773_p10 }
  0x20   : > { %2781 = shalt.err (!%p2778_p12)
}
  0x21   : > { %s2782_s18 = scalar_lea.vmem %s3109_s26, 768  ;;  %p2790_p5 = scmp.lt.s32.totalorder %s3109_s26, %s3109_s26 }
  0x22   : > { %p2783_p13 = scmp.ne.s32.totalorder %s3109_s26, %s2782_s18  ;;  %p2791_p4 = scmp.lt.s32.totalorder %s2782_s18, %s2782_s18 }
  0x24   : > { %p2785_p0 = pnand %p2783_p13, %p3136_p8  ;;  %p2792_p7 = por %p2791_p4, %p2790_p5 }
  0x26   : > { %p2786_p2 = pneg %p2785_p0 }
  0x28   : > { %p2793_p9 = pnand %p2792_p7, %p2786_p2 }
  0x2a   : > { %2796 = shalt.err (!%p2793_p9)
}
  0x2b   : > { %s3022_s19 = smov 256   ;;  %s3023_s20 = smov 16  }
  0x2c   : > { %2604 = dma.hbm_to_vmem [thread:$0]  (!%p3120_p6), %s5353_s1, 768, %s3109_s26, [#allocation6], %s3022_s19, %s3022_s19, %s3023_s20  }
  0x2d   : > { %s2797_s11 = scalar_lea.hbm %s5220_s3, 384 }
  0x2e   : > { %p2798_p4 = scmp.ne.s32.totalorder %s5220_s3, %s2797_s11  ;;  %p2804_p12 = scmp.lt.u32.totalorder %s2797_s11, %s5220_s3 }
  0x30   : > { %p2800_p10 = pnand %p2798_p4, %p3136_p8 }
  0x32   : > { %p2801_p11 = pneg %p2800_p10 }
  0x34   : > { %p2806_p13 = pnand %p2804_p12, %p2801_p11 }
  0x36   : > { %2809 = shalt.err (!%p2806_p13)
}
  0x37   : > { %s2810_s26 = scalar_lea.vmem %s3124_s30, 384  ;;  %p2818_p7 = scmp.lt.s32.totalorder %s3124_s30, %s3124_s30 }
  0x38   : > { %p2811_p0 = scmp.ne.s32.totalorder %s3124_s30, %s2810_s26  ;;  %p2819_p9 = scmp.lt.s32.totalorder %s2810_s26, %s2810_s26 }
  0x3a   : > { %p2813_p2 = pnand %p2811_p0, %p3136_p8  ;;  %p2820_p4 = por %p2819_p9, %p2818_p7 }
  0x3c   : > { %p2814_p5 = pneg %p2813_p2 }
  0x3e   : > { %p2821_p10 = pnand %p2820_p4, %p2814_p5 }
  0x40   : > { %2824 = shalt.err (!%p2821_p10)
}
  0x41   : > { %s3024_s17 = smov 128   ;;  %s3025_s18 = smov 8  }
  0x42   : > { %2610 = dma.hbm_to_vmem [thread:$0]  (!%p3120_p6), %s5220_s3, 384, %s3124_s30, [#allocation9], %s3024_s17, %s3024_s17, %s3025_s18  }
  0x43   : > { %s5355_s2 = sld [smem:[#allocation44_spill]] }
  0x49   : > { %s2825_s11 = scalar_lea.hbm %s5355_s2, 768 }
  0x4a   : > { %p2826_p11 = scmp.ne.s32.totalorder %s5355_s2, %s2825_s11  ;;  %p2832_p0 = scmp.lt.u32.totalorder %s2825_s11, %s5355_s2 }
  0x4c   : > { %p2828_p12 = pnand %p2826_p11, %p3136_p8 }
  0x4e   : > { %p2829_p13 = pneg %p2828_p12 }
  0x50   : > { %p2834_p2 = pnand %p2832_p0, %p2829_p13 }
  0x52   : > { %2837 = shalt.err (!%p2834_p2)
}
  0x53   : > { %s2838_s26 = scalar_lea.vmem %s213_s9, 768  ;;  %p2846_p4 = scmp.lt.s32.totalorder %s213_s9, %s213_s9 }
  0x54   : > { %p2839_p5 = scmp.ne.s32.totalorder %s213_s9, %s2838_s26  ;;  %p2847_p10 = scmp.lt.s32.totalorder %s2838_s26, %s2838_s26 }
  0x56   : > { %p2841_p7 = pnand %p2839_p5, %p3136_p8  ;;  %p2848_p1 = por %p2847_p10, %p2846_p4 }
  0x58   : > { %p2842_p9 = pneg %p2841_p7 }
  0x5a   : > { %p2849_p3 = pnand %p2848_p1, %p2842_p9 }
  0x5c   : > { %2852 = shalt.err (!%p2849_p3)
}
  0x5d   : > { %2607 = dma.hbm_to_vmem [thread:$0]  (!%p3120_p6), %s5355_s2, 768, %s213_s9, [#allocation6], %s3022_s19, %s3022_s19, %s3023_s20  }
  0x5e   : > { %s3026_s18 = smov [#allocation10]   ;;  %s3027_s29 = smov [#allocation11]  }
  0x5f   : > { %s238_s25 = sshll.u32 %s3026_s18, 4  ;;  %s251_s8 = sshll.u32 %s3027_s29, 4  ;;  %s239_s25 = int_to_ptr.vmem [resolvable:$true] %s238_s25  ;;  %s252_s8 = int_to_ptr.vmem [resolvable:$true] %s251_s8 }
  0x60   : > { %s2853_s12 = scalar_lea.hbm %s5221_s4, 2304 }
  0x61   : > { %p2854_p1 = scmp.ne.s32.totalorder %s5221_s4, %s2853_s12  ;;  %p2860_p12 = scmp.lt.u32.totalorder %s2853_s12, %s5221_s4 }
  0x63   : > { %p2856_p3 = pnand %p2854_p1, %p3136_p8 }
  0x65   : > { %p2857_p11 = pneg %p2856_p3 }
  0x67   : > { %p2862_p13 = pnand %p2860_p12, %p2857_p11 }
  0x69   : > { %2865 = shalt.err (!%p2862_p13)
}
  0x6a   : > { %s2866_s9 = scalar_lea.vmem %s239_s25, 2304  ;;  %p2874_p7 = scmp.lt.s32.totalorder %s239_s25, %s239_s25 }
  0x6b   : > { %p2867_p0 = scmp.ne.s32.totalorder %s239_s25, %s2866_s9  ;;  %p2875_p9 = scmp.lt.s32.totalorder %s2866_s9, %s2866_s9 }
  0x6d   : > { %p2869_p2 = pnand %p2867_p0, %p3136_p8  ;;  %p2876_p4 = por %p2875_p9, %p2874_p7 }
  0x6f   : > { %p2870_p5 = pneg %p2869_p2 }
  0x71   : > { %p2877_p10 = pnand %p2876_p4, %p2870_p5 }
  0x73   : > { %2880 = shalt.err (!%p2877_p10)
}
  0x74   : > { %2613 = dma.hbm_to_vmem [thread:$0]  (!%p3120_p6), %s5221_s4, 2304, %s239_s25, [#allocation9], %s3022_s19, %s3022_s19, %s3023_s20  }
  0x75   : > { %s2881_s10 = scalar_lea.hbm %s5222_s5, 6912 }
  0x76   : > { %p2882_p1 = scmp.ne.s32.totalorder %s5222_s5, %s2881_s10  ;;  %p2888_p12 = scmp.lt.u32.totalorder %s2881_s10, %s5222_s5 }
  0x78   : > { %p2884_p3 = pnand %p2882_p1, %p3136_p8 }
  0x7a   : > { %p2885_p11 = pneg %p2884_p3 }
  0x7c   : > { %p2890_p13 = pnand %p2888_p12, %p2885_p11 }
  0x7e   : > { %2893 = shalt.err (!%p2890_p13)
}
  0x7f   : > { %s2894_s16 = scalar_lea.vmem %s252_s8, 6912  ;;  %p2902_p7 = scmp.lt.s32.totalorder %s252_s8, %s252_s8 }
  0x80   : > { %p2895_p0 = scmp.ne.s32.totalorder %s252_s8, %s2894_s16  ;;  %p2903_p9 = scmp.lt.s32.totalorder %s2894_s16, %s2894_s16 }
  0x82   : > { %p2897_p2 = pnand %p2895_p0, %p3136_p8  ;;  %p2904_p4 = por %p2903_p9, %p2902_p7 }
  0x84   : > { %p2898_p5 = pneg %p2897_p2 }
  0x86   : > { %p2905_p10 = pnand %p2904_p4, %p2898_p5 }
  0x88   : > { %2908 = shalt.err (!%p2905_p10)
}
  0x89   : > { %2616 = dma.hbm_to_vmem [thread:$0]  (!%p3120_p6), %s5222_s5, 6912, %s252_s8, [#allocation12], %s3022_s19, %s3022_s19, %s3023_s20  }
  0x8a   : > { %s2236_s7 = sadd.s32 4294967294, %s3017_s24   ;;  %s3249_s15 = sadd.s32 1, %s3017_s24  }
  0x8b   : > { %s32_s9 = sadd.s32 1, %s3013_s23  ;;  %s29_s30 = ssub.s32 %s3017_s24, %s3249_s15 }
  0x8c   : > { %p39_p8 = scmp.ne.s32.totalorder %s3013_s23, %s3009_s22  ;;  %p30_p1 = scmp.eq.s32.totalorder %s29_s30, 0 }
  0x8d   : > { %p40_p3 = scmp.eq.s32.totalorder %s3017_s24, 0  ;;  %p45_p11 = scmp.ne.s32.totalorder %s3009_s22, %s3005_s21 }
  0x8e   : > { %p174_p12 = scmp.eq.s32.totalorder %s3104_s27, 1  ;;  %p5356_p0 = scmp.eq.s32.totalorder %s3104_s27, 0 }
  0x8f   : > { %s3261_s17 = scalar_select %p30_p1, %s3013_s23, %s32_s9  }
  0x90   : > { %p41_p13 = por %p40_p3, %p39_p8  ;;  %p3265_p2 = por %p5356_p0, %p45_p11 }
  0x91   : > { %p3269_p6 = por %p174_p12, %p39_p8  ;;  %p180_p5 = scmp.eq.s32.totalorder %s2236_s7, 1 }
  0x92   : > { %p2630_p7 = scmp.lt.s32.totalorder %s3017_s24, 2  ;;  %s265_s20 = sand.u32 1, %s3013_s23  }
  0x93   : > { %s5358_s19 = scalar_select %p3269_p6, 1, 0 }
  0x94   : > { %p3275_p9 = por %p180_p5, %p45_p11  ;;  %s2244_s29 = sshll.u32 %s265_s20, 4 }
  0x95   : > { %s2263_s10 = sshll.u32 %s3017_s24, 8  ;;  %s5360_s0 = sld [smem:[#allocation42_spill]] }
  0x96   : > { %s5359_s8 = scalar_select %p3275_p9, 1, 0 }
  0x97   : > { %s269_s14 = scalar_lea.vmem [#allocation2], %s2244_s29  ;;  %p3285_p4 = pnand %p2630_p7, %p41_p13 }
  0x98   : > { %s277_s16 = sshll.u32 %s269_s14, 4  ;;  %s266_s26 = scalar_lea.sflag [#allocation3], %s265_s20  ;;  %s3289_s16 = int_to_ptr.vmem [resolvable:$true] %s277_s16 }
  0x99   : > { %p2911_p8 = pneg %p3285_p4 }
  0x9b   : > { %s3283_s13 = scalar_lea.hbm %s5360_s0, %s2263_s10  ;;  %s2914_s29 = scalar_lea.hbm %s5360_s0, 512 }
  0x9c   : > { %s2909_s7 = scalar_lea.hbm %s3283_s13, 256  ;;  %p2915_p11 = scmp.lt.u32.totalorder %s3283_s13, %s5360_s0 }
  0x9d   : > { %p2910_p10 = scmp.ne.s32.totalorder %s3283_s13, %s2909_s7  ;;  %p2916_p12 = scmp.lt.u32.totalorder %s2914_s29, %s2909_s7 }
  0x9e   : > { %p2918_p0 = scmp.lt.u32.totalorder %s2909_s7, %s3283_s13 }
  0x9f   : > { %p2912_p1 = pnand %p2911_p8, %p2910_p10  ;;  %p2917_p13 = por %p2916_p12, %p2915_p11 }
  0xa1   : > { %p2913_p3 = pneg %p2912_p1  ;;  %p2919_p5 = por %p2918_p0, %p2917_p13 }
  0xa3   : > { %p2920_p7 = pnand %p2919_p5, %p2913_p3 }
  0xa5   : > { %2923 = shalt.err (!%p2920_p7)
}
  0xa6   : > { %s2924_s20 = scalar_lea.vmem %s3289_s16, 256  ;;  %s3028_s12 = smov [#allocation2]  }
  0xa7   : > { %p2925_p10 = scmp.ne.s32.totalorder %s3289_s16, %s2924_s20  ;;  %s2929_s14 = sshll.u32 %s3028_s12, 4  ;;  %s2930_s14 = int_to_ptr.vmem [resolvable:$false] %s2929_s14 }
  0xa8   : > { %s2931_s9 = scalar_lea.vmem %s2930_s14, 512  ;;  %p2932_p6 = scmp.lt.s32.totalorder %s3289_s16, %s2930_s14 }
  0xa9   : > { %p2927_p1 = pnand %p2925_p10, %p2911_p8  ;;  %p2933_p11 = scmp.lt.s32.totalorder %s2931_s9, %s2924_s20 }
  0xab   : > { %p2928_p9 = pneg %p2927_p1  ;;  %p2934_p12 = por %p2933_p11, %p2932_p6 }
  0xad   : > { %p2935_p13 = pnand %p2934_p12, %p2928_p9 }
  0xaf   : > { %2938 = shalt.err (!%p2935_p13)
}
  0xb0   : > { %2620 = dma.hbm_to_vmem [thread:$0]  (!%p3285_p4), %s3283_s13, 256, %s3289_s16, %s266_s26  }
  0xb1   : > { %p5362_p3 = scmp.ne.s32.totalorder %s5351_s28, 0 }
  0xb3   : > { %286 = sbr.rel (%p5362_p3) target bundleno = 3415 (0xd57), region = 44 }
  0xba   : > { %s3319_s7 = sand.u32 1, %s3009_s22  }
  0xbb   : > { %s5227_s30 = sshll.u32 %s3319_s7, 4  ;;  %s289_s29 = scalar_lea.sflag [#allocation3], %s3319_s7 }
  0xbc   : > { %s3325_s10 = scalar_lea.vmem [#allocation2], %s5227_s30 }
  0xbd   : > { %2984 = dma.done.wait (%p3265_p2), %s289_s29, 256  }
  0xbe   : > { %2986 = vsyncadd (%p3265_p2), %s289_s29, 4294967040  ;;  %p5363_p6 = scmp.eq.s32.totalorder %s3104_s27, 0 }
  0xc0   : > { %2988 = dma.done.wait (%p5363_p6), [#allocation6], 1536   ;;  %p5364_p9 = pmov %p5363_p6 }
  0xc1   : > { %p5365_p4 = pmov %p5363_p6 }
  0xc2   : > { %2990 = vsyncadd (%p5364_p9), [#allocation6], 4294965760 }
  0xc3   : > { %2992 = dma.done.wait (%p5365_p4), [#allocation9], 2688   ;;  %p5366_p8 = pmov %p5365_p4 }
  0xc4   : > { %p5367_p0 = pmov %p5365_p4 }
  0xc5   : > { %2994 = vsyncadd (%p5366_p8), [#allocation9], 4294964608 }
  0xc6   : > { %2996 = dma.done.wait (%p5367_p0), [#allocation12], 6912   ;;  %p5368_p5 = pmov %p5367_p0 }
  0xc7   : > { %v3344_v0 = vld [vmem:[%s3325_s10] sm:$0xff]  ;;  %s5272_s28 = smov 72   ;;  %s5270_s18 = smov 73   ;;  %v3351_v1 = vld [vmem:[%s3325_s10 + $0x8] sm:$0xff]  ;;  %v349_v3 = vlaneseq }
  0xc8   : > { %2998 = vsyncadd (%p5368_p5), [#allocation12], 4294960384  ;;  %358 = vrot.lane.b32.xlu1 %v3344_v0, %s5272_s28  ;;  %345 = vrot.lane.b32.xlu0 %v3344_v0, %s5270_s18  ;;  %s5274_s13 = smov 71   ;;  %s5323_s16 = smov 65   ;;  %v344_v2 = vld [vmem:[#allocation5 + $0x8] sm:$0xff]  ;;  %v3421_v7 = vld [vmem:[#allocation11 + $0x8] sm:$0xff] }
  0xc9   : > { %s5260_s25 = smov 64   ;;  %s5262_s26 = smov 63   ;;  %661 = vmatprep.mubr.f32.mxu0 %v344_v2  ;;  %v3417_v4 = vand.u32 127, %v349_v3  ;;  %v3423_v8 = vld [vmem:[#allocation11 + $0x18] sm:$0xff]  ;;  %v3425_v9 = vld [vmem:[#allocation11 + $0x120] sm:$0xff]  ;;  %v3427_v12 = vld [vmem:[#allocation11 + $0x130] sm:$0xff] }
  0xca   : > { %s5264_s11 = smov 57   ;;  %s5266_s20 = smov 56   ;;  %v3429_v13 = vld [vmem:[#allocation11] sm:$0xff]  ;;  %v3431_v14 = vld [vmem:[#allocation11 + $0x10] sm:$0xff]  ;;  %v3463_v31 = vld [vmem:[#allocation11 + $0x28] sm:$0xff] }
  0xcb   : > { %s5321_s12 = smov 55   ;;  %s5228_s14 = smov 9   ;;  %vm362_vm0 = vcmp.lt.s32.totalorder %v3417_v4, 72  ;;  %vm351_vm1 = vcmp.lt.s32.totalorder %v3417_v4, 73  ;;  %vm374_vm2 = vcmp.lt.s32.totalorder %v3417_v4, 71  ;;  %v3460_v30 = vld [vmem:[#allocation11 + $0x20] sm:$0xff] }
  0xcc   : > { %360 = vrot.lane.b32.xlu1 %v3351_v1, %s5272_s28  ;;  %347 = vrot.lane.b32.xlu0 %v3351_v1, %s5270_s18  ;;  %s5230_s9 = smov 8   ;;  %s5232_s29 = smov 7   ;;  %vm386_vm3 = vcmp.lt.s32.totalorder %v3417_v4, 65  ;;  %v3473_v34 = vld [vmem:[#allocation11 + $0x30] sm:$0xff]  ;;  %v3475_v35 = vld [vmem:[#allocation11 + $0x38] sm:$0xff]  ;;  %vm398_vm4 = vcmp.lt.s32.totalorder %v3417_v4, 64 }
  0xcd   : > { %s5234_s30 = smov 1   ;;  %v3494_v48 = vld [vmem:[#allocation11 + $0x40] sm:$0xff]  ;;  %vm410_vm5 = vcmp.lt.s32.totalorder %v3417_v4, 63  ;;  %v3497_v49 = vld [vmem:[#allocation11 + $0x48] sm:$0xff]  ;;  %v3507_v52 = vld [vmem:[#allocation11 + $0x50] sm:$0xff]  ;;  %vm422_vm6 = vcmp.lt.s32.totalorder %v3417_v4, 57 }
  0xce   : > { %v3509_v53 = vld [vmem:[#allocation11 + $0x58] sm:$0xff]  ;;  %vm434_vm7 = vcmp.lt.s32.totalorder %v3417_v4, 56  ;;  %vm446_vm8 = vcmp.lt.s32.totalorder %v3417_v4, 55  ;;  %vm458_vm9 = vcmp.lt.s32.totalorder %v3417_v4, 9  ;;  %vm470_vm10 = vcmp.lt.s32.totalorder %v3417_v4, 8  ;;  %s5452_s0 = smov 119  }
  0xcf   : > { %vm5259_vm11 = vcmp.lt.s32.totalorder %v3417_v4, 7  ;;  %vm5258_vm12 = vcmp.lt.s32.totalorder %v3417_v4, 1  ;;  %vm5257_vm13 = vcmp.lt.s32.totalorder %v3417_v4, 127  ;;  %vm5244_vm14 = vcmp.lt.s32.totalorder %v3417_v4, 121  ;;  %s5498_s1 = smov 55   ;;  %s5499_s2 = smov 127  }
  0xd0   : > { %372 = vrot.lane.b32.xlu1 %v3351_v1, %s5274_s13  ;;  %370 = vrot.lane.b32.xlu0 %v3344_v0, %s5274_s13  ;;  %vm5256_vm15 = vcmp.lt.s32.totalorder %v3417_v4, 120  ;;  %p5542_p7 = scmp.ne.s32.totalorder %s5358_s19, 0 }
  0xd4   : > { %384 = vrot.lane.b32.xlu1 %v3351_v1, %s5323_s16  ;;  %382 = vrot.lane.b32.xlu0 %v3344_v0, %s5323_s16 }
  0xd8   : > { %396 = vrot.lane.b32.xlu1 %v3351_v1, %s5260_s25  ;;  %394 = vrot.lane.b32.xlu0 %v3344_v0, %s5260_s25 }
  0xdc   : > { %408 = vrot.lane.b32.xlu1 %v3351_v1, %s5262_s26  ;;  %406 = vrot.lane.b32.xlu0 %v3344_v0, %s5262_s26 }
  0xe0   : > { %420 = vrot.lane.b32.xlu1 %v3351_v1, %s5264_s11  ;;  %418 = vrot.lane.b32.xlu0 %v3344_v0, %s5264_s11 }
  0xe4   : > { %432 = vrot.lane.b32.xlu1 %v3351_v1, %s5266_s20  ;;  %430 = vrot.lane.b32.xlu0 %v3344_v0, %s5266_s20 }
  0xe8   : > { %444 = vrot.lane.b32.xlu1 %v3351_v1, %s5321_s12  ;;  %442 = vrot.lane.b32.xlu0 %v3344_v0, %s5321_s12 }
  0xec   : > { %456 = vrot.lane.b32.xlu1 %v3351_v1, %s5228_s14  ;;  %454 = vrot.lane.b32.xlu0 %v3344_v0, %s5228_s14  ;;  %s5343_s14 = smov 127  }
  0xf0   : > { %468 = vrot.lane.b32.xlu1 %v3351_v1, %s5230_s9  ;;  %466 = vrot.lane.b32.xlu0 %v3344_v0, %s5230_s9  ;;  %s5319_s9 = smov 121  }
  0xf4   : > { %480 = vrot.lane.b32.xlu1 %v3351_v1, %s5232_s29  ;;  %478 = vrot.lane.b32.xlu0 %v3344_v0, %s5232_s29  ;;  %s5317_s29 = smov 120  }
  0xf8   : > { %492 = vrot.lane.b32.xlu1 %v3351_v1, %s5234_s30  ;;  %490 = vrot.lane.b32.xlu0 %v3344_v0, %s5234_s30  ;;  %s5315_s30 = smov 119  }
  0xfc   : > { %504 = vrot.lane.b32.xlu1 %v3351_v1, %s5343_s14  ;;  %502 = vrot.lane.b32.xlu0 %v3344_v0, %s5343_s14 }
 0x100   : > { %516 = vrot.lane.b32.xlu1 %v3351_v1, %s5319_s9  ;;  %514 = vrot.lane.b32.xlu0 %v3344_v0, %s5319_s9 }
 0x104   : > { %528 = vrot.lane.b32.xlu1 %v3351_v1, %s5317_s29  ;;  %526 = vrot.lane.b32.xlu0 %v3344_v0, %s5317_s29 }
 0x108   : > { %540 = vrot.lane.b32.xlu1 %v3351_v1, %s5315_s30  ;;  %538 = vrot.lane.b32.xlu0 %v3344_v0, %s5315_s30 }
 0x13a   : > { %v359_v5 = vpop.permute.xlu1 %358  ;;  %v346_v6 = vpop.permute.xlu0 %345 }
 0x13e   : > { %v361_v10 = vpop.permute.xlu1 %360  ;;  %v348_v11 = vpop.permute.xlu0 %347 }
 0x13f   : > { %v3435_v15 = vsel %vm362_vm0, %v361_v10, %v359_v5  ;;  %v3439_v16 = vsel %vm351_vm1, %v348_v11, %v346_v6  ;;  %v352_v17 = vsel %vm351_vm1, %v346_v6, %v348_v11  ;;  %v363_v18 = vsel %vm362_vm0, %v359_v5, %v361_v10  ;;  %v3528_v5 = vld [vmem:[#allocation11 + $0x60] sm:$0xff]  ;;  %v3531_v6 = vld [vmem:[#allocation11 + $0x68] sm:$0xff] }
 0x140   : > { %v357_v19 = vmul.f32 %v3421_v7, %v352_v17  ;;  %v369_v20 = vmul.f32 %v3423_v8, %v363_v18  ;;  %v3448_v21 = vmul.f32 %v3425_v9, %v352_v17  ;;  %v3451_v22 = vmul.f32 %v3427_v12, %v363_v18  ;;  %v3541_v17 = vld [vmem:[#allocation11 + $0x70] sm:$0xff]  ;;  %v3543_v18 = vld [vmem:[#allocation11 + $0x78] sm:$0xff] }
 0x141   : > { %v356_v23 = vmul.f32 %v3429_v13, %v3439_v16  ;;  %v368_v24 = vmul.f32 %v3431_v14, %v3435_v15 }
 0x142   : > { %v373_v25 = vpop.permute.xlu1 %372  ;;  %v371_v26 = vpop.permute.xlu0 %370  ;;  %v2265_v27 = vpack.c.bf16 %v369_v20, %v357_v19 }
 0x143   : > { %v2267_v28 = vpack.c.bf16 %v368_v24, %v356_v23  ;;  %v3467_v32 = vsel %vm374_vm2, %v371_v26, %v373_v25  ;;  %v3471_v33 = vsel %vm374_vm2, %v373_v25, %v371_v26 }
 0x144   : > { %2266 = vmatprep.subr.bf16.mxu0 %v2265_v27  ;;  %v380_v40 = vmul.f32 %v3460_v30, %v3471_v33  ;;  %v381_v41 = vmul.f32 %v3463_v31, %v3467_v32 }
 0x145   : > { %2268 = vmatpush1.bf16.msra.mxu0 %v2267_v28 }
 0x146   : > { %v385_v36 = vpop.permute.xlu1 %384  ;;  %v383_v37 = vpop.permute.xlu0 %382 }
 0x147   : > { %v3479_v38 = vsel %vm386_vm3, %v383_v37, %v385_v36  ;;  %v3483_v39 = vsel %vm386_vm3, %v385_v36, %v383_v37 }
 0x148   : > { %v392_v42 = vmul.f32 %v3473_v34, %v3483_v39  ;;  %v393_v43 = vmul.f32 %v3475_v35, %v3479_v38 }
 0x14a   : > { %v397_v44 = vpop.permute.xlu1 %396  ;;  %v395_v45 = vpop.permute.xlu0 %394  ;;  %v2269_v46 = vpack.c.bf16 %v393_v43, %v381_v41  ;;  %v2271_v47 = vpack.c.bf16 %v392_v42, %v380_v40  ;;  %v3562_v42 = vld [vmem:[#allocation11 + $0x80] sm:$0xff]  ;;  %v3565_v43 = vld [vmem:[#allocation11 + $0x88] sm:$0xff] }
 0x14b   : > { %v3501_v50 = vsel %vm398_vm4, %v395_v45, %v397_v44  ;;  %v3505_v51 = vsel %vm398_vm4, %v397_v44, %v395_v45 }
 0x14c   : > { %2270 = vmatprep.subr.bf16.mxu0 %v2269_v46  ;;  %v404_v58 = vmul.f32 %v3494_v48, %v3505_v51  ;;  %v405_v59 = vmul.f32 %v3497_v49, %v3501_v50  ;;  %v3575_v46 = vld [vmem:[#allocation11 + $0x90] sm:$0xff] }
 0x14d   : > { %2272 = vmatpush1.bf16.msra.mxu0 %v2271_v47  ;;  %v3577_v47 = vld [vmem:[#allocation11 + $0x98] sm:$0xff] }
 0x14e   : > { %v409_v54 = vpop.permute.xlu1 %408  ;;  %v407_v55 = vpop.permute.xlu0 %406 }
 0x14f   : > { %v3513_v56 = vsel %vm410_vm5, %v407_v55, %v409_v54  ;;  %v3517_v57 = vsel %vm410_vm5, %v409_v54, %v407_v55 }
 0x150   : > { %v416_v60 = vmul.f32 %v3507_v52, %v3517_v57  ;;  %v417_v61 = vmul.f32 %v3509_v53, %v3513_v56 }
 0x152   : > { %v421_v62 = vpop.permute.xlu1 %420  ;;  %v419_v63 = vpop.permute.xlu0 %418  ;;  %v2273_v2 = vpack.c.bf16 %v417_v61, %v405_v59  ;;  %v2275_v3 = vpack.c.bf16 %v416_v60, %v404_v58 }
 0x153   : > { %v3535_v10 = vsel %vm422_vm6, %v419_v63, %v421_v62  ;;  %v3539_v11 = vsel %vm422_vm6, %v421_v62, %v419_v63 }
 0x154   : > { %2274 = vmatprep.subr.bf16.mxu0 %v2273_v2  ;;  %v428_v25 = vmul.f32 %v3528_v5, %v3539_v11  ;;  %v429_v26 = vmul.f32 %v3531_v6, %v3535_v10 }
 0x155   : > { %2276 = vmatpush1.bf16.msra.mxu0 %v2275_v3 }
 0x156   : > { %v433_v19 = vpop.permute.xlu1 %432  ;;  %v431_v20 = vpop.permute.xlu0 %430 }
 0x157   : > { %v3547_v23 = vsel %vm434_vm7, %v431_v20, %v433_v19  ;;  %v3551_v24 = vsel %vm434_vm7, %v433_v19, %v431_v20 }
 0x158   : > { %v440_v27 = vmul.f32 %v3541_v17, %v3551_v24  ;;  %v441_v28 = vmul.f32 %v3543_v18, %v3547_v23 }
 0x15a   : > { %v445_v36 = vpop.permute.xlu1 %444  ;;  %v443_v37 = vpop.permute.xlu0 %442  ;;  %v2277_v40 = vpack.c.bf16 %v441_v28, %v429_v26  ;;  %v2279_v41 = vpack.c.bf16 %v440_v27, %v428_v25  ;;  %v3590_v25 = vld [vmem:[#allocation11 + $0xa0] sm:$0xff]  ;;  %v3593_v26 = vld [vmem:[#allocation11 + $0xa8] sm:$0xff] }
 0x15b   : > { %v3569_v44 = vsel %vm446_vm8, %v443_v37, %v445_v36  ;;  %v3573_v45 = vsel %vm446_vm8, %v445_v36, %v443_v37  ;;  %v3599_v36 = vld [vmem:[#allocation11 + $0xb0] sm:$0xff]  ;;  %v3601_v37 = vld [vmem:[#allocation11 + $0xb8] sm:$0xff] }
 0x15c   : > { %2278 = vmatprep.subr.bf16.mxu0 %v2277_v40  ;;  %v452_v60 = vmul.f32 %v3562_v42, %v3573_v45  ;;  %v453_v61 = vmul.f32 %v3565_v43, %v3569_v44  ;;  %5369 = vst [vmem:[#allocation19_spill] sm:$0xff] %v3599_v36  ;;  %5370 = vst [vmem:[#allocation20_spill] sm:$0xff] %v3601_v37 }
 0x15d   : > { %2280 = vmatpush1.bf16.msra.mxu0 %v2279_v41 }
 0x15e   : > { %v457_v54 = vpop.permute.xlu1 %456  ;;  %v455_v55 = vpop.permute.xlu0 %454 }
 0x15f   : > { %v459_v58 = vsel %vm458_vm9, %v455_v55, %v457_v54  ;;  %v460_v59 = vsel %vm458_vm9, %v457_v54, %v455_v55 }
 0x160   : > { %v464_v62 = vmul.f32 %v3575_v46, %v460_v59  ;;  %v465_v63 = vmul.f32 %v3577_v47, %v459_v58 }
 0x162   : > { %v469_v2 = vpop.permute.xlu1 %468  ;;  %v467_v3 = vpop.permute.xlu0 %466  ;;  %v2281_v19 = vpack.c.bf16 %v465_v63, %v453_v61  ;;  %v2283_v20 = vpack.c.bf16 %v464_v62, %v452_v60  ;;  %v3612_v62 = vld [vmem:[#allocation11 + $0xc0] sm:$0xff]  ;;  %v3614_v63 = vld [vmem:[#allocation11 + $0xc8] sm:$0xff] }
 0x163   : > { %v471_v27 = vsel %vm470_vm10, %v467_v3, %v469_v2  ;;  %v472_v28 = vsel %vm470_vm10, %v469_v2, %v467_v3  ;;  %5371 = vst [vmem:[#allocation21_spill] sm:$0xff] %v3612_v62  ;;  %5372 = vst [vmem:[#allocation22_spill] sm:$0xff] %v3614_v63 }
 0x164   : > { %2282 = vmatprep.subr.bf16.mxu0 %v2281_v19  ;;  %v476_v58 = vmul.f32 %v3590_v25, %v472_v28  ;;  %v477_v59 = vmul.f32 %v3593_v26, %v471_v27 }
 0x165   : > { %2284 = vmatpush1.bf16.msra.mxu0 %v2283_v20 }
 0x166   : > { %v481_v40 = vpop.permute.xlu1 %480  ;;  %v479_v41 = vpop.permute.xlu0 %478 }
 0x167   : > { %v483_v54 = vsel %vm5259_vm11, %v479_v41, %v481_v40  ;;  %v484_v55 = vsel %vm5259_vm11, %v481_v40, %v479_v41 }
 0x168   : > { %v488_v60 = vmul.f32 %v3599_v36, %v484_v55  ;;  %v489_v61 = vmul.f32 %v3601_v37, %v483_v54  ;;  %v3649_v37 = vld [vmem:[#allocation11 + $0x128] sm:$0xff]  ;;  %v3651_v36 = vld [vmem:[#allocation11 + $0x100] sm:$0xff] }
 0x169   : > { %5377 = vst [vmem:[#allocation27_spill] sm:$0xff] %v3649_v37 }
 0x16a   : > { %v493_v2 = vpop.permute.xlu1 %492  ;;  %v491_v3 = vpop.permute.xlu0 %490  ;;  %v2285_v19 = vpack.c.bf16 %v489_v61, %v477_v59  ;;  %v2287_v20 = vpack.c.bf16 %v488_v60, %v476_v58  ;;  %v3625_v59 = vld [vmem:[#allocation11 + $0xe0] sm:$0xff]  ;;  %v3628_v60 = vld [vmem:[#allocation11 + $0xe8] sm:$0xff] }
 0x16b   : > { %v495_v40 = vsel %vm5258_vm12, %v491_v3, %v493_v2  ;;  %v496_v28 = vsel %vm5258_vm12, %v493_v2, %v491_v3  ;;  %5373 = vst [vmem:[#allocation23_spill] sm:$0xff] %v3628_v60  ;;  %v3634_v3 = vld [vmem:[#allocation11 + $0xf0] sm:$0xff] }
 0x16c   : > { %v500_v27 = vmul.f32 %v3612_v62, %v496_v28  ;;  %v501_v41 = vmul.f32 %v3614_v63, %v495_v40  ;;  %2286 = vmatprep.subr.bf16.mxu0 %v2285_v19  ;;  %5374 = vst [vmem:[#allocation24_spill] sm:$0xff] %v3634_v3  ;;  %v3636_v19 = vld [vmem:[#allocation11 + $0xf8] sm:$0xff] }
 0x16d   : > { %2288 = vmatpush1.bf16.msra.mxu0 %v2287_v20  ;;  %5375 = vst [vmem:[#allocation25_spill] sm:$0xff] %v3636_v19  ;;  %v3647_v62 = vld [vmem:[#allocation11 + $0x138] sm:$0xff] }
 0x16e   : > { %v505_v54 = vpop.permute.xlu1 %504  ;;  %v503_v55 = vpop.permute.xlu0 %502  ;;  %v2289_v29 = vpack.c.bf16 %v3351_v1, %v501_v41  ;;  %v2291_v58 = vpack.c.bf16 %v3344_v0, %v500_v27  ;;  %5376 = vst [vmem:[#allocation26_spill] sm:$0xff] %v3647_v62 }
 0x16f   : > { %v507_v61 = vsel %vm5257_vm13, %v503_v55, %v505_v54  ;;  %v508_v2 = vsel %vm5257_vm13, %v505_v54, %v503_v55  ;;  %vm678_vm13 = vcmask 64512  }
 0x170   : > { %2290 = vmatprep.subr.bf16.mxu0 %v2289_v29  ;;  %v512_v40 = vmul.f32 %v3625_v59, %v507_v61  ;;  %v513_v28 = vmul.f32 %v3628_v60, %v508_v2  ;;  %v3654_v61 = vld [vmem:[#allocation11 + $0x108] sm:$0xff] }
 0x171   : > { %2292 = vmatpush1.bf16.msra.mxu0 %v2291_v58  ;;  %v3678_v60 = vld [vmem:[#allocation11 + $0x148] sm:$0xff] }
 0x172   : > { %v517_v1 = vpop.permute.xlu1 %516  ;;  %v515_v0 = vpop.permute.xlu0 %514 }
 0x173   : > { %v519_v29 = vsel %vm5244_vm14, %v515_v0, %v517_v1  ;;  %v520_v20 = vsel %vm5244_vm14, %v517_v1, %v515_v0  ;;  %vm5255_vm14 = vcmp.lt.s32.totalorder %v3417_v4, 119  ;;  %v3660_v0 = vld [vmem:[#allocation11 + $0x110] sm:$0xff] }
 0x174   : > { %v524_v27 = vmul.f32 %v3634_v3, %v519_v29  ;;  %v525_v41 = vmul.f32 %v3636_v19, %v520_v20  ;;  %v3662_v29 = vld [vmem:[#allocation11 + $0x118] sm:$0xff] }
 0x175   : > { %v3676_v3 = vld [vmem:[#allocation11 + $0x158] sm:$0xff] }
 0x176   : > { %v529_v54 = vpop.permute.xlu1 %528  ;;  %v527_v55 = vpop.permute.xlu0 %526  ;;  %v2293_v58 = vpack.c.bf16 %v525_v41, %v513_v28  ;;  %v2295_v63 = vpack.c.bf16 %v524_v27, %v512_v40  ;;  %v559_v28 = vmul.f32 %v3647_v62, %v3435_v15  ;;  %v554_v27 = vmul.f32 %v3649_v37, %v3439_v16  ;;  %v3680_v16 = vld [vmem:[#allocation11 + $0x150] sm:$0xff] }
 0x177   : > { %v531_v2 = vsel %vm5256_vm15, %v527_v55, %v529_v54  ;;  %v532_v1 = vsel %vm5256_vm15, %v529_v54, %v527_v55  ;;  %v569_v37 = vmul.f32 %v3676_v3, %v3483_v39 }
 0x178   : > { %2294 = vmatprep.subr.bf16.mxu0 %v2293_v58  ;;  %v537_v54 = vmul.f32 %v3654_v61, %v532_v1  ;;  %v3686_v1 = vld [vmem:[#allocation11 + $0x140] sm:$0xff] }
 0x179   : > { %2296 = vmatpush1.bf16.msra.mxu0 %v2295_v63  ;;  %v536_v63 = vmul.f32 %v3651_v36, %v531_v2  ;;  %v3684_v2 = vld [vmem:[#allocation11 + $0x178] sm:$0xff] }
 0x17a   : > { %v541_v20 = vpop.permute.xlu1 %540  ;;  %v539_v40 = vpop.permute.xlu0 %538  ;;  %v579_v39 = vmul.f32 %v3684_v2, %v3517_v57  ;;  %v3711_v57 = vld [vmem:[#allocation11 + $0x188] sm:$0xff] }
 0x17b   : > { %v543_v41 = vsel %vm5255_vm14, %v539_v40, %v541_v20  ;;  %v544_v58 = vsel %vm5255_vm14, %v541_v20, %v539_v40  ;;  %v2301_v20 = vpack.c.bf16 %v559_v28, %v554_v27  ;;  %v564_v40 = vmul.f32 %v3678_v60, %v3471_v33  ;;  %v3700_v27 = vld [vmem:[#allocation11 + $0x198] sm:$0xff] }
 0x17c   : > { %v548_v55 = vmul.f32 %v3660_v0, %v543_v41  ;;  %v549_v19 = vmul.f32 %v3662_v29, %v544_v58  ;;  %v3692_v41 = vld [vmem:[#allocation11 + $0x168] sm:$0xff]  ;;  %v3694_v58 = vld [vmem:[#allocation11 + $0x170] sm:$0xff]  ;;  %v5378_v33 = vpack.c.bf16 %v3451_v22, %v3448_v21  ;;  %v3719_v22 = vld [vmem:[#allocation11 + $0x180] sm:$0xff] }
 0x17d   : > { %v2305_v28 = vpack.c.bf16 %v569_v37, %v564_v40 }
 0x17e   : > { %v2297_v15 = vpack.c.bf16 %v549_v19, %v537_v54  ;;  %v2299_v62 = vpack.c.bf16 %v548_v55, %v536_v63  ;;  %v568_v19 = vmul.f32 %v3680_v16, %v3479_v38  ;;  %v3705_v63 = vld [vmem:[#allocation11 + $0x160] sm:$0xff]  ;;  %v574_v38 = vmul.f32 %v3692_v41, %v3505_v51  ;;  %v3713_v55 = vld [vmem:[#allocation11 + $0x190] sm:$0xff] }
 0x17f   : > { %v578_v54 = vmul.f32 %v3694_v58, %v3513_v56  ;;  %v573_v21 = vmul.f32 %v3705_v63, %v3501_v50  ;;  %v584_v51 = vmul.f32 %v3711_v57, %v3539_v11  ;;  %v588_v56 = vmul.f32 %v3713_v55, %v3547_v23  ;;  %v343_v23 = vld [vmem:[#allocation5] sm:$0xff] }
 0x180   : > { %2298 = vmatprep.subr.bf16.mxu0 %v2297_v15  ;;  %v2309_v15 = vpack.c.bf16 %v579_v39, %v574_v38 }
 0x181   : > { %2300 = vmatpush1.bf16.msra.mxu0 %v2299_v62  ;;  %v563_v62 = vmul.f32 %v3686_v1, %v3467_v32  ;;  %v589_v32 = vmul.f32 %v3700_v27, %v3551_v24  ;;  %v3727_v24 = vld [vmem:[#allocation11 + $0x1a8] sm:$0xff] }
 0x182   : > { %2302 = vmatprep.subr.bf16.mxu0 %v2301_v20  ;;  %v2311_v20 = vpack.c.bf16 %v578_v54, %v573_v21  ;;  %v594_v39 = vmul.f32 %v3727_v24, %v3573_v45 }
 0x183   : > { %v2307_v37 = vpack.c.bf16 %v568_v19, %v563_v62  ;;  %v2313_v40 = vpack.c.bf16 %v589_v32, %v584_v51  ;;  %v583_v19 = vmul.f32 %v3719_v22, %v3535_v10  ;;  %v5268_v62 = vmov 0.0   ;;  %v595_v10 = vld [vmem:[#allocation10] sm:$0xff]  ;;  %v674_v51 = vld [vmem:[#allocation8] sm:$0xff] }
 0x184   : > { %746 = vmatprep.mubr.f32.mxu1 %v5268_v62 }
 0x185   : > { %2304 = vmatpush1.bf16.msra.mxu0 %v5378_v33  ;;  %v2315_v50 = vpack.c.bf16 %v588_v56, %v583_v19  ;;  %v596_v33 = vld [vmem:[#allocation10 + $0x8] sm:$0xff]  ;;  %v676_v56 = vld [vmem:[#allocation10 + $0x10] sm:$0xff] }
 0x186   : > { %2306 = vmatprep.subr.bf16.mxu0 %v2305_v28  ;;  %v3731_v28 = vld [vmem:[#allocation11 + $0x1a0] sm:$0xff] }
 0x187   : > { %5379 = vst [vmem:[#allocation28_spill] sm:$0xff] %v3731_v28  ;;  %v593_v11 = vmul.f32 %v3731_v28, %v3569_v44 }
 0x189   : > { %2308 = vmatpush1.bf16.msra.mxu0 %v2307_v37 }
 0x18a   : > { %2310 = vmatprep.subr.bf16.mxu0 %v2309_v15 }
 0x18d   : > { %2312 = vmatpush1.bf16.msra.mxu0 %v2311_v20  ;;  %v677_v20 = vld [vmem:[#allocation10 + $0x18] sm:$0xff] }
 0x18e   : > { %2314 = vmatprep.subr.bf16.mxu0 %v2313_v40 }
 0x191   : > { %2316 = vmatpush1.bf16.msra.mxu0 %v2315_v50 }
 0x192   : > { %649 = vmatprep.subr.mxu0 %v594_v39 }
 0x195   : > { %650 = vmatpush1.msra.mxu0 %v593_v11 }
 0x196   : > { %662 = vmatmul.mubr.f32.vlgmr.msra.gmra.mrb[0].mxu0 %v343_v23 }
 0x269   : > { %v663_v38 = vpop.f32.mrb[0].mxu0 }
 0x26a   : > { %v664_v54 = vadd.f32 %v663_v38, %v595_v10  ;;  %v665_v37 = vpop.f32.mrb[1].mxu0  ;;  %v760_v38 = vld [vmem:[#allocation7 + $0x8] sm:$0xff] }
 0x26b   : > { %v666_v32 = vadd.f32 %v665_v37, %v596_v33 }
 0x26c   : > { %v670_v45 = vmul.f32 0.01, %v664_v54  ;;  %vm668_vm15 = vcmp.ge.f32.partialorder %v664_v54, 0.0 }
 0x26d   : > { %vm669_vm14 = vcmp.ge.f32.partialorder %v666_v32, 0.0  ;;  %v671_v15 = vmul.f32 0.01, %v666_v32 }
 0x26e   : > { %v672_v44 = vsel %vm668_vm15, %v664_v54, %v670_v45 }
 0x26f   : > { %v673_v21 = vsel %vm669_vm14, %v666_v32, %v671_v15  ;;  %vm5388_vm14 = vcmp.lt.s32.totalorder %v3417_v4, 1 }
 0x270   : > { %682 = vmatprep.subr.mxu1 %v673_v21  ;;  %vm5389_vm15 = vmmov %vm5388_vm14 }
 0x271   : > { %683 = vmatpush1.msra.mxu1 %v672_v44 }
 0x272   : > { %2255 = vmatmul.mubr.msk.f32.vlgmr.msra.gmra.mrb[0].mxu1 %vm678_vm13, %v674_v51 }
 0x273   : > { %982 = vmatprep.mubr.f32.mxu1 %v760_v38 }
 0x345   : > { %v748_v40 = vpop.f32.mrb[0].mxu1 }
 0x346   : > { %v749_v19 = vadd.f32 %v748_v40, %v676_v56  ;;  %v750_v50 = vpop.f32.mrb[1].mxu1 }
 0x347   : > { %v751_v39 = vadd.f32 %v750_v50, %v677_v20 }
 0x348   : > { %vm753_vm12 = vcmp.ge.f32.partialorder %v749_v19, 0.0  ;;  %v755_v11 = vmul.f32 0.01, %v749_v19 }
 0x349   : > { %vm754_vm11 = vcmp.ge.f32.partialorder %v751_v39, 0.0  ;;  %v756_v23 = vmul.f32 0.01, %v751_v39 }
 0x34a   : > { %v3737_v10 = vsel %vm753_vm12, %v749_v19, %v755_v11  ;;  %v5390_v11 = vld [vmem:[#allocation21_spill] sm:$0xff] }
 0x34b   : > { %v3739_v33 = vsel %vm754_vm11, %v751_v39, %v756_v23  ;;  %761 = vrot.lane.b32.xlu0 %v3737_v10, %s5270_s18  ;;  %vm5384_vm11 = vcmp.lt.s32.totalorder %v3417_v4, 7 }
 0x34c   : > { %763 = vrot.lane.b32.xlu1 %v3739_v33, %s5270_s18  ;;  %vm5385_vm12 = vmmov %vm5384_vm11 }
 0x34f   : > { %769 = vrot.lane.b32.xlu0 %v3737_v10, %s5272_s28 }
 0x350   : > { %771 = vrot.lane.b32.xlu1 %v3739_v33, %s5272_s28 }
 0x353   : > { %777 = vrot.lane.b32.xlu0 %v3737_v10, %s5274_s13 }
 0x354   : > { %779 = vrot.lane.b32.xlu1 %v3739_v33, %s5274_s13 }
 0x357   : > { %785 = vrot.lane.b32.xlu0 %v3737_v10, %s5323_s16 }
 0x358   : > { %787 = vrot.lane.b32.xlu1 %v3739_v33, %s5323_s16 }
 0x35b   : > { %793 = vrot.lane.b32.xlu0 %v3737_v10, %s5260_s25 }
 0x35c   : > { %795 = vrot.lane.b32.xlu1 %v3739_v33, %s5260_s25  ;;  %s5380_s25 = smov 9  }
 0x35f   : > { %801 = vrot.lane.b32.xlu0 %v3737_v10, %s5262_s26 }
 0x360   : > { %803 = vrot.lane.b32.xlu1 %v3739_v33, %s5262_s26  ;;  %s5381_s26 = smov 8  }
 0x363   : > { %809 = vrot.lane.b32.xlu0 %v3737_v10, %s5264_s11 }
 0x364   : > { %811 = vrot.lane.b32.xlu1 %v3739_v33, %s5264_s11  ;;  %s5382_s11 = smov 7  }
 0x367   : > { %817 = vrot.lane.b32.xlu0 %v3737_v10, %s5266_s20 }
 0x368   : > { %819 = vrot.lane.b32.xlu1 %v3739_v33, %s5266_s20  ;;  %s5383_s20 = smov 1  }
 0x36b   : > { %825 = vrot.lane.b32.xlu0 %v3737_v10, %s5321_s12 }
 0x36c   : > { %827 = vrot.lane.b32.xlu1 %v3739_v33, %s5321_s12 }
 0x36f   : > { %833 = vrot.lane.b32.xlu0 %v3737_v10, %s5380_s25 }
 0x370   : > { %835 = vrot.lane.b32.xlu1 %v3739_v33, %s5380_s25 }
 0x373   : > { %841 = vrot.lane.b32.xlu0 %v3737_v10, %s5381_s26 }
 0x374   : > { %843 = vrot.lane.b32.xlu1 %v3739_v33, %s5381_s26 }
 0x377   : > { %849 = vrot.lane.b32.xlu0 %v3737_v10, %s5382_s11 }
 0x378   : > { %851 = vrot.lane.b32.xlu1 %v3739_v33, %s5382_s11 }
 0x37b   : > { %857 = vrot.lane.b32.xlu0 %v3737_v10, %s5383_s20 }
 0x37c   : > { %859 = vrot.lane.b32.xlu1 %v3739_v33, %s5383_s20 }
 0x37f   : > { %865 = vrot.lane.b32.xlu0 %v3737_v10, %s5343_s14 }
 0x380   : > { %867 = vrot.lane.b32.xlu1 %v3739_v33, %s5343_s14 }
 0x383   : > { %873 = vrot.lane.b32.xlu0 %v3737_v10, %s5319_s9 }
 0x384   : > { %875 = vrot.lane.b32.xlu1 %v3739_v33, %s5319_s9 }
 0x387   : > { %881 = vrot.lane.b32.xlu0 %v3737_v10, %s5317_s29 }
 0x388   : > { %883 = vrot.lane.b32.xlu1 %v3739_v33, %s5317_s29 }
 0x38b   : > { %889 = vrot.lane.b32.xlu0 %v3737_v10, %s5315_s30 }
 0x38c   : > { %891 = vrot.lane.b32.xlu1 %v3739_v33, %s5315_s30 }
 0x3bd   : > { %v762_v54 = vpop.permute.xlu0 %761 }
 0x3be   : > { %v764_v37 = vpop.permute.xlu1 %763 }
 0x3bf   : > { %v765_v32 = vsel %vm351_vm1, %v762_v54, %v764_v37  ;;  %v3813_v45 = vsel %vm351_vm1, %v764_v37, %v762_v54 }
 0x3c0   : > { %v767_v51 = vmul.f32 %v3813_v45, %v3429_v13  ;;  %v768_v44 = vmul.f32 %v765_v32, %v3421_v7  ;;  %v3825_v40 = vmul.f32 %v765_v32, %v3425_v9 }
 0x3c1   : > { %v770_v15 = vpop.permute.xlu0 %769 }
 0x3c2   : > { %v772_v21 = vpop.permute.xlu1 %771 }
 0x3c3   : > { %v773_v56 = vsel %vm362_vm0, %v770_v15, %v772_v21  ;;  %v3822_v20 = vsel %vm362_vm0, %v772_v21, %v770_v15 }
 0x3c4   : > { %v775_v19 = vmul.f32 %v3822_v20, %v3431_v14  ;;  %v776_v50 = vmul.f32 %v773_v56, %v3423_v8  ;;  %v3831_v39 = vmul.f32 %v773_v56, %v3427_v12 }
 0x3c5   : > { %v778_v13 = vpop.permute.xlu0 %777 }
 0x3c6   : > { %v2319_v7 = vpack.c.bf16 %v775_v19, %v767_v51  ;;  %v780_v23 = vpop.permute.xlu1 %779  ;;  %v2317_v38 = vpack.c.bf16 %v776_v50, %v768_v44 }
 0x3c7   : > { %v3837_v9 = vsel %vm374_vm2, %v778_v13, %v780_v23  ;;  %v3841_v14 = vsel %vm374_vm2, %v780_v23, %v778_v13 }
 0x3c8   : > { %2318 = vmatprep.subr.bf16.mxu1 %v2317_v38  ;;  %v783_v32 = vmul.f32 %v3841_v14, %v3460_v30  ;;  %v784_v15 = vmul.f32 %v3837_v9, %v3463_v31 }
 0x3c9   : > { %2320 = vmatpush1.bf16.msra.mxu1 %v2319_v7  ;;  %v786_v8 = vpop.permute.xlu0 %785 }
 0x3ca   : > { %v788_v12 = vpop.permute.xlu1 %787 }
 0x3cb   : > { %v3845_v54 = vsel %vm386_vm3, %v786_v8, %v788_v12  ;;  %v3849_v37 = vsel %vm386_vm3, %v788_v12, %v786_v8 }
 0x3cc   : > { %v791_v21 = vmul.f32 %v3849_v37, %v3473_v34  ;;  %v792_v51 = vmul.f32 %v3845_v54, %v3475_v35 }
 0x3cd   : > { %v794_v44 = vpop.permute.xlu0 %793 }
 0x3ce   : > { %v2323_v56 = vpack.c.bf16 %v791_v21, %v783_v32  ;;  %v796_v19 = vpop.permute.xlu1 %795  ;;  %v2321_v50 = vpack.c.bf16 %v792_v51, %v784_v15 }
 0x3cf   : > { %v3861_v13 = vsel %vm398_vm4, %v794_v44, %v796_v19  ;;  %v3865_v30 = vsel %vm398_vm4, %v796_v19, %v794_v44 }
 0x3d0   : > { %2322 = vmatprep.subr.bf16.mxu1 %v2321_v50  ;;  %v799_v23 = vmul.f32 %v3865_v30, %v3494_v48  ;;  %v800_v38 = vmul.f32 %v3861_v13, %v3497_v49 }
 0x3d1   : > { %2324 = vmatpush1.bf16.msra.mxu1 %v2323_v56  ;;  %v802_v31 = vpop.permute.xlu0 %801 }
 0x3d2   : > { %v804_v7 = vpop.permute.xlu1 %803 }
 0x3d3   : > { %v3869_v34 = vsel %vm410_vm5, %v802_v31, %v804_v7  ;;  %v3873_v35 = vsel %vm410_vm5, %v804_v7, %v802_v31 }
 0x3d4   : > { %v807_v8 = vmul.f32 %v3873_v35, %v3507_v52  ;;  %v808_v12 = vmul.f32 %v3869_v34, %v3509_v53 }
 0x3d5   : > { %v810_v32 = vpop.permute.xlu0 %809 }
 0x3d6   : > { %v2327_v15 = vpack.c.bf16 %v807_v8, %v799_v23  ;;  %v812_v21 = vpop.permute.xlu1 %811  ;;  %v2325_v51 = vpack.c.bf16 %v808_v12, %v800_v38 }
 0x3d7   : > { %v3885_v44 = vsel %vm422_vm6, %v810_v32, %v812_v21  ;;  %v3889_v48 = vsel %vm422_vm6, %v812_v21, %v810_v32 }
 0x3d8   : > { %2326 = vmatprep.subr.bf16.mxu1 %v2325_v51  ;;  %v815_v19 = vmul.f32 %v3889_v48, %v3528_v5  ;;  %v816_v50 = vmul.f32 %v3885_v44, %v3531_v6 }
 0x3d9   : > { %2328 = vmatpush1.bf16.msra.mxu1 %v2327_v15  ;;  %v818_v49 = vpop.permute.xlu0 %817 }
 0x3da   : > { %v820_v56 = vpop.permute.xlu1 %819 }
 0x3db   : > { %v3893_v52 = vsel %vm434_vm7, %v818_v49, %v820_v56  ;;  %v3897_v53 = vsel %vm434_vm7, %v820_v56, %v818_v49 }
 0x3dc   : > { %v823_v31 = vmul.f32 %v3897_v53, %v3541_v17  ;;  %v824_v7 = vmul.f32 %v3893_v52, %v3543_v18 }
 0x3dd   : > { %v826_v23 = vpop.permute.xlu0 %825 }
 0x3de   : > { %v2331_v38 = vpack.c.bf16 %v823_v31, %v815_v19  ;;  %v828_v8 = vpop.permute.xlu1 %827  ;;  %v2329_v12 = vpack.c.bf16 %v824_v7, %v816_v50 }
 0x3df   : > { %v3909_v32 = vsel %vm446_vm8, %v826_v23, %v828_v8  ;;  %v3913_v5 = vsel %vm446_vm8, %v828_v8, %v826_v23 }
 0x3e0   : > { %2330 = vmatprep.subr.bf16.mxu1 %v2329_v12  ;;  %v831_v21 = vmul.f32 %v3913_v5, %v3562_v42  ;;  %v832_v51 = vmul.f32 %v3909_v32, %v3565_v43 }
 0x3e1   : > { %2332 = vmatpush1.bf16.msra.mxu1 %v2331_v38  ;;  %v834_v6 = vpop.permute.xlu0 %833 }
 0x3e2   : > { %v836_v15 = vpop.permute.xlu1 %835 }
 0x3e3   : > { %v837_v17 = vsel %vm458_vm9, %v834_v6, %v836_v15  ;;  %v838_v18 = vsel %vm458_vm9, %v836_v15, %v834_v6 }
 0x3e4   : > { %v839_v49 = vmul.f32 %v838_v18, %v3575_v46  ;;  %v840_v56 = vmul.f32 %v837_v17, %v3577_v47  ;;  %v5386_v18 = vld [vmem:[#allocation19_spill] sm:$0xff] }
 0x3e5   : > { %v842_v19 = vpop.permute.xlu0 %841 }
 0x3e6   : > { %v2335_v50 = vpack.c.bf16 %v839_v49, %v831_v21  ;;  %v844_v31 = vpop.permute.xlu1 %843  ;;  %v2333_v7 = vpack.c.bf16 %v840_v56, %v832_v51  ;;  %v5387_v51 = vld [vmem:[#allocation20_spill] sm:$0xff] }
 0x3e7   : > { %v845_v23 = vsel %vm470_vm10, %v842_v19, %v844_v31  ;;  %v846_v38 = vsel %vm470_vm10, %v844_v31, %v842_v19 }
 0x3e8   : > { %2334 = vmatprep.subr.bf16.mxu1 %v2333_v7  ;;  %v847_v15 = vmul.f32 %v846_v38, %v3590_v25  ;;  %v848_v17 = vmul.f32 %v845_v23, %v3593_v26 }
 0x3e9   : > { %2336 = vmatpush1.bf16.msra.mxu1 %v2335_v50  ;;  %v850_v42 = vpop.permute.xlu0 %849 }
 0x3ea   : > { %v852_v8 = vpop.permute.xlu1 %851 }
 0x3eb   : > { %v853_v12 = vsel %vm5384_vm11, %v850_v42, %v852_v8  ;;  %v854_v6 = vsel %vm5385_vm12, %v852_v8, %v850_v42  ;;  %v5391_v8 = vld [vmem:[#allocation22_spill] sm:$0xff]  ;;  %vm5392_vm11 = vcmp.lt.s32.totalorder %v3417_v4, 127 }
 0x3ec   : > { %v855_v21 = vmul.f32 %v854_v6, %v5386_v18  ;;  %v856_v49 = vmul.f32 %v853_v12, %v5387_v51  ;;  %vm5393_vm12 = vmmov %vm5392_vm11 }
 0x3ed   : > { %v858_v56 = vpop.permute.xlu0 %857 }
 0x3ee   : > { %v2339_v7 = vpack.c.bf16 %v855_v21, %v847_v15  ;;  %v860_v19 = vpop.permute.xlu1 %859  ;;  %v2337_v50 = vpack.c.bf16 %v856_v49, %v848_v17 }
 0x3ef   : > { %v861_v31 = vsel %vm5388_vm14, %v858_v56, %v860_v19  ;;  %v862_v62 = vsel %vm5389_vm15, %v860_v19, %v858_v56  ;;  %vm5394_vm14 = vcmp.lt.s32.totalorder %v3417_v4, 121  ;;  %v5396_v19 = vld [vmem:[#allocation23_spill] sm:$0xff] }
 0x3f0   : > { %v863_v42 = vmul.f32 %v862_v62, %v5390_v11  ;;  %v864_v38 = vmul.f32 %v861_v31, %v5391_v8  ;;  %2338 = vmatprep.subr.bf16.mxu1 %v2337_v50  ;;  %vm5395_vm15 = vmmov %vm5394_vm14  ;;  %v5397_v50 = vld [vmem:[#allocation24_spill] sm:$0xff] }
 0x3f1   : > { %2340 = vmatpush1.bf16.msra.mxu1 %v2339_v7  ;;  %v866_v23 = vpop.permute.xlu0 %865 }
 0x3f2   : > { %v2343_v6 = vpack.c.bf16 %v3737_v10, %v863_v42  ;;  %v868_v12 = vpop.permute.xlu1 %867  ;;  %v2341_v15 = vpack.c.bf16 %v3739_v33, %v864_v38  ;;  %v5398_v42 = vld [vmem:[#allocation25_spill] sm:$0xff] }
 0x3f3   : > { %v869_v17 = vsel %vm5392_vm11, %v866_v23, %v868_v12  ;;  %v870_v21 = vsel %vm5393_vm12, %v868_v12, %v866_v23  ;;  %vm5399_vm11 = vcmp.lt.s32.totalorder %v3417_v4, 120 }
 0x3f4   : > { %2342 = vmatprep.subr.bf16.mxu1 %v2341_v15  ;;  %v871_v10 = vmul.f32 %v869_v17, %v3625_v59  ;;  %v872_v33 = vmul.f32 %v870_v21, %v5396_v19  ;;  %vm5400_vm12 = vmmov %vm5399_vm11 }
 0x3f5   : > { %2344 = vmatpush1.bf16.msra.mxu1 %v2343_v6  ;;  %v874_v49 = vpop.permute.xlu0 %873 }
 0x3f6   : > { %v876_v62 = vpop.permute.xlu1 %875 }
 0x3f7   : > { %v877_v56 = vsel %vm5394_vm14, %v874_v49, %v876_v62  ;;  %v878_v7 = vsel %vm5395_vm15, %v876_v62, %v874_v49  ;;  %v5401_v62 = vld [vmem:[#allocation26_spill] sm:$0xff]  ;;  %vm5402_vm14 = vcmp.lt.s32.totalorder %v3417_v4, 119 }
 0x3f8   : > { %v879_v31 = vmul.f32 %v877_v56, %v5397_v50  ;;  %v880_v38 = vmul.f32 %v878_v7, %v5398_v42  ;;  %v900_v21 = vmul.f32 %v3822_v20, %v5401_v62  ;;  %vm5403_vm15 = vmmov %vm5402_vm14  ;;  %v904_v20 = vmul.f32 %v3849_v37, %v3676_v3 }
 0x3f9   : > { %v882_v15 = vpop.permute.xlu0 %881  ;;  %v5405_v37 = vpack.c.bf16 %v3831_v39, %v3825_v40  ;;  %v910_v40 = vmul.f32 %v3889_v48, %v3711_v57  ;;  %v913_v48 = vmul.f32 %v3909_v32, %v3731_v28  ;;  %v993_v32 = vld [vmem:[#allocation5 + $0x18] sm:$0xff] }
 0x3fa   : > { %v2347_v8 = vpack.c.bf16 %v879_v31, %v871_v10  ;;  %v884_v23 = vpop.permute.xlu1 %883  ;;  %v2345_v6 = vpack.c.bf16 %v880_v38, %v872_v33  ;;  %1215 = vmatprep.mubr.f32.mxu0 %v993_v32 }
 0x3fb   : > { %v885_v12 = vsel %vm5399_vm11, %v882_v15, %v884_v23  ;;  %v886_v11 = vsel %vm5400_vm12, %v884_v23, %v882_v15  ;;  %vm5429_vm11 = vcmp.lt.s32.totalorder %v3417_v4, 7 }
 0x3fc   : > { %2346 = vmatprep.subr.bf16.mxu1 %v2345_v6  ;;  %v887_v10 = vmul.f32 %v885_v12, %v3651_v36  ;;  %v888_v33 = vmul.f32 %v886_v11, %v3654_v61  ;;  %v902_v12 = vmul.f32 %v3841_v14, %v3678_v60  ;;  %v903_v11 = vmul.f32 %v3845_v54, %v3680_v16  ;;  %vm5430_vm12 = vmmov %vm5429_vm11 }
 0x3fd   : > { %2348 = vmatpush1.bf16.msra.mxu1 %v2347_v8  ;;  %v890_v49 = vpop.permute.xlu0 %889  ;;  %v5404_v8 = vld [vmem:[#allocation27_spill] sm:$0xff]  ;;  %v912_v54 = vmul.f32 %v3897_v53, %v3700_v27 }
 0x3fe   : > { %v892_v17 = vpop.permute.xlu1 %891  ;;  %v898_v15 = vmul.f32 %v3813_v45, %v5404_v8  ;;  %v901_v45 = vmul.f32 %v3837_v9, %v3686_v1  ;;  %v911_v9 = vmul.f32 %v3893_v52, %v3713_v55  ;;  %v916_v52 = vld [vmem:[#allocation10 + $0x20] sm:$0xff] }
 0x3ff   : > { %v893_v56 = vsel %vm5402_vm14, %v890_v49, %v892_v17  ;;  %v894_v7 = vsel %vm5403_vm15, %v892_v17, %v890_v49  ;;  %v908_v49 = vmul.f32 %v3873_v35, %v3684_v2  ;;  %v2357_v17 = vpack.c.bf16 %v904_v20, %v902_v12 }
 0x400   : > { %v895_v31 = vmul.f32 %v893_v56, %v3660_v0  ;;  %v896_v38 = vmul.f32 %v894_v7, %v3662_v29  ;;  %v2353_v62 = vpack.c.bf16 %v900_v21, %v898_v15  ;;  %v906_v21 = vmul.f32 %v3865_v30, %v3692_v41  ;;  %v759_v7 = vld [vmem:[#allocation7] sm:$0xff] }
 0x401   : > { %v2359_v14 = vpack.c.bf16 %v903_v11, %v901_v45  ;;  %v905_v56 = vmul.f32 %v3861_v13, %v3705_v63  ;;  %v2365_v30 = vpack.c.bf16 %v912_v54, %v910_v40  ;;  %v914_v13 = vmul.f32 %v3913_v5, %v3727_v24  ;;  %v2696_v15 = vld [vmem:[%s3325_s10] sm:$0xff] }
 0x402   : > { %v2351_v23 = vpack.c.bf16 %v895_v31, %v887_v10  ;;  %v2349_v6 = vpack.c.bf16 %v896_v38, %v888_v33  ;;  %v2361_v35 = vpack.c.bf16 %v908_v49, %v906_v21  ;;  %v917_v10 = vld [vmem:[#allocation10 + $0x28] sm:$0xff]  ;;  %vm5431_vm14 = vcmp.lt.s32.totalorder %v3417_v4, 1 }
 0x403   : > { %vm5432_vm15 = vmmov %vm5431_vm14 }
 0x404   : > { %2350 = vmatprep.subr.bf16.mxu1 %v2349_v6  ;;  %v2697_v6 = vld [vmem:[%s3325_s10 + $0x8] sm:$0xff]  ;;  %s5406_s10 = smov 64  }
 0x405   : > { %2352 = vmatpush1.bf16.msra.mxu1 %v2351_v23 }
 0x406   : > { %2354 = vmatprep.subr.bf16.mxu1 %v2353_v62  ;;  %v907_v62 = vmul.f32 %v3869_v34, %v3694_v58  ;;  %v909_v34 = vmul.f32 %v3885_v44, %v3719_v22 }
 0x408   : > { %v2363_v39 = vpack.c.bf16 %v907_v62, %v905_v56  ;;  %v2367_v53 = vpack.c.bf16 %v911_v9, %v909_v34  ;;  %v4097_v56 = vld [vmem:[#allocation11 + $0x120] sm:$0xff] }
 0x409   : > { %2356 = vmatpush1.bf16.msra.mxu1 %v5405_v37  ;;  %v4084_v37 = vld [vmem:[#allocation11] sm:$0xff]  ;;  %5412 = vst [vmem:[#allocation23_spill] sm:$0xff] %v4097_v56 }
 0x40a   : > { %2358 = vmatprep.subr.bf16.mxu1 %v2357_v17  ;;  %5410 = vst [vmem:[#allocation19_spill] sm:$0xff] %v4084_v37 }
 0x40d   : > { %2360 = vmatpush1.bf16.msra.mxu1 %v2359_v14  ;;  %v4088_v14 = vld [vmem:[#allocation11 + $0x8] sm:$0xff] }
 0x40e   : > { %2362 = vmatprep.subr.bf16.mxu1 %v2361_v35  ;;  %5411 = vst [vmem:[#allocation20_spill] sm:$0xff] %v4088_v14 }
 0x411   : > { %2364 = vmatpush1.bf16.msra.mxu1 %v2363_v39  ;;  %v4102_v39 = vld [vmem:[#allocation11 + $0x10] sm:$0xff] }
 0x412   : > { %2366 = vmatprep.subr.bf16.mxu1 %v2365_v30  ;;  %5413 = vst [vmem:[#allocation24_spill] sm:$0xff] %v4102_v39  ;;  %v4106_v30 = vld [vmem:[#allocation11 + $0x18] sm:$0xff] }
 0x413   : > { %5414 = vst [vmem:[#allocation25_spill] sm:$0xff] %v4106_v30 }
 0x415   : > { %2368 = vmatpush1.bf16.msra.mxu1 %v2367_v53  ;;  %v4109_v53 = vld [vmem:[#allocation11 + $0x130] sm:$0xff] }
 0x416   : > { %970 = vmatprep.subr.mxu1 %v914_v13  ;;  %5415 = vst [vmem:[#allocation27_spill] sm:$0xff] %v4109_v53 }
 0x419   : > { %971 = vmatpush1.msra.mxu1 %v913_v48 }
 0x41a   : > { %983 = vmatmul.mubr.f32.vlgmr.msra.gmra.mrb[2].mxu1 %v759_v7 }
 0x4ed   : > { %v984_v33 = vpop.f32.mrb[2].mxu1 }
 0x4ee   : > { %v985_v44 = vadd.f32 %v984_v33, %v916_v52  ;;  %v986_v31 = vpop.f32.mrb[3].mxu1 }
 0x4ef   : > { %v987_v38 = vadd.f32 %v986_v31, %v917_v10 }
 0x4f0   : > { %v4005_v23 = vadd.f32 %v2696_v15, %v985_v44 }
 0x4f1   : > { %v4008_v20 = vadd.f32 %v2697_v6, %v987_v38 }
 0x4f2   : > { %994 = vrot.lane.b32.xlu0 %v4005_v23, %s5270_s18 }
 0x4f3   : > { %996 = vrot.lane.b32.xlu1 %v4008_v20, %s5270_s18  ;;  %s5407_s18 = smov 63  }
 0x4f6   : > { %1002 = vrot.lane.b32.xlu0 %v4005_v23, %s5272_s28 }
 0x4f7   : > { %1004 = vrot.lane.b32.xlu1 %v4008_v20, %s5272_s28  ;;  %s5408_s28 = smov 57  }
 0x4fa   : > { %1010 = vrot.lane.b32.xlu0 %v4005_v23, %s5274_s13 }
 0x4fb   : > { %1012 = vrot.lane.b32.xlu1 %v4008_v20, %s5274_s13  ;;  %s5409_s13 = smov 56  }
 0x4fe   : > { %1018 = vrot.lane.b32.xlu0 %v4005_v23, %s5323_s16 }
 0x4ff   : > { %1020 = vrot.lane.b32.xlu1 %v4008_v20, %s5323_s16 }
 0x502   : > { %1026 = vrot.lane.b32.xlu0 %v4005_v23, %s5406_s10 }
 0x503   : > { %1028 = vrot.lane.b32.xlu1 %v4008_v20, %s5406_s10 }
 0x506   : > { %1034 = vrot.lane.b32.xlu0 %v4005_v23, %s5407_s18 }
 0x507   : > { %1036 = vrot.lane.b32.xlu1 %v4008_v20, %s5407_s18 }
 0x50a   : > { %1042 = vrot.lane.b32.xlu0 %v4005_v23, %s5408_s28 }
 0x50b   : > { %1044 = vrot.lane.b32.xlu1 %v4008_v20, %s5408_s28 }
 0x50e   : > { %1050 = vrot.lane.b32.xlu0 %v4005_v23, %s5409_s13 }
 0x50f   : > { %1052 = vrot.lane.b32.xlu1 %v4008_v20, %s5409_s13 }
 0x512   : > { %1058 = vrot.lane.b32.xlu0 %v4005_v23, %s5321_s12 }
 0x513   : > { %1060 = vrot.lane.b32.xlu1 %v4008_v20, %s5321_s12 }
 0x516   : > { %1066 = vrot.lane.b32.xlu0 %v4005_v23, %s5380_s25 }
 0x517   : > { %1068 = vrot.lane.b32.xlu1 %v4008_v20, %s5380_s25 }
 0x51a   : > { %1074 = vrot.lane.b32.xlu0 %v4005_v23, %s5381_s26 }
 0x51b   : > { %1076 = vrot.lane.b32.xlu1 %v4008_v20, %s5381_s26 }
 0x51e   : > { %1082 = vrot.lane.b32.xlu0 %v4005_v23, %s5382_s11 }
 0x51f   : > { %1084 = vrot.lane.b32.xlu1 %v4008_v20, %s5382_s11 }
 0x522   : > { %1090 = vrot.lane.b32.xlu0 %v4005_v23, %s5383_s20 }
 0x523   : > { %1092 = vrot.lane.b32.xlu1 %v4008_v20, %s5383_s20 }
 0x526   : > { %1098 = vrot.lane.b32.xlu0 %v4005_v23, %s5343_s14 }
 0x527   : > { %1100 = vrot.lane.b32.xlu1 %v4008_v20, %s5343_s14 }
 0x52a   : > { %1106 = vrot.lane.b32.xlu0 %v4005_v23, %s5319_s9 }
 0x52b   : > { %1108 = vrot.lane.b32.xlu1 %v4008_v20, %s5319_s9  ;;  %s5449_s9 = smov 71  }
 0x52e   : > { %1114 = vrot.lane.b32.xlu0 %v4005_v23, %s5317_s29 }
 0x52f   : > { %1116 = vrot.lane.b32.xlu1 %v4008_v20, %s5317_s29  ;;  %s5448_s29 = smov 72  }
 0x532   : > { %1122 = vrot.lane.b32.xlu0 %v4005_v23, %s5315_s30 }
 0x533   : > { %1124 = vrot.lane.b32.xlu1 %v4008_v20, %s5315_s30  ;;  %s5447_s30 = smov 73  }
 0x564   : > { %v995_v5 = vpop.permute.xlu0 %994 }
 0x565   : > { %v997_v12 = vpop.permute.xlu1 %996 }
 0x566   : > { %v998_v11 = vsel %vm351_vm1, %v995_v5, %v997_v12  ;;  %v4082_v49 = vsel %vm351_vm1, %v997_v12, %v995_v5  ;;  %v4132_v5 = vld [vmem:[#allocation11 + $0x20] sm:$0xff] }
 0x567   : > { %v1000_v21 = vmul.f32 %v4084_v37, %v4082_v49  ;;  %v1001_v62 = vmul.f32 %v4088_v14, %v998_v11  ;;  %v4100_v40 = vmul.f32 %v4097_v56, %v998_v11  ;;  %5416 = vst [vmem:[#allocation29_spill] sm:$0xff] %v4132_v5  ;;  %v4136_v11 = vld [vmem:[#allocation11 + $0x28] sm:$0xff] }
 0x568   : > { %v1003_v17 = vpop.permute.xlu0 %1002  ;;  %5417 = vst [vmem:[#allocation30_spill] sm:$0xff] %v4136_v11 }
 0x569   : > { %v1005_v45 = vpop.permute.xlu1 %1004 }
 0x56a   : > { %v1006_v54 = vsel %vm362_vm0, %v1003_v17, %v1005_v45  ;;  %v4095_v35 = vsel %vm362_vm0, %v1005_v45, %v1003_v17  ;;  %v4140_v45 = vld [vmem:[#allocation11 + $0x30] sm:$0xff] }
 0x56b   : > { %v1008_v9 = vmul.f32 %v4102_v39, %v4095_v35  ;;  %v1009_v34 = vmul.f32 %v4106_v30, %v1006_v54  ;;  %v4112_v13 = vmul.f32 %v4109_v53, %v1006_v54  ;;  %5418 = vst [vmem:[#allocation31_spill] sm:$0xff] %v4140_v45 }
 0x56c   : > { %v1011_v48 = vpop.permute.xlu0 %1010 }
 0x56d   : > { %v2371_v7 = vpack.c.bf16 %v1008_v9, %v1000_v21  ;;  %v1013_v10 = vpop.permute.xlu1 %1012  ;;  %v2369_v33 = vpack.c.bf16 %v1009_v34, %v1001_v62  ;;  %v4144_v62 = vld [vmem:[#allocation11 + $0x38] sm:$0xff] }
 0x56e   : > { %v4118_v44 = vsel %vm374_vm2, %v1011_v48, %v1013_v10  ;;  %v4122_v31 = vsel %vm374_vm2, %v1013_v10, %v1011_v48  ;;  %5419 = vst [vmem:[#allocation32_spill] sm:$0xff] %v4144_v62 }
 0x56f   : > { %2370 = vmatprep.subr.bf16.mxu0 %v2369_v33  ;;  %v1016_v12 = vmul.f32 %v4132_v5, %v4122_v31  ;;  %v1017_v17 = vmul.f32 %v4136_v11, %v4118_v44 }
 0x570   : > { %2372 = vmatpush1.bf16.msra.mxu0 %v2371_v7  ;;  %v1019_v38 = vpop.permute.xlu0 %1018 }
 0x571   : > { %v1021_v15 = vpop.permute.xlu1 %1020 }
 0x572   : > { %v4126_v6 = vsel %vm386_vm3, %v1019_v38, %v1021_v15  ;;  %v4130_v32 = vsel %vm386_vm3, %v1021_v15, %v1019_v38 }
 0x573   : > { %v1024_v21 = vmul.f32 %v4140_v45, %v4130_v32  ;;  %v1025_v54 = vmul.f32 %v4144_v62, %v4126_v6 }
 0x574   : > { %v1027_v9 = vpop.permute.xlu0 %1026 }
 0x575   : > { %v2375_v34 = vpack.c.bf16 %v1024_v21, %v1016_v12  ;;  %v1029_v48 = vpop.permute.xlu1 %1028  ;;  %v2373_v7 = vpack.c.bf16 %v1025_v54, %v1017_v17  ;;  %v4164_v17 = vld [vmem:[#allocation11 + $0x40] sm:$0xff]  ;;  %v4168_v54 = vld [vmem:[#allocation11 + $0x48] sm:$0xff] }
 0x576   : > { %v4150_v10 = vsel %vm398_vm4, %v1027_v9, %v1029_v48  ;;  %v4154_v33 = vsel %vm398_vm4, %v1029_v48, %v1027_v9  ;;  %5420 = vst [vmem:[#allocation33_spill] sm:$0xff] %v4164_v17  ;;  %5421 = vst [vmem:[#allocation34_spill] sm:$0xff] %v4168_v54 }
 0x577   : > { %2374 = vmatprep.subr.bf16.mxu0 %v2373_v7  ;;  %v1032_v21 = vmul.f32 %v4164_v17, %v4154_v33  ;;  %v1033_v9 = vmul.f32 %v4168_v54, %v4150_v10  ;;  %v4176_v7 = vld [vmem:[#allocation11 + $0x58] sm:$0xff] }
 0x578   : > { %2376 = vmatpush1.bf16.msra.mxu0 %v2375_v34  ;;  %v1035_v38 = vpop.permute.xlu0 %1034  ;;  %v4172_v34 = vld [vmem:[#allocation11 + $0x50] sm:$0xff]  ;;  %5423 = vst [vmem:[#allocation36_spill] sm:$0xff] %v4176_v7 }
 0x579   : > { %v1037_v15 = vpop.permute.xlu1 %1036  ;;  %5422 = vst [vmem:[#allocation35_spill] sm:$0xff] %v4172_v34 }
 0x57a   : > { %v4158_v52 = vsel %vm410_vm5, %v1035_v38, %v1037_v15  ;;  %v4162_v12 = vsel %vm410_vm5, %v1037_v15, %v1035_v38 }
 0x57b   : > { %v1040_v48 = vmul.f32 %v4172_v34, %v4162_v12  ;;  %v1041_v38 = vmul.f32 %v4176_v7, %v4158_v52 }
 0x57c   : > { %v1043_v15 = vpop.permute.xlu0 %1042 }
 0x57d   : > { %v2379_v62 = vpack.c.bf16 %v1040_v48, %v1032_v21  ;;  %v1045_v45 = vpop.permute.xlu1 %1044  ;;  %v2377_v11 = vpack.c.bf16 %v1041_v38, %v1033_v9  ;;  %v4200_v48 = vld [vmem:[#allocation11 + $0x68] sm:$0xff] }
 0x57e   : > { %v4182_v17 = vsel %vm422_vm6, %v1043_v15, %v1045_v45  ;;  %v4186_v54 = vsel %vm422_vm6, %v1045_v45, %v1043_v15  ;;  %5425 = vst [vmem:[#allocation38_spill] sm:$0xff] %v4200_v48  ;;  %v4208_v15 = vld [vmem:[#allocation11 + $0x78] sm:$0xff] }
 0x57f   : > { %2378 = vmatprep.subr.bf16.mxu0 %v2377_v11  ;;  %v4196_v11 = vld [vmem:[#allocation11 + $0x60] sm:$0xff]  ;;  %v1049_v45 = vmul.f32 %v4200_v48, %v4182_v17  ;;  %5427 = vst [vmem:[#allocation40_spill] sm:$0xff] %v4208_v15 }
 0x580   : > { %2380 = vmatpush1.bf16.msra.mxu0 %v2379_v62  ;;  %v1051_v34 = vpop.permute.xlu0 %1050  ;;  %5424 = vst [vmem:[#allocation37_spill] sm:$0xff] %v4196_v11  ;;  %v1048_v9 = vmul.f32 %v4196_v11, %v4186_v54  ;;  %v4204_v62 = vld [vmem:[#allocation11 + $0x70] sm:$0xff] }
 0x581   : > { %v1053_v5 = vpop.permute.xlu1 %1052  ;;  %5426 = vst [vmem:[#allocation39_spill] sm:$0xff] %v4204_v62 }
 0x582   : > { %v4190_v53 = vsel %vm434_vm7, %v1051_v34, %v1053_v5  ;;  %v4194_v21 = vsel %vm434_vm7, %v1053_v5, %v1051_v34 }
 0x583   : > { %v1056_v38 = vmul.f32 %v4204_v62, %v4194_v21  ;;  %v1057_v5 = vmul.f32 %v4208_v15, %v4190_v53 }
 0x584   : > { %v1059_v34 = vpop.permute.xlu0 %1058 }
 0x585   : > { %v2383_v7 = vpack.c.bf16 %v1056_v38, %v1048_v9  ;;  %v1061_v30 = vpop.permute.xlu1 %1060  ;;  %v2381_v39 = vpack.c.bf16 %v1057_v5, %v1049_v45  ;;  %v4224_v38 = vld [vmem:[#allocation11 + $0x80] sm:$0xff] }
 0x586   : > { %v4214_v11 = vsel %vm446_vm8, %v1059_v34, %v1061_v30  ;;  %v4218_v48 = vsel %vm446_vm8, %v1061_v30, %v1059_v34  ;;  %5428 = vst [vmem:[#allocation41_spill] sm:$0xff] %v4224_v38 }
 0x587   : > { %2382 = vmatprep.subr.bf16.mxu0 %v2381_v39  ;;  %v1064_v39 = vmul.f32 %v4224_v38, %v4218_v48  ;;  %v1065_v45 = vmul.f32 %v4214_v11, %v3565_v43 }
 0x588   : > { %2384 = vmatpush1.bf16.msra.mxu0 %v2383_v7  ;;  %v1067_v62 = vpop.permute.xlu0 %1066 }
 0x589   : > { %v1069_v56 = vpop.permute.xlu1 %1068 }
 0x58a   : > { %v1070_v14 = vsel %vm458_vm9, %v1067_v62, %v1069_v56  ;;  %v1071_v9 = vsel %vm458_vm9, %v1069_v56, %v1067_v62 }
 0x58b   : > { %v1072_v30 = vmul.f32 %v1071_v9, %v3575_v46  ;;  %v1073_v7 = vmul.f32 %v1070_v14, %v3577_v47 }
 0x58c   : > { %v1075_v5 = vpop.permute.xlu0 %1074 }
 0x58d   : > { %v2387_v34 = vpack.c.bf16 %v1072_v30, %v1064_v39  ;;  %v1077_v15 = vpop.permute.xlu1 %1076  ;;  %v2385_v37 = vpack.c.bf16 %v1073_v7, %v1065_v45 }
 0x58e   : > { %v1078_v56 = vsel %vm470_vm10, %v1075_v5, %v1077_v15  ;;  %v1079_v62 = vsel %vm470_vm10, %v1077_v15, %v1075_v5 }
 0x58f   : > { %2386 = vmatprep.subr.bf16.mxu0 %v2385_v37  ;;  %v1080_v47 = vmul.f32 %v1079_v62, %v3590_v25  ;;  %v1081_v14 = vmul.f32 %v1078_v56, %v3593_v26 }
 0x590   : > { %2388 = vmatpush1.bf16.msra.mxu0 %v2387_v34  ;;  %v1083_v38 = vpop.permute.xlu0 %1082  ;;  %v5433_v34 = vld [vmem:[#allocation21_spill] sm:$0xff] }
 0x591   : > { %v1085_v28 = vpop.permute.xlu1 %1084 }
 0x592   : > { %v1086_v43 = vsel %vm5429_vm11, %v1083_v38, %v1085_v28  ;;  %v1087_v46 = vsel %vm5430_vm12, %v1085_v28, %v1083_v38  ;;  %v5434_v38 = vld [vmem:[#allocation22_spill] sm:$0xff]  ;;  %vm5435_vm11 = vcmp.lt.s32.totalorder %v3417_v4, 127 }
 0x593   : > { %v1088_v37 = vmul.f32 %v1087_v46, %v5386_v18  ;;  %v1089_v9 = vmul.f32 %v1086_v43, %v5387_v51  ;;  %vm5436_vm12 = vmmov %vm5435_vm11 }
 0x594   : > { %v1091_v39 = vpop.permute.xlu0 %1090 }
 0x595   : > { %v2391_v45 = vpack.c.bf16 %v1088_v37, %v1080_v47  ;;  %v1093_v15 = vpop.permute.xlu1 %1092  ;;  %v2389_v30 = vpack.c.bf16 %v1089_v9, %v1081_v14 }
 0x596   : > { %v1094_v7 = vsel %vm5431_vm14, %v1091_v39, %v1093_v15  ;;  %v1095_v5 = vsel %vm5432_vm15, %v1093_v15, %v1091_v39  ;;  %vm5437_vm14 = vcmp.lt.s32.totalorder %v3417_v4, 121 }
 0x597   : > { %v1096_v28 = vmul.f32 %v1095_v5, %v5433_v34  ;;  %v1097_v25 = vmul.f32 %v1094_v7, %v5434_v38  ;;  %2390 = vmatprep.subr.bf16.mxu0 %v2389_v30  ;;  %vm5438_vm15 = vmmov %vm5437_vm14 }
 0x598   : > { %2392 = vmatpush1.bf16.msra.mxu0 %v2391_v45  ;;  %v1099_v26 = vpop.permute.xlu0 %1098 }
 0x599   : > { %v2395_v18 = vpack.c.bf16 %v4005_v23, %v1096_v28  ;;  %v1101_v51 = vpop.permute.xlu1 %1100  ;;  %v2393_v56 = vpack.c.bf16 %v4008_v20, %v1097_v25 }
 0x59a   : > { %v1102_v62 = vsel %vm5435_vm11, %v1099_v26, %v1101_v51  ;;  %v1103_v43 = vsel %vm5436_vm12, %v1101_v51, %v1099_v26  ;;  %vm5439_vm11 = vcmp.lt.s32.totalorder %v3417_v4, 120  ;;  %v5441_v26 = vld [vmem:[#allocation26_spill] sm:$0xff] }
 0x59b   : > { %2394 = vmatprep.subr.bf16.mxu0 %v2393_v56  ;;  %v1104_v9 = vmul.f32 %v1102_v62, %v3625_v59  ;;  %v1105_v39 = vmul.f32 %v1103_v43, %v5396_v19  ;;  %vm5440_vm12 = vmmov %vm5439_vm11  ;;  %v1133_v19 = vmul.f32 %v4095_v35, %v5441_v26  ;;  %v1131_v43 = vmul.f32 %v4082_v49, %v5404_v8 }
 0x59c   : > { %2396 = vmatpush1.bf16.msra.mxu0 %v2395_v18  ;;  %v1107_v46 = vpop.permute.xlu0 %1106  ;;  %v1137_v35 = vmul.f32 %v4130_v32, %v3676_v3  ;;  %v1134_v8 = vmul.f32 %v4118_v44, %v3686_v1  ;;  %v5444_v3 = vpack.c.bf16 %v4112_v13, %v4100_v40  ;;  %v1139_v49 = vmul.f32 %v4154_v33, %v3692_v41  ;;  %v992_v44 = vld [vmem:[#allocation5 + $0x10] sm:$0xff] }
 0x59d   : > { %v1109_v47 = vpop.permute.xlu1 %1108  ;;  %v1143_v1 = vmul.f32 %v4186_v54, %v3711_v57  ;;  %v1144_v41 = vmul.f32 %v4190_v53, %v3713_v55  ;;  %v5446_v32 = vmov 0.0   ;;  %v1149_v55 = vld [vmem:[#allocation10 + $0x30] sm:$0xff]  ;;  %v1150_v53 = vld [vmem:[#allocation10 + $0x38] sm:$0xff] }
 0x59e   : > { %v1110_v14 = vsel %vm5437_vm14, %v1107_v46, %v1109_v47  ;;  %v1111_v37 = vsel %vm5438_vm15, %v1109_v47, %v1107_v46  ;;  %vm5442_vm14 = vcmp.lt.s32.totalorder %v3417_v4, 119 }
 0x59f   : > { %v1112_v45 = vmul.f32 %v1110_v14, %v5397_v50  ;;  %v1113_v15 = vmul.f32 %v1111_v37, %v5398_v42  ;;  %vm5443_vm15 = vmmov %vm5442_vm14  ;;  %v2405_v14 = vpack.c.bf16 %v1133_v19, %v1131_v43  ;;  %v1232_v37 = vld [vmem:[#allocation10 + $0x48] sm:$0xff] }
 0x5a0   : > { %v1115_v30 = vpop.permute.xlu0 %1114 }
 0x5a1   : > { %v2399_v7 = vpack.c.bf16 %v1112_v45, %v1104_v9  ;;  %v1117_v5 = vpop.permute.xlu1 %1116  ;;  %v2397_v34 = vpack.c.bf16 %v1113_v15, %v1105_v39 }
 0x5a2   : > { %v1118_v28 = vsel %vm5439_vm11, %v1115_v30, %v1117_v5  ;;  %v1119_v38 = vsel %vm5440_vm12, %v1117_v5, %v1115_v30 }
 0x5a3   : > { %2398 = vmatprep.subr.bf16.mxu0 %v2397_v34  ;;  %v1120_v18 = vmul.f32 %v1118_v28, %v3651_v36  ;;  %v1121_v51 = vmul.f32 %v1119_v38, %v3654_v61  ;;  %v1135_v36 = vmul.f32 %v4122_v31, %v3678_v60  ;;  %v1136_v61 = vmul.f32 %v4126_v6, %v3680_v16  ;;  %v1315_v28 = vld [vmem:[#allocation7 + $0x18] sm:$0xff] }
 0x5a4   : > { %2400 = vmatpush1.bf16.msra.mxu0 %v2399_v7  ;;  %v1123_v25 = vpop.permute.xlu0 %1122  ;;  %v1140_v31 = vmul.f32 %v4158_v52, %v3694_v58  ;;  %v1145_v16 = vmul.f32 %v4194_v21, %v3700_v27  ;;  %v1138_v6 = vmul.f32 %v4150_v10, %v3705_v63  ;;  %v1142_v58 = vmul.f32 %v4182_v17, %v3719_v22  ;;  %v5445_v63 = vld [vmem:[#allocation28_spill] sm:$0xff]  ;;  %v1229_v21 = vld [vmem:[#allocation8 + $0x8] sm:$0xff] }
 0x5a5   : > { %v1125_v59 = vpop.permute.xlu1 %1124  ;;  %v2411_v60 = vpack.c.bf16 %v1136_v61, %v1134_v8  ;;  %v1147_v52 = vmul.f32 %v4218_v48, %v3727_v24  ;;  %v1146_v57 = vmul.f32 %v4214_v11, %v5445_v63  ;;  %v1231_v11 = vld [vmem:[#allocation10 + $0x40] sm:$0xff]  ;;  %1537 = vmatprep.mubr.f32.mxu1 %v1315_v28 }
 0x5a6   : > { %v1126_v50 = vsel %vm5442_vm14, %v1123_v25, %v1125_v59  ;;  %v1127_v42 = vsel %vm5443_vm15, %v1125_v59, %v1123_v25  ;;  %v2415_v40 = vpack.c.bf16 %v1140_v31, %v1138_v6  ;;  %v2417_v13 = vpack.c.bf16 %v1145_v16, %v1143_v1  ;;  %v5461_v63 = vld [vmem:[#allocation31_spill] sm:$0xff] }
 0x5a7   : > { %v1128_v56 = vmul.f32 %v1126_v50, %v3660_v0  ;;  %v1129_v62 = vmul.f32 %v1127_v42, %v3662_v29  ;;  %v1141_v0 = vmul.f32 %v4162_v12, %v3684_v2  ;;  %v2409_v29 = vpack.c.bf16 %v1137_v35, %v1135_v36  ;;  %v5453_v42 = vld [vmem:[#allocation19_spill] sm:$0xff]  ;;  %v5456_v35 = vld [vmem:[#allocation24_spill] sm:$0xff]  ;;  %v5457_v36 = vld [vmem:[#allocation25_spill] sm:$0xff] }
 0x5a8   : > { %v2419_v27 = vpack.c.bf16 %v1144_v41, %v1142_v58 }
 0x5a9   : > { %v2403_v46 = vpack.c.bf16 %v1128_v56, %v1120_v18  ;;  %v2401_v47 = vpack.c.bf16 %v1129_v62, %v1121_v51  ;;  %v2413_v2 = vpack.c.bf16 %v1141_v0, %v1139_v49  ;;  %v5454_v51 = vld [vmem:[#allocation20_spill] sm:$0xff]  ;;  %v5458_v0 = vld [vmem:[#allocation27_spill] sm:$0xff]  ;;  %v4531_v49 = vld [vmem:[#allocation11 + $0xc0] sm:$0xff] }
 0x5aa   : > { %5477 = vst [vmem:[#allocation22_spill] sm:$0xff] %v4531_v49 }
 0x5ab   : > { %2402 = vmatprep.subr.bf16.mxu0 %v2401_v47 }
 0x5ac   : > { %2404 = vmatpush1.bf16.msra.mxu0 %v2403_v46  ;;  %v5455_v46 = vld [vmem:[#allocation23_spill] sm:$0xff] }
 0x5ad   : > { %2406 = vmatprep.subr.bf16.mxu0 %v2405_v14 }
 0x5b0   : > { %2408 = vmatpush1.bf16.msra.mxu0 %v5444_v3 }
 0x5b1   : > { %2410 = vmatprep.subr.bf16.mxu0 %v2409_v29 }
 0x5b4   : > { %2412 = vmatpush1.bf16.msra.mxu0 %v2411_v60 }
 0x5b5   : > { %2414 = vmatprep.subr.bf16.mxu0 %v2413_v2 }
 0x5b8   : > { %2416 = vmatpush1.bf16.msra.mxu0 %v2415_v40 }
 0x5b9   : > { %2418 = vmatprep.subr.bf16.mxu0 %v2417_v13  ;;  %v5459_v13 = vld [vmem:[#allocation29_spill] sm:$0xff] }
 0x5bc   : > { %2420 = vmatpush1.bf16.msra.mxu0 %v2419_v27  ;;  %v5460_v27 = vld [vmem:[#allocation30_spill] sm:$0xff] }
 0x5bd   : > { %1203 = vmatprep.subr.mxu0 %v1147_v52 }
 0x5c0   : > { %1204 = vmatpush1.msra.mxu0 %v1146_v57 }
 0x5c1   : > { %1216 = vmatmul.mubr.f32.vlgmr.msra.gmra.mrb[2].mxu0 %v992_v44  ;;  %v5462_v44 = vld [vmem:[#allocation32_spill] sm:$0xff] }
 0x5c2   : > { %1300 = vmatprep.mubr.f32.mxu0 %v5446_v32 }
 0x694   : > { %v1217_v10 = vpop.f32.mrb[2].mxu0 }
 0x695   : > { %v1218_v22 = vadd.f32 %v1217_v10, %v1149_v55  ;;  %v1219_v33 = vpop.f32.mrb[3].mxu0 }
 0x696   : > { %v1220_v12 = vadd.f32 %v1219_v33, %v1150_v53 }
 0x697   : > { %v1224_v17 = vmul.f32 0.01, %v1218_v22  ;;  %vm1222_vm11 = vcmp.ge.f32.partialorder %v1218_v22, 0.0 }
 0x698   : > { %v1225_v54 = vmul.f32 0.01, %v1220_v12  ;;  %vm1223_vm12 = vcmp.ge.f32.partialorder %v1220_v12, 0.0 }
 0x699   : > { %v1226_v48 = vsel %vm1222_vm11, %v1218_v22, %v1224_v17  ;;  %vm5472_vm11 = vcmp.lt.s32.totalorder %v3417_v4, 7 }
 0x69a   : > { %v1227_v24 = vsel %vm1223_vm12, %v1220_v12, %v1225_v54  ;;  %vm5473_vm12 = vmmov %vm5472_vm11 }
 0x69b   : > { %1236 = vmatprep.subr.mxu0 %v1227_v24 }
 0x69c   : > { %1237 = vmatpush1.msra.mxu0 %v1226_v48 }
 0x69d   : > { %2256 = vmatmul.mubr.msk.f32.vlgmr.msra.gmra.mrb[4].mxu0 %vm678_vm13, %v1229_v21 }
 0x770   : > { %v1302_v9 = vpop.f32.mrb[4].mxu0 }
 0x771   : > { %v1303_v39 = vadd.f32 %v1302_v9, %v1231_v11  ;;  %v1304_v45 = vpop.f32.mrb[5].mxu0  ;;  %v5463_v11 = vld [vmem:[#allocation33_spill] sm:$0xff]  ;;  %v5464_v9 = vld [vmem:[#allocation34_spill] sm:$0xff] }
 0x772   : > { %v1305_v15 = vadd.f32 %v1304_v45, %v1232_v37  ;;  %v5465_v45 = vld [vmem:[#allocation35_spill] sm:$0xff] }
 0x773   : > { %vm1307_vm14 = vcmp.ge.f32.partialorder %v1303_v39, 0.0  ;;  %v1309_v30 = vmul.f32 0.01, %v1303_v39 }
 0x774   : > { %vm1308_vm15 = vcmp.ge.f32.partialorder %v1305_v15, 0.0  ;;  %v1310_v7 = vmul.f32 0.01, %v1305_v15 }
 0x775   : > { %v4313_v5 = vsel %vm1307_vm14, %v1303_v39, %v1309_v30  ;;  %v5466_v30 = vld [vmem:[#allocation36_spill] sm:$0xff]  ;;  %vm5475_vm14 = vcmp.lt.s32.totalorder %v3417_v4, 1 }
 0x776   : > { %v4315_v34 = vsel %vm1308_vm15, %v1305_v15, %v1310_v7  ;;  %1316 = vrot.lane.b32.xlu0 %v4313_v5, %s5447_s30  ;;  %vm5476_vm15 = vmmov %vm5475_vm14 }
 0x777   : > { %1318 = vrot.lane.b32.xlu1 %v4315_v34, %s5447_s30 }
 0x77a   : > { %1324 = vrot.lane.b32.xlu0 %v4313_v5, %s5448_s29 }
 0x77b   : > { %1326 = vrot.lane.b32.xlu1 %v4315_v34, %s5448_s29 }
 0x77e   : > { %1332 = vrot.lane.b32.xlu0 %v4313_v5, %s5449_s9 }
 0x77f   : > { %1334 = vrot.lane.b32.xlu1 %v4315_v34, %s5449_s9 }
 0x782   : > { %1340 = vrot.lane.b32.xlu0 %v4313_v5, %s5323_s16 }
 0x783   : > { %1342 = vrot.lane.b32.xlu1 %v4315_v34, %s5323_s16  ;;  %s5451_s16 = smov 120  }
 0x786   : > { %1348 = vrot.lane.b32.xlu0 %v4313_v5, %s5406_s10 }
 0x787   : > { %1350 = vrot.lane.b32.xlu1 %v4315_v34, %s5406_s10 }
 0x78a   : > { %1356 = vrot.lane.b32.xlu0 %v4313_v5, %s5407_s18 }
 0x78b   : > { %1358 = vrot.lane.b32.xlu1 %v4315_v34, %s5407_s18 }
 0x78e   : > { %1364 = vrot.lane.b32.xlu0 %v4313_v5, %s5408_s28 }
 0x78f   : > { %1366 = vrot.lane.b32.xlu1 %v4315_v34, %s5408_s28 }
 0x792   : > { %1372 = vrot.lane.b32.xlu0 %v4313_v5, %s5409_s13 }
 0x793   : > { %1374 = vrot.lane.b32.xlu1 %v4315_v34, %s5409_s13 }
 0x796   : > { %1380 = vrot.lane.b32.xlu0 %v4313_v5, %s5321_s12 }
 0x797   : > { %1382 = vrot.lane.b32.xlu1 %v4315_v34, %s5321_s12  ;;  %s5450_s12 = smov 121  }
 0x79a   : > { %1388 = vrot.lane.b32.xlu0 %v4313_v5, %s5380_s25 }
 0x79b   : > { %1390 = vrot.lane.b32.xlu1 %v4315_v34, %s5380_s25 }
 0x79e   : > { %1396 = vrot.lane.b32.xlu0 %v4313_v5, %s5381_s26 }
 0x79f   : > { %1398 = vrot.lane.b32.xlu1 %v4315_v34, %s5381_s26 }
 0x7a2   : > { %1404 = vrot.lane.b32.xlu0 %v4313_v5, %s5382_s11 }
 0x7a3   : > { %1406 = vrot.lane.b32.xlu1 %v4315_v34, %s5382_s11 }
 0x7a6   : > { %1412 = vrot.lane.b32.xlu0 %v4313_v5, %s5383_s20 }
 0x7a7   : > { %1414 = vrot.lane.b32.xlu1 %v4315_v34, %s5383_s20 }
 0x7aa   : > { %1420 = vrot.lane.b32.xlu0 %v4313_v5, %s5343_s14 }
 0x7ab   : > { %1422 = vrot.lane.b32.xlu1 %v4315_v34, %s5343_s14  ;;  %s5497_s14 = smov 65  }
 0x7ae   : > { %1428 = vrot.lane.b32.xlu0 %v4313_v5, %s5450_s12 }
 0x7af   : > { %1430 = vrot.lane.b32.xlu1 %v4315_v34, %s5450_s12 }
 0x7b2   : > { %1436 = vrot.lane.b32.xlu0 %v4313_v5, %s5451_s16 }
 0x7b3   : > { %1438 = vrot.lane.b32.xlu1 %v4315_v34, %s5451_s16 }
 0x7b6   : > { %1444 = vrot.lane.b32.xlu0 %v4313_v5, %s5452_s0 }
 0x7b7   : > { %1446 = vrot.lane.b32.xlu1 %v4315_v34, %s5452_s0 }
 0x7e8   : > { %v1317_v38 = vpop.permute.xlu0 %1316 }
 0x7e9   : > { %v1319_v25 = vpop.permute.xlu1 %1318 }
 0x7ea   : > { %v1320_v59 = vsel %vm351_vm1, %v1317_v38, %v1319_v25  ;;  %v4389_v26 = vsel %vm351_vm1, %v1319_v25, %v1317_v38 }
 0x7eb   : > { %v1322_v18 = vmul.f32 %v5453_v42, %v4389_v26  ;;  %v1323_v56 = vmul.f32 %v5454_v51, %v1320_v59  ;;  %v4401_v47 = vmul.f32 %v5455_v46, %v1320_v59 }
 0x7ec   : > { %v1325_v19 = vpop.permute.xlu0 %1324 }
 0x7ed   : > { %v1327_v50 = vpop.permute.xlu1 %1326 }
 0x7ee   : > { %v1328_v62 = vsel %vm362_vm0, %v1325_v19, %v1327_v50  ;;  %v4398_v43 = vsel %vm362_vm0, %v1327_v50, %v1325_v19 }
 0x7ef   : > { %v1330_v14 = vmul.f32 %v5456_v35, %v4398_v43  ;;  %v1331_v61 = vmul.f32 %v5457_v36, %v1328_v62  ;;  %v4407_v29 = vmul.f32 %v5458_v0, %v1328_v62 }
 0x7f0   : > { %v1333_v8 = vpop.permute.xlu0 %1332 }
 0x7f1   : > { %v2423_v3 = vpack.c.bf16 %v1330_v14, %v1322_v18  ;;  %v1335_v60 = vpop.permute.xlu1 %1334  ;;  %v2421_v31 = vpack.c.bf16 %v1331_v61, %v1323_v56  ;;  %v5467_v61 = vld [vmem:[#allocation37_spill] sm:$0xff] }
 0x7f2   : > { %v4413_v16 = vsel %vm374_vm2, %v1333_v8, %v1335_v60  ;;  %v4417_v2 = vsel %vm374_vm2, %v1335_v60, %v1333_v8 }
 0x7f3   : > { %2422 = vmatprep.subr.bf16.mxu1 %v2421_v31  ;;  %v1338_v58 = vmul.f32 %v5459_v13, %v4417_v2  ;;  %v1339_v52 = vmul.f32 %v5460_v27, %v4413_v16  ;;  %v5469_v31 = vld [vmem:[#allocation39_spill] sm:$0xff] }
 0x7f4   : > { %2424 = vmatpush1.bf16.msra.mxu1 %v2423_v3  ;;  %v1341_v6 = vpop.permute.xlu0 %1340  ;;  %v5468_v3 = vld [vmem:[#allocation38_spill] sm:$0xff] }
 0x7f5   : > { %v1343_v1 = vpop.permute.xlu1 %1342 }
 0x7f6   : > { %v4421_v40 = vsel %vm386_vm3, %v1341_v6, %v1343_v1  ;;  %v4425_v41 = vsel %vm386_vm3, %v1343_v1, %v1341_v6  ;;  %v5470_v1 = vld [vmem:[#allocation40_spill] sm:$0xff] }
 0x7f7   : > { %v1346_v57 = vmul.f32 %v5461_v63, %v4425_v41  ;;  %v1347_v55 = vmul.f32 %v5462_v44, %v4421_v40 }
 0x7f8   : > { %v1349_v53 = vpop.permute.xlu0 %1348 }
 0x7f9   : > { %v2427_v10 = vpack.c.bf16 %v1346_v57, %v1338_v58  ;;  %v1351_v22 = vpop.permute.xlu1 %1350  ;;  %v2425_v33 = vpack.c.bf16 %v1347_v55, %v1339_v52 }
 0x7fa   : > { %v4437_v12 = vsel %vm398_vm4, %v1349_v53, %v1351_v22  ;;  %v4441_v17 = vsel %vm398_vm4, %v1351_v22, %v1349_v53 }
 0x7fb   : > { %2426 = vmatprep.subr.bf16.mxu1 %v2425_v33  ;;  %v1354_v37 = vmul.f32 %v5463_v11, %v4441_v17  ;;  %v1355_v39 = vmul.f32 %v5464_v9, %v4437_v12 }
 0x7fc   : > { %2428 = vmatpush1.bf16.msra.mxu1 %v2427_v10  ;;  %v1357_v54 = vpop.permute.xlu0 %1356 }
 0x7fd   : > { %v1359_v24 = vpop.permute.xlu1 %1358 }
 0x7fe   : > { %v4445_v21 = vsel %vm410_vm5, %v1357_v54, %v1359_v24  ;;  %v4449_v48 = vsel %vm410_vm5, %v1359_v24, %v1357_v54 }
 0x7ff   : > { %v1362_v15 = vmul.f32 %v5465_v45, %v4449_v48  ;;  %v1363_v7 = vmul.f32 %v5466_v30, %v4445_v21 }
 0x800   : > { %v1365_v28 = vpop.permute.xlu0 %1364 }
 0x801   : > { %v2431_v38 = vpack.c.bf16 %v1362_v15, %v1354_v37  ;;  %v1367_v25 = vpop.permute.xlu1 %1366  ;;  %v2429_v59 = vpack.c.bf16 %v1363_v7, %v1355_v39  ;;  %v5471_v39 = vld [vmem:[#allocation41_spill] sm:$0xff]  ;;  %v4497_v7 = vld [vmem:[#allocation11 + $0x88] sm:$0xff] }
 0x802   : > { %v4461_v19 = vsel %vm422_vm6, %v1365_v28, %v1367_v25  ;;  %v4465_v50 = vsel %vm422_vm6, %v1367_v25, %v1365_v28 }
 0x803   : > { %2430 = vmatprep.subr.bf16.mxu1 %v2429_v59  ;;  %v1370_v8 = vmul.f32 %v5467_v61, %v4465_v50  ;;  %v1371_v60 = vmul.f32 %v5468_v3, %v4461_v19  ;;  %v4504_v59 = vld [vmem:[#allocation11 + $0x98] sm:$0xff] }
 0x804   : > { %2432 = vmatpush1.bf16.msra.mxu1 %v2431_v38  ;;  %v1373_v18 = vpop.permute.xlu0 %1372  ;;  %v4501_v38 = vld [vmem:[#allocation11 + $0x90] sm:$0xff] }
 0x805   : > { %v1375_v56 = vpop.permute.xlu1 %1374 }
 0x806   : > { %v4469_v62 = vsel %vm434_vm7, %v1373_v18, %v1375_v56  ;;  %v4473_v14 = vsel %vm434_vm7, %v1375_v56, %v1373_v18 }
 0x807   : > { %v1378_v6 = vmul.f32 %v5469_v31, %v4473_v14  ;;  %v1379_v58 = vmul.f32 %v5470_v1, %v4469_v62 }
 0x808   : > { %v1381_v52 = vpop.permute.xlu0 %1380 }
 0x809   : > { %v2435_v57 = vpack.c.bf16 %v1378_v6, %v1370_v8  ;;  %v1383_v55 = vpop.permute.xlu1 %1382  ;;  %v2433_v53 = vpack.c.bf16 %v1379_v58, %v1371_v60 }
 0x80a   : > { %v4485_v10 = vsel %vm446_vm8, %v1381_v52, %v1383_v55  ;;  %v4489_v22 = vsel %vm446_vm8, %v1383_v55, %v1381_v52 }
 0x80b   : > { %2434 = vmatprep.subr.bf16.mxu1 %v2433_v53  ;;  %v1386_v15 = vmul.f32 %v5471_v39, %v4489_v22  ;;  %v1387_v28 = vmul.f32 %v4497_v7, %v4485_v10 }
 0x80c   : > { %2436 = vmatpush1.bf16.msra.mxu1 %v2435_v57  ;;  %v1389_v33 = vpop.permute.xlu0 %1388 }
 0x80d   : > { %v1391_v54 = vpop.permute.xlu1 %1390 }
 0x80e   : > { %v1392_v24 = vsel %vm458_vm9, %v1389_v33, %v1391_v54  ;;  %v1393_v37 = vsel %vm458_vm9, %v1391_v54, %v1389_v33  ;;  %v4515_v54 = vld [vmem:[#allocation11 + $0xa0] sm:$0xff] }
 0x80f   : > { %v1394_v25 = vmul.f32 %v4501_v38, %v1393_v37  ;;  %v1395_v18 = vmul.f32 %v4504_v59, %v1392_v24  ;;  %v4518_v37 = vld [vmem:[#allocation11 + $0xa8] sm:$0xff] }
 0x810   : > { %v1397_v56 = vpop.permute.xlu0 %1396  ;;  %5474 = vst [vmem:[#allocation21_spill] sm:$0xff] %v4518_v37 }
 0x811   : > { %v2439_v8 = vpack.c.bf16 %v1394_v25, %v1386_v15  ;;  %v1399_v60 = vpop.permute.xlu1 %1398  ;;  %v2437_v6 = vpack.c.bf16 %v1395_v18, %v1387_v28  ;;  %v4521_v28 = vld [vmem:[#allocation11 + $0xb0] sm:$0xff]  ;;  %v4524_v18 = vld [vmem:[#allocation11 + $0xb8] sm:$0xff] }
 0x812   : > { %v1400_v58 = vsel %vm470_vm10, %v1397_v56, %v1399_v60  ;;  %v1401_v52 = vsel %vm470_vm10, %v1399_v60, %v1397_v56 }
 0x813   : > { %2438 = vmatprep.subr.bf16.mxu1 %v2437_v6  ;;  %v1402_v24 = vmul.f32 %v4515_v54, %v1401_v52  ;;  %v1403_v15 = vmul.f32 %v4518_v37, %v1400_v58  ;;  %v4534_v37 = vld [vmem:[#allocation11 + $0xc8] sm:$0xff] }
 0x814   : > { %2440 = vmatpush1.bf16.msra.mxu1 %v2439_v8  ;;  %v1405_v57 = vpop.permute.xlu0 %1404  ;;  %5478 = vst [vmem:[#allocation26_spill] sm:$0xff] %v4534_v37 }
 0x815   : > { %v1407_v55 = vpop.permute.xlu1 %1406 }
 0x816   : > { %v1408_v53 = vsel %vm5472_vm11, %v1405_v57, %v1407_v55  ;;  %v1409_v33 = vsel %vm5473_vm12, %v1407_v55, %v1405_v57  ;;  %vm5479_vm11 = vcmp.lt.s32.totalorder %v3417_v4, 127 }
 0x817   : > { %v1410_v25 = vmul.f32 %v4521_v28, %v1409_v33  ;;  %v1411_v56 = vmul.f32 %v4524_v18, %v1408_v53  ;;  %vm5480_vm12 = vmmov %vm5479_vm11 }
 0x818   : > { %v1413_v8 = vpop.permute.xlu0 %1412 }
 0x819   : > { %v2443_v60 = vpack.c.bf16 %v1410_v25, %v1402_v24  ;;  %v1415_v6 = vpop.permute.xlu1 %1414  ;;  %v2441_v57 = vpack.c.bf16 %v1411_v56, %v1403_v15 }
 0x81a   : > { %v1416_v55 = vsel %vm5475_vm14, %v1413_v8, %v1415_v6  ;;  %v1417_v52 = vsel %vm5476_vm15, %v1415_v6, %v1413_v8  ;;  %vm5481_vm14 = vcmp.lt.s32.totalorder %v3417_v4, 121 }
 0x81b   : > { %v1418_v58 = vmul.f32 %v4531_v49, %v1417_v52  ;;  %v1419_v33 = vmul.f32 %v4534_v37, %v1416_v55  ;;  %2442 = vmatprep.subr.bf16.mxu1 %v2441_v57  ;;  %vm5482_vm15 = vmmov %vm5481_vm14  ;;  %v4550_v55 = vld [vmem:[#allocation11 + $0xe8] sm:$0xff] }
 0x81c   : > { %2444 = vmatpush1.bf16.msra.mxu1 %v2443_v60  ;;  %v1421_v53 = vpop.permute.xlu0 %1420  ;;  %5484 = vst [vmem:[#allocation19_spill] sm:$0xff] %v4550_v55 }
 0x81d   : > { %v2447_v24 = vpack.c.bf16 %v4313_v5, %v1418_v58  ;;  %v1423_v15 = vpop.permute.xlu1 %1422  ;;  %v2445_v25 = vpack.c.bf16 %v4315_v34, %v1419_v33  ;;  %v4547_v5 = vld [vmem:[#allocation11 + $0xe0] sm:$0xff]  ;;  %v4553_v33 = vld [vmem:[#allocation11 + $0xf0] sm:$0xff] }
 0x81e   : > { %v1424_v56 = vsel %vm5479_vm11, %v1421_v53, %v1423_v15  ;;  %v1425_v8 = vsel %vm5480_vm12, %v1423_v15, %v1421_v53  ;;  %5483 = vst [vmem:[#allocation28_spill] sm:$0xff] %v4547_v5  ;;  %vm5486_vm11 = vcmp.lt.s32.totalorder %v3417_v4, 120 }
 0x81f   : > { %2446 = vmatprep.subr.bf16.mxu1 %v2445_v25  ;;  %v1426_v34 = vmul.f32 %v4547_v5, %v1424_v56  ;;  %v1427_v58 = vmul.f32 %v4550_v55, %v1425_v8  ;;  %vm5487_vm12 = vmmov %vm5486_vm11  ;;  %v4563_v5 = vld [vmem:[#allocation11 + $0x138] sm:$0xff] }
 0x820   : > { %2448 = vmatpush1.bf16.msra.mxu1 %v2447_v24  ;;  %v1429_v6 = vpop.permute.xlu0 %1428  ;;  %v4556_v24 = vld [vmem:[#allocation11 + $0xf8] sm:$0xff]  ;;  %5488 = vst [vmem:[#allocation23_spill] sm:$0xff] %v4563_v5 }
 0x821   : > { %v1431_v52 = vpop.permute.xlu1 %1430  ;;  %5485 = vst [vmem:[#allocation20_spill] sm:$0xff] %v4556_v24 }
 0x822   : > { %v1432_v57 = vsel %vm5481_vm14, %v1429_v6, %v1431_v52  ;;  %v1433_v60 = vsel %vm5482_vm15, %v1431_v52, %v1429_v6  ;;  %vm5489_vm14 = vcmp.lt.s32.totalorder %v3417_v4, 119 }
 0x823   : > { %v1434_v53 = vmul.f32 %v4553_v33, %v1432_v57  ;;  %v1435_v15 = vmul.f32 %v4556_v24, %v1433_v60  ;;  %v1455_v57 = vmul.f32 %v4563_v5, %v4398_v43  ;;  %vm5490_vm15 = vmmov %vm5489_vm14  ;;  %v4583_v5 = vld [vmem:[#allocation11 + $0x128] sm:$0xff] }
 0x824   : > { %v1437_v25 = vpop.permute.xlu0 %1436 }
 0x825   : > { %v2451_v37 = vpack.c.bf16 %v1434_v53, %v1426_v34  ;;  %v1439_v49 = vpop.permute.xlu1 %1438  ;;  %v2449_v6 = vpack.c.bf16 %v1435_v15, %v1427_v58  ;;  %v4571_v58 = vld [vmem:[#allocation11 + $0x100] sm:$0xff]  ;;  %v4574_v15 = vld [vmem:[#allocation11 + $0x108] sm:$0xff] }
 0x826   : > { %v1440_v56 = vsel %vm5486_vm11, %v1437_v25, %v1439_v49  ;;  %v1441_v52 = vsel %vm5487_vm12, %v1439_v49, %v1437_v25  ;;  %5491 = vst [vmem:[#allocation24_spill] sm:$0xff] %v4574_v15  ;;  %vm5500_vm11 = vcmp.lt.s32.totalorder %v3417_v4, 7 }
 0x827   : > { %2450 = vmatprep.subr.bf16.mxu1 %v2449_v6  ;;  %v1442_v53 = vmul.f32 %v4571_v58, %v1440_v56  ;;  %v1443_v49 = vmul.f32 %v4574_v15, %v1441_v52  ;;  %v4580_v6 = vld [vmem:[#allocation11 + $0x118] sm:$0xff]  ;;  %vm5501_vm12 = vmmov %vm5500_vm11 }
 0x828   : > { %2452 = vmatpush1.bf16.msra.mxu1 %v2451_v37  ;;  %v1445_v8 = vpop.permute.xlu0 %1444  ;;  %v4577_v37 = vld [vmem:[#allocation11 + $0x110] sm:$0xff]  ;;  %5492 = vst [vmem:[#allocation25_spill] sm:$0xff] %v4580_v6  ;;  %v4587_v56 = vld [vmem:[#allocation11 + $0x158] sm:$0xff] }
 0x829   : > { %v1447_v55 = vpop.permute.xlu1 %1446  ;;  %v1459_v52 = vmul.f32 %v4587_v56, %v4425_v41 }
 0x82a   : > { %v1448_v60 = vsel %vm5489_vm14, %v1445_v8, %v1447_v55  ;;  %v1449_v34 = vsel %vm5490_vm15, %v1447_v55, %v1445_v8  ;;  %v1453_v55 = vmul.f32 %v4583_v5, %v4389_v26  ;;  %vm5503_vm14 = vcmp.lt.s32.totalorder %v3417_v4, 1 }
 0x82b   : > { %v1450_v25 = vmul.f32 %v4577_v37, %v1448_v60  ;;  %v1451_v43 = vmul.f32 %v4580_v6, %v1449_v34  ;;  %v4591_v60 = vld [vmem:[#allocation11 + $0x148] sm:$0xff]  ;;  %v4595_v6 = vld [vmem:[#allocation11 + $0x150] sm:$0xff]  ;;  %vm5504_vm15 = vmmov %vm5503_vm14 }
 0x82c   : > { %v2457_v15 = vpack.c.bf16 %v1455_v57, %v1453_v55  ;;  %v1457_v34 = vmul.f32 %v4591_v60, %v4417_v2  ;;  %v1458_v26 = vmul.f32 %v4595_v6, %v4421_v40  ;;  %v5493_v2 = vpack.c.bf16 %v4407_v29, %v4401_v47  ;;  %v4618_v55 = vld [vmem:[#allocation11 + $0x198] sm:$0xff]  ;;  %v4622_v47 = vld [vmem:[#allocation11 + $0x160] sm:$0xff] }
 0x82d   : > { %v2455_v8 = vpack.c.bf16 %v1450_v25, %v1442_v53  ;;  %v2453_v24 = vpack.c.bf16 %v1451_v43, %v1443_v49  ;;  %v4599_v53 = vld [vmem:[#allocation11 + $0x178] sm:$0xff]  ;;  %v4614_v43 = vld [vmem:[#allocation11 + $0x170] sm:$0xff]  ;;  %v1460_v29 = vmul.f32 %v4622_v47, %v4437_v12 }
 0x82e   : > { %v1463_v49 = vmul.f32 %v4599_v53, %v4449_v48  ;;  %v2461_v41 = vpack.c.bf16 %v1459_v52, %v1457_v34  ;;  %v1462_v48 = vmul.f32 %v4614_v43, %v4445_v21  ;;  %v4630_v21 = vld [vmem:[#allocation11 + $0x190] sm:$0xff] }
 0x82f   : > { %2454 = vmatprep.subr.bf16.mxu1 %v2453_v24  ;;  %v4603_v24 = vld [vmem:[#allocation11 + $0x140] sm:$0xff] }
 0x830   : > { %2456 = vmatpush1.bf16.msra.mxu1 %v2455_v8  ;;  %v1456_v57 = vmul.f32 %v4603_v24, %v4413_v16  ;;  %v1467_v16 = vmul.f32 %v4618_v55, %v4473_v14  ;;  %v2467_v34 = vpack.c.bf16 %v1462_v48, %v1460_v29 }
 0x831   : > { %2458 = vmatprep.subr.bf16.mxu1 %v2457_v15  ;;  %v4610_v15 = vld [vmem:[#allocation11 + $0x168] sm:$0xff] }
 0x832   : > { %v1461_v40 = vmul.f32 %v4610_v15, %v4441_v17  ;;  %v2463_v25 = vpack.c.bf16 %v1458_v26, %v1456_v57  ;;  %v4626_v17 = vld [vmem:[#allocation11 + $0x188] sm:$0xff]  ;;  %v1466_v26 = vmul.f32 %v4630_v21, %v4469_v62 }
 0x833   : > { %v1465_v52 = vmul.f32 %v4626_v17, %v4465_v50  ;;  %v4638_v57 = vld [vmem:[#allocation11 + $0x1a8] sm:$0xff] }
 0x834   : > { %2460 = vmatpush1.bf16.msra.mxu1 %v5493_v2  ;;  %v2465_v8 = vpack.c.bf16 %v1463_v49, %v1461_v40  ;;  %v4634_v49 = vld [vmem:[#allocation11 + $0x180] sm:$0xff]  ;;  %v1469_v50 = vmul.f32 %v4638_v57, %v4489_v22  ;;  %v1314_v40 = vld [vmem:[#allocation7 + $0x10] sm:$0xff] }
 0x835   : > { %2462 = vmatprep.subr.bf16.mxu1 %v2461_v41  ;;  %v2469_v14 = vpack.c.bf16 %v1467_v16, %v1465_v52  ;;  %v1464_v41 = vmul.f32 %v4634_v49, %v4461_v19  ;;  %v4642_v2 = vld [vmem:[#allocation11 + $0x1a0] sm:$0xff] }
 0x836   : > { %5494 = vst [vmem:[#allocation27_spill] sm:$0xff] %v4642_v2  ;;  %v1468_v62 = vmul.f32 %v4642_v2, %v4485_v10  ;;  %v1471_v19 = vld [vmem:[#allocation10 + $0x50] sm:$0xff] }
 0x837   : > { %v2471_v12 = vpack.c.bf16 %v1466_v26, %v1464_v41 }
 0x838   : > { %2464 = vmatpush1.bf16.msra.mxu1 %v2463_v25  ;;  %v1472_v25 = vld [vmem:[#allocation10 + $0x58] sm:$0xff] }
 0x839   : > { %2466 = vmatprep.subr.bf16.mxu1 %v2465_v8 }
 0x83c   : > { %2468 = vmatpush1.bf16.msra.mxu1 %v2467_v34 }
 0x83d   : > { %2470 = vmatprep.subr.bf16.mxu1 %v2469_v14 }
 0x840   : > { %2472 = vmatpush1.bf16.msra.mxu1 %v2471_v12 }
 0x841   : > { %1525 = vmatprep.subr.mxu1 %v1469_v50 }
 0x844   : > { %1526 = vmatpush1.msra.mxu1 %v1468_v62 }
 0x845   : > { %1538 = vmatmul.mubr.f32.vlgmr.msra.gmra.mrb[4].mxu1 %v1314_v40 }
 0x846   : > { %1855 = vmatprep.mubr.f32.mxu1 %v5446_v32 }
 0x918   : > { %v1539_v48 = vpop.f32.mrb[4].mxu1 }
 0x919   : > { %v1540_v16 = vadd.f32 %v1539_v48, %v1471_v19  ;;  %v1541_v8 = vpop.f32.mrb[5].mxu1 }
 0x91a   : > { %v1542_v29 = vadd.f32 %v1541_v8, %v1472_v25 }
 0x91b   : > { %v4648_v22 = vadd.f32 %v1540_v16, %v4005_v23  ;;  %v1548_v23 = vld [vmem:[#allocation5 + $0x28] sm:$0xff] }
 0x91c   : > { %v4651_v52 = vadd.f32 %v1542_v29, %v4008_v20  ;;  %1770 = vmatprep.mubr.f32.mxu0 %v1548_v23 }
 0x91d   : > { %5495 = vst [vmem:[#allocation29_spill] sm:$0xff] %v4648_v22  ;;  %1549 = vrot.lane.b32.xlu0 %v4648_v22, %s5447_s30 }
 0x91e   : > { %5496 = vst [vmem:[#allocation30_spill] sm:$0xff] %v4651_v52  ;;  %1551 = vrot.lane.b32.xlu1 %v4651_v52, %s5447_s30 }
 0x921   : > { %1557 = vrot.lane.b32.xlu0 %v4648_v22, %s5448_s29 }
 0x922   : > { %1559 = vrot.lane.b32.xlu1 %v4651_v52, %s5448_s29 }
 0x925   : > { %1565 = vrot.lane.b32.xlu0 %v4648_v22, %s5449_s9 }
 0x926   : > { %1567 = vrot.lane.b32.xlu1 %v4651_v52, %s5449_s9 }
 0x929   : > { %1573 = vrot.lane.b32.xlu0 %v4648_v22, %s5497_s14 }
 0x92a   : > { %1575 = vrot.lane.b32.xlu1 %v4651_v52, %s5497_s14 }
 0x92d   : > { %1581 = vrot.lane.b32.xlu0 %v4648_v22, %s5406_s10 }
 0x92e   : > { %1583 = vrot.lane.b32.xlu1 %v4651_v52, %s5406_s10 }
 0x931   : > { %1589 = vrot.lane.b32.xlu0 %v4648_v22, %s5407_s18 }
 0x932   : > { %1591 = vrot.lane.b32.xlu1 %v4651_v52, %s5407_s18 }
 0x935   : > { %1597 = vrot.lane.b32.xlu0 %v4648_v22, %s5408_s28 }
 0x936   : > { %1599 = vrot.lane.b32.xlu1 %v4651_v52, %s5408_s28 }
 0x939   : > { %1605 = vrot.lane.b32.xlu0 %v4648_v22, %s5409_s13 }
 0x93a   : > { %1607 = vrot.lane.b32.xlu1 %v4651_v52, %s5409_s13 }
 0x93d   : > { %1613 = vrot.lane.b32.xlu0 %v4648_v22, %s5498_s1 }
 0x93e   : > { %1615 = vrot.lane.b32.xlu1 %v4651_v52, %s5498_s1 }
 0x941   : > { %1621 = vrot.lane.b32.xlu0 %v4648_v22, %s5380_s25 }
 0x942   : > { %1623 = vrot.lane.b32.xlu1 %v4651_v52, %s5380_s25 }
 0x945   : > { %1629 = vrot.lane.b32.xlu0 %v4648_v22, %s5381_s26 }
 0x946   : > { %1631 = vrot.lane.b32.xlu1 %v4651_v52, %s5381_s26 }
 0x949   : > { %1637 = vrot.lane.b32.xlu0 %v4648_v22, %s5382_s11 }
 0x94a   : > { %1639 = vrot.lane.b32.xlu1 %v4651_v52, %s5382_s11 }
 0x94d   : > { %1645 = vrot.lane.b32.xlu0 %v4648_v22, %s5383_s20 }
 0x94e   : > { %1647 = vrot.lane.b32.xlu1 %v4651_v52, %s5383_s20 }
 0x951   : > { %1653 = vrot.lane.b32.xlu0 %v4648_v22, %s5499_s2 }
 0x952   : > { %1655 = vrot.lane.b32.xlu1 %v4651_v52, %s5499_s2 }
 0x955   : > { %1661 = vrot.lane.b32.xlu0 %v4648_v22, %s5450_s12 }
 0x956   : > { %1663 = vrot.lane.b32.xlu1 %v4651_v52, %s5450_s12 }
 0x959   : > { %1669 = vrot.lane.b32.xlu0 %v4648_v22, %s5451_s16 }
 0x95a   : > { %1671 = vrot.lane.b32.xlu1 %v4651_v52, %s5451_s16 }
 0x95d   : > { %1677 = vrot.lane.b32.xlu0 %v4648_v22, %s5452_s0 }
 0x95e   : > { %1679 = vrot.lane.b32.xlu1 %v4651_v52, %s5452_s0 }
 0x98f   : > { %v1550_v20 = vpop.permute.xlu0 %1549 }
 0x990   : > { %v1552_v32 = vpop.permute.xlu1 %1551 }
 0x991   : > { %v1553_v10 = vsel %vm351_vm1, %v1550_v20, %v1552_v32  ;;  %v4725_v34 = vsel %vm351_vm1, %v1552_v32, %v1550_v20 }
 0x992   : > { %v1555_v41 = vmul.f32 %v5453_v42, %v4725_v34  ;;  %v1556_v12 = vmul.f32 %v5454_v51, %v1553_v10  ;;  %v4737_v40 = vmul.f32 %v5455_v46, %v1553_v10 }
 0x993   : > { %v1558_v26 = vpop.permute.xlu0 %1557 }
 0x994   : > { %v1560_v14 = vpop.permute.xlu1 %1559 }
 0x995   : > { %v1561_v50 = vsel %vm362_vm0, %v1558_v26, %v1560_v14  ;;  %v4734_v62 = vsel %vm362_vm0, %v1560_v14, %v1558_v26 }
 0x996   : > { %v1563_v19 = vmul.f32 %v5456_v35, %v4734_v62  ;;  %v1564_v25 = vmul.f32 %v5457_v36, %v1561_v50  ;;  %v4743_v48 = vmul.f32 %v5458_v0, %v1561_v50 }
 0x997   : > { %v1566_v42 = vpop.permute.xlu0 %1565 }
 0x998   : > { %v2475_v51 = vpack.c.bf16 %v1563_v19, %v1555_v41  ;;  %v1568_v8 = vpop.permute.xlu1 %1567  ;;  %v2473_v29 = vpack.c.bf16 %v1564_v25, %v1556_v12 }
 0x999   : > { %v4749_v46 = vsel %vm374_vm2, %v1566_v42, %v1568_v8  ;;  %v4753_v35 = vsel %vm374_vm2, %v1568_v8, %v1566_v42 }
 0x99a   : > { %2474 = vmatprep.subr.bf16.mxu0 %v2473_v29  ;;  %v1571_v32 = vmul.f32 %v5459_v13, %v4753_v35  ;;  %v1572_v10 = vmul.f32 %v5460_v27, %v4749_v46 }
 0x99b   : > { %2476 = vmatpush1.bf16.msra.mxu0 %v2475_v51  ;;  %v1574_v36 = vpop.permute.xlu0 %1573 }
 0x99c   : > { %v1576_v0 = vpop.permute.xlu1 %1575 }
 0x99d   : > { %v4757_v23 = vsel %vm386_vm3, %v1574_v36, %v1576_v0  ;;  %v4761_v20 = vsel %vm386_vm3, %v1576_v0, %v1574_v36 }
 0x99e   : > { %v1579_v26 = vmul.f32 %v5461_v63, %v4761_v20  ;;  %v1580_v14 = vmul.f32 %v5462_v44, %v4757_v23 }
 0x99f   : > { %v1582_v41 = vpop.permute.xlu0 %1581 }
 0x9a0   : > { %v2479_v12 = vpack.c.bf16 %v1579_v26, %v1571_v32  ;;  %v1584_v50 = vpop.permute.xlu1 %1583  ;;  %v2477_v19 = vpack.c.bf16 %v1580_v14, %v1572_v10 }
 0x9a1   : > { %v4773_v25 = vsel %vm398_vm4, %v1582_v41, %v1584_v50  ;;  %v4777_v13 = vsel %vm398_vm4, %v1584_v50, %v1582_v41 }
 0x9a2   : > { %2478 = vmatprep.subr.bf16.mxu0 %v2477_v19  ;;  %v1587_v51 = vmul.f32 %v5463_v11, %v4777_v13  ;;  %v1588_v8 = vmul.f32 %v5464_v9, %v4773_v25 }
 0x9a3   : > { %2480 = vmatpush1.bf16.msra.mxu0 %v2479_v12  ;;  %v1590_v27 = vpop.permute.xlu0 %1589 }
 0x9a4   : > { %v1592_v42 = vpop.permute.xlu1 %1591 }
 0x9a5   : > { %v4781_v63 = vsel %vm410_vm5, %v1590_v27, %v1592_v42  ;;  %v4785_v44 = vsel %vm410_vm5, %v1592_v42, %v1590_v27 }
 0x9a6   : > { %v1595_v29 = vmul.f32 %v5465_v45, %v4785_v44  ;;  %v1596_v36 = vmul.f32 %v5466_v30, %v4781_v63 }
 0x9a7   : > { %v1598_v0 = vpop.permute.xlu0 %1597 }
 0x9a8   : > { %v2483_v32 = vpack.c.bf16 %v1595_v29, %v1587_v51  ;;  %v1600_v10 = vpop.permute.xlu1 %1599  ;;  %v2481_v26 = vpack.c.bf16 %v1596_v36, %v1588_v8 }
 0x9a9   : > { %v4797_v14 = vsel %vm422_vm6, %v1598_v0, %v1600_v10  ;;  %v4801_v11 = vsel %vm422_vm6, %v1600_v10, %v1598_v0 }
 0x9aa   : > { %2482 = vmatprep.subr.bf16.mxu0 %v2481_v26  ;;  %v1603_v12 = vmul.f32 %v5467_v61, %v4801_v11  ;;  %v1604_v50 = vmul.f32 %v5468_v3, %v4797_v14 }
 0x9ab   : > { %2484 = vmatpush1.bf16.msra.mxu0 %v2483_v32  ;;  %v1606_v9 = vpop.permute.xlu0 %1605 }
 0x9ac   : > { %v1608_v41 = vpop.permute.xlu1 %1607 }
 0x9ad   : > { %v4805_v45 = vsel %vm434_vm7, %v1606_v9, %v1608_v41  ;;  %v4809_v30 = vsel %vm434_vm7, %v1608_v41, %v1606_v9 }
 0x9ae   : > { %v1611_v19 = vmul.f32 %v5469_v31, %v4809_v30  ;;  %v1612_v27 = vmul.f32 %v5470_v1, %v4805_v45 }
 0x9af   : > { %v1614_v42 = vpop.permute.xlu0 %1613 }
 0x9b0   : > { %v2487_v51 = vpack.c.bf16 %v1611_v19, %v1603_v12  ;;  %v1616_v8 = vpop.permute.xlu1 %1615  ;;  %v2485_v29 = vpack.c.bf16 %v1612_v27, %v1604_v50 }
 0x9b1   : > { %v4821_v36 = vsel %vm446_vm8, %v1614_v42, %v1616_v8  ;;  %v4825_v61 = vsel %vm446_vm8, %v1616_v8, %v1614_v42 }
 0x9b2   : > { %2486 = vmatprep.subr.bf16.mxu0 %v2485_v29  ;;  %v1619_v32 = vmul.f32 %v5471_v39, %v4825_v61  ;;  %v1620_v10 = vmul.f32 %v4497_v7, %v4821_v36 }
 0x9b3   : > { %2488 = vmatpush1.bf16.msra.mxu0 %v2487_v51  ;;  %v1622_v3 = vpop.permute.xlu0 %1621 }
 0x9b4   : > { %v1624_v0 = vpop.permute.xlu1 %1623 }
 0x9b5   : > { %v1625_v31 = vsel %vm458_vm9, %v1622_v3, %v1624_v0  ;;  %v1626_v1 = vsel %vm458_vm9, %v1624_v0, %v1622_v3  ;;  %v5502_v0 = vld [vmem:[#allocation21_spill] sm:$0xff] }
 0x9b6   : > { %v1627_v26 = vmul.f32 %v4501_v38, %v1626_v1  ;;  %v1628_v9 = vmul.f32 %v4504_v59, %v1625_v31 }
 0x9b7   : > { %v1630_v41 = vpop.permute.xlu0 %1629 }
 0x9b8   : > { %v2491_v12 = vpack.c.bf16 %v1627_v26, %v1619_v32  ;;  %v1632_v50 = vpop.permute.xlu1 %1631  ;;  %v2489_v19 = vpack.c.bf16 %v1628_v9, %v1620_v10 }
 0x9b9   : > { %v1633_v27 = vsel %vm470_vm10, %v1630_v41, %v1632_v50  ;;  %v1634_v42 = vsel %vm470_vm10, %v1632_v50, %v1630_v41 }
 0x9ba   : > { %2490 = vmatprep.subr.bf16.mxu0 %v2489_v19  ;;  %v1635_v3 = vmul.f32 %v4515_v54, %v1634_v42  ;;  %v1636_v31 = vmul.f32 %v5502_v0, %v1633_v27  ;;  %v5505_v19 = vld [vmem:[#allocation22_spill] sm:$0xff] }
 0x9bb   : > { %2492 = vmatpush1.bf16.msra.mxu0 %v2491_v12  ;;  %v1638_v39 = vpop.permute.xlu0 %1637 }
 0x9bc   : > { %v1640_v51 = vpop.permute.xlu1 %1639 }
 0x9bd   : > { %v1641_v8 = vsel %vm5500_vm11, %v1638_v39, %v1640_v51  ;;  %v1642_v29 = vsel %vm5501_vm12, %v1640_v51, %v1638_v39  ;;  %v5506_v51 = vld [vmem:[#allocation26_spill] sm:$0xff]  ;;  %vm5507_vm11 = vcmp.lt.s32.totalorder %v3417_v4, 127 }
 0x9be   : > { %v1643_v1 = vmul.f32 %v4521_v28, %v1642_v29  ;;  %v1644_v32 = vmul.f32 %v4524_v18, %v1641_v8  ;;  %vm5508_vm12 = vmmov %vm5507_vm11 }
 0x9bf   : > { %v1646_v10 = vpop.permute.xlu0 %1645 }
 0x9c0   : > { %v2495_v26 = vpack.c.bf16 %v1643_v1, %v1635_v3  ;;  %v1648_v9 = vpop.permute.xlu1 %1647  ;;  %v2493_v41 = vpack.c.bf16 %v1644_v32, %v1636_v31 }
 0x9c1   : > { %v1649_v12 = vsel %vm5503_vm14, %v1646_v10, %v1648_v9  ;;  %v1650_v50 = vsel %vm5504_vm15, %v1648_v9, %v1646_v10  ;;  %vm5509_vm14 = vcmp.lt.s32.totalorder %v3417_v4, 121 }
 0x9c2   : > { %v1651_v39 = vmul.f32 %v5505_v19, %v1650_v50  ;;  %v1652_v42 = vmul.f32 %v5506_v51, %v1649_v12  ;;  %2494 = vmatprep.subr.bf16.mxu0 %v2493_v41  ;;  %vm5510_vm15 = vmmov %vm5509_vm14  ;;  %v5511_v41 = vld [vmem:[#allocation28_spill] sm:$0xff]  ;;  %v5512_v50 = vld [vmem:[#allocation19_spill] sm:$0xff] }
 0x9c3   : > { %2496 = vmatpush1.bf16.msra.mxu0 %v2495_v26  ;;  %v1654_v27 = vpop.permute.xlu0 %1653 }
 0x9c4   : > { %v2499_v29 = vpack.c.bf16 %v4648_v22, %v1651_v39  ;;  %v1656_v8 = vpop.permute.xlu1 %1655  ;;  %v2497_v3 = vpack.c.bf16 %v4651_v52, %v1652_v42 }
 0x9c5   : > { %v1657_v31 = vsel %vm5507_vm11, %v1654_v27, %v1656_v8  ;;  %v1658_v1 = vsel %vm5508_vm12, %v1656_v8, %v1654_v27  ;;  %vm5514_vm11 = vcmp.lt.s32.totalorder %v3417_v4, 120 }
 0x9c6   : > { %2498 = vmatprep.subr.bf16.mxu0 %v2497_v3  ;;  %v1659_v12 = vmul.f32 %v5511_v41, %v1657_v31  ;;  %v1660_v39 = vmul.f32 %v5512_v50, %v1658_v1  ;;  %v5513_v3 = vld [vmem:[#allocation20_spill] sm:$0xff]  ;;  %vm5515_vm12 = vmmov %vm5514_vm11  ;;  %v5516_v1 = vld [vmem:[#allocation23_spill] sm:$0xff] }
 0x9c7   : > { %2500 = vmatpush1.bf16.msra.mxu0 %v2499_v29  ;;  %v1662_v32 = vpop.permute.xlu0 %1661 }
 0x9c8   : > { %v1664_v10 = vpop.permute.xlu1 %1663 }
 0x9c9   : > { %v1665_v9 = vsel %vm5509_vm14, %v1662_v32, %v1664_v10  ;;  %v1666_v26 = vsel %vm5510_vm15, %v1664_v10, %v1662_v32  ;;  %v1688_v10 = vmul.f32 %v5516_v1, %v4734_v62  ;;  %vm5517_vm14 = vcmp.lt.s32.totalorder %v3417_v4, 119 }
 0x9ca   : > { %v1667_v42 = vmul.f32 %v4553_v33, %v1665_v9  ;;  %v1668_v16 = vmul.f32 %v5513_v3, %v1666_v26  ;;  %vm5518_vm15 = vmmov %vm5517_vm14  ;;  %v1692_v62 = vmul.f32 %v4587_v56, %v4761_v20  ;;  %v5521_v20 = vpack.c.bf16 %v4743_v48, %v4737_v40 }
 0x9cb   : > { %v1670_v52 = vpop.permute.xlu0 %1669  ;;  %v1698_v40 = vmul.f32 %v4626_v17, %v4801_v11  ;;  %v1547_v11 = vld [vmem:[#allocation5 + $0x20] sm:$0xff] }
 0x9cc   : > { %v2503_v22 = vpack.c.bf16 %v1667_v42, %v1659_v12  ;;  %v1672_v27 = vpop.permute.xlu1 %1671  ;;  %v2501_v29 = vpack.c.bf16 %v1668_v16, %v1660_v39  ;;  %v5519_v12 = vld [vmem:[#allocation24_spill] sm:$0xff] }
 0x9cd   : > { %v1673_v8 = vsel %vm5514_vm11, %v1670_v52, %v1672_v27  ;;  %v1674_v51 = vsel %vm5515_vm12, %v1672_v27, %v1670_v52 }
 0x9ce   : > { %2502 = vmatprep.subr.bf16.mxu0 %v2501_v29  ;;  %v1675_v16 = vmul.f32 %v4571_v58, %v1673_v8  ;;  %v1676_v39 = vmul.f32 %v5519_v12, %v1674_v51  ;;  %v5520_v29 = vld [vmem:[#allocation25_spill] sm:$0xff]  ;;  %v1690_v8 = vmul.f32 %v4591_v60, %v4753_v35  ;;  %v1691_v51 = vmul.f32 %v4595_v6, %v4757_v23 }
 0x9cf   : > { %2504 = vmatpush1.bf16.msra.mxu0 %v2503_v22  ;;  %v1678_v32 = vpop.permute.xlu0 %1677  ;;  %v1686_v22 = vmul.f32 %v4583_v5, %v4725_v34  ;;  %v1689_v34 = vmul.f32 %v4603_v24, %v4749_v46  ;;  %v1700_v23 = vmul.f32 %v4618_v55, %v4809_v30  ;;  %v1699_v46 = vmul.f32 %v4630_v21, %v4805_v45  ;;  %v1705_v45 = vld [vmem:[#allocation10 + $0x68] sm:$0xff] }
 0x9d0   : > { %v1680_v31 = vpop.permute.xlu1 %1679 }
 0x9d1   : > { %v1681_v9 = vsel %vm5517_vm14, %v1678_v32, %v1680_v31  ;;  %v1682_v26 = vsel %vm5518_vm15, %v1680_v31, %v1678_v32  ;;  %v2509_v1 = vpack.c.bf16 %v1688_v10, %v1686_v22  ;;  %v1696_v32 = vmul.f32 %v4599_v53, %v4785_v44 }
 0x9d2   : > { %v1683_v42 = vmul.f32 %v4577_v37, %v1681_v9  ;;  %v1684_v52 = vmul.f32 %v5520_v29, %v1682_v26  ;;  %v2513_v31 = vpack.c.bf16 %v1692_v62, %v1690_v8  ;;  %v2515_v35 = vpack.c.bf16 %v1691_v51, %v1689_v34  ;;  %v1704_v26 = vld [vmem:[#allocation10 + $0x60] sm:$0xff]  ;;  %v1787_v8 = vld [vmem:[#allocation10 + $0x78] sm:$0xff] }
 0x9d3   : > { %v1693_v10 = vmul.f32 %v4622_v47, %v4773_v25  ;;  %v1702_v9 = vmul.f32 %v4638_v57, %v4825_v61  ;;  %v1701_v25 = vmul.f32 %v4642_v2, %v4821_v36  ;;  %v1784_v61 = vld [vmem:[#allocation8 + $0x10] sm:$0xff]  ;;  %v1786_v36 = vld [vmem:[#allocation10 + $0x70] sm:$0xff] }
 0x9d4   : > { %v2507_v27 = vpack.c.bf16 %v1683_v42, %v1675_v16  ;;  %v2505_v3 = vpack.c.bf16 %v1684_v52, %v1676_v39 }
 0x9d6   : > { %2506 = vmatprep.subr.bf16.mxu0 %v2505_v3  ;;  %v1694_v3 = vmul.f32 %v4610_v15, %v4777_v13  ;;  %v2521_v13 = vpack.c.bf16 %v1700_v23, %v1698_v40  ;;  %v1870_v23 = vld [vmem:[#allocation7 + $0x28] sm:$0xff] }
 0x9d7   : > { %2508 = vmatpush1.bf16.msra.mxu0 %v2507_v27 }
 0x9d8   : > { %2510 = vmatprep.subr.bf16.mxu0 %v2509_v1  ;;  %v1695_v1 = vmul.f32 %v4614_v43, %v4781_v63  ;;  %v2517_v44 = vpack.c.bf16 %v1696_v32, %v1694_v3  ;;  %v1697_v63 = vmul.f32 %v4634_v49, %v4797_v14 }
 0x9da   : > { %v2519_v48 = vpack.c.bf16 %v1695_v1, %v1693_v10  ;;  %v2523_v30 = vpack.c.bf16 %v1699_v46, %v1697_v63  ;;  %v2750_v63 = vld [vmem:[#allocation11] sm:$0xff] }
 0x9db   : > { %2512 = vmatpush1.bf16.msra.mxu0 %v5521_v20 }
 0x9dc   : > { %2514 = vmatprep.subr.bf16.mxu0 %v2513_v31 }
 0x9df   : > { %2516 = vmatpush1.bf16.msra.mxu0 %v2515_v35 }
 0x9e0   : > { %2518 = vmatprep.subr.bf16.mxu0 %v2517_v44 }
 0x9e3   : > { %2520 = vmatpush1.bf16.msra.mxu0 %v2519_v48 }
 0x9e4   : > { %2522 = vmatprep.subr.bf16.mxu0 %v2521_v13 }
 0x9e7   : > { %2524 = vmatpush1.bf16.msra.mxu0 %v2523_v30 }
 0x9e8   : > { %1758 = vmatprep.subr.mxu0 %v1702_v9  ;;  %v2751_v9 = vld [vmem:[#allocation11 + $0x8] sm:$0xff] }
 0x9eb   : > { %1759 = vmatpush1.msra.mxu0 %v1701_v25 }
 0x9ec   : > { %1771 = vmatmul.mubr.f32.vlgmr.msra.gmra.mrb[6].mxu0 %v1547_v11 }
 0xabf   : > { %v1772_v16 = vpop.f32.mrb[6].mxu0 }
 0xac0   : > { %v1773_v39 = vadd.f32 %v1772_v16, %v1704_v26  ;;  %v1774_v42 = vpop.f32.mrb[7].mxu0 }
 0xac1   : > { %v1775_v14 = vadd.f32 %v1774_v42, %v1705_v45  ;;  %v2752_v45 = vld [vmem:[#allocation11 + $0x120] sm:$0xff] }
 0xac2   : > { %v1779_v52 = vmul.f32 0.01, %v1773_v39  ;;  %vm1777_vm11 = vcmp.ge.f32.partialorder %v1773_v39, 0.0 }
 0xac3   : > { %v1780_v22 = vmul.f32 0.01, %v1775_v14  ;;  %vm1778_vm12 = vcmp.ge.f32.partialorder %v1775_v14, 0.0 }
 0xac4   : > { %v1781_v62 = vsel %vm1777_vm11, %v1773_v39, %v1779_v52  ;;  %v2753_v39 = vld [vmem:[#allocation11 + $0x10] sm:$0xff] }
 0xac5   : > { %v1782_v27 = vsel %vm1778_vm12, %v1775_v14, %v1780_v22  ;;  %v2754_v14 = vld [vmem:[#allocation11 + $0x18] sm:$0xff]  ;;  %v2755_v22 = vld [vmem:[#allocation11 + $0x130] sm:$0xff] }
 0xac6   : > { %1791 = vmatprep.subr.mxu1 %v1782_v27 }
 0xac7   : > { %1792 = vmatpush1.msra.mxu1 %v1781_v62 }
 0xac8   : > { %2257 = vmatmul.mubr.msk.f32.vlgmr.msra.gmra.mrb[6].mxu1 %vm678_vm13, %v1784_v61 }
 0xac9   : > { %2092 = vmatprep.mubr.f32.mxu1 %v1870_v23 }
 0xb9b   : > { %v1857_v51 = vpop.f32.mrb[6].mxu1 }
 0xb9c   : > { %v1858_v32 = vadd.f32 %v1857_v51, %v1786_v36  ;;  %v1859_v31 = vpop.f32.mrb[7].mxu1 }
 0xb9d   : > { %v1860_v34 = vadd.f32 %v1859_v31, %v1787_v8 }
 0xb9e   : > { %vm1862_vm14 = vcmp.ge.f32.partialorder %v1858_v32, 0.0  ;;  %v1864_v20 = vmul.f32 0.01, %v1858_v32 }
 0xb9f   : > { %vm1863_vm15 = vcmp.ge.f32.partialorder %v1860_v34, 0.0  ;;  %v1865_v3 = vmul.f32 0.01, %v1860_v34 }
 0xba0   : > { %v4917_v35 = vsel %vm1862_vm14, %v1858_v32, %v1864_v20 }
 0xba1   : > { %v4919_v1 = vsel %vm1863_vm15, %v1860_v34, %v1865_v3  ;;  %1871 = vrot.lane.b32.xlu0 %v4917_v35, %s5447_s30 }
 0xba2   : > { %1873 = vrot.lane.b32.xlu1 %v4919_v1, %s5447_s30 }
 0xba5   : > { %1879 = vrot.lane.b32.xlu0 %v4917_v35, %s5448_s29 }
 0xba6   : > { %1881 = vrot.lane.b32.xlu1 %v4919_v1, %s5448_s29 }
 0xba9   : > { %1887 = vrot.lane.b32.xlu0 %v4917_v35, %s5449_s9 }
 0xbaa   : > { %1889 = vrot.lane.b32.xlu1 %v4919_v1, %s5449_s9 }
 0xbad   : > { %1895 = vrot.lane.b32.xlu0 %v4917_v35, %s5497_s14 }
 0xbae   : > { %1897 = vrot.lane.b32.xlu1 %v4919_v1, %s5497_s14 }
 0xbb1   : > { %1903 = vrot.lane.b32.xlu0 %v4917_v35, %s5406_s10 }
 0xbb2   : > { %1905 = vrot.lane.b32.xlu1 %v4919_v1, %s5406_s10 }
 0xbb5   : > { %1911 = vrot.lane.b32.xlu0 %v4917_v35, %s5407_s18 }
 0xbb6   : > { %1913 = vrot.lane.b32.xlu1 %v4919_v1, %s5407_s18 }
 0xbb9   : > { %1919 = vrot.lane.b32.xlu0 %v4917_v35, %s5408_s28 }
 0xbba   : > { %1921 = vrot.lane.b32.xlu1 %v4919_v1, %s5408_s28 }
 0xbbd   : > { %1927 = vrot.lane.b32.xlu0 %v4917_v35, %s5409_s13 }
 0xbbe   : > { %1929 = vrot.lane.b32.xlu1 %v4919_v1, %s5409_s13 }
 0xbc1   : > { %1935 = vrot.lane.b32.xlu0 %v4917_v35, %s5498_s1 }
 0xbc2   : > { %1937 = vrot.lane.b32.xlu1 %v4919_v1, %s5498_s1  ;;  %s5539_s1 = sshll.u32 %s3319_s7, 4 }
 0xbc5   : > { %1943 = vrot.lane.b32.xlu0 %v4917_v35, %s5380_s25 }
 0xbc6   : > { %1945 = vrot.lane.b32.xlu1 %v4919_v1, %s5380_s25  ;;  %s3047_s25 = smov [#allocation13]  }
 0xbc9   : > { %1951 = vrot.lane.b32.xlu0 %v4917_v35, %s5381_s26 }
 0xbca   : > { %1953 = vrot.lane.b32.xlu1 %v4919_v1, %s5381_s26  ;;  %s2943_s26 = sshll.u32 %s3047_s25, 4  ;;  %s2944_s26 = int_to_ptr.vmem [resolvable:$false] %s2943_s26 }
 0xbcd   : > { %1959 = vrot.lane.b32.xlu0 %v4917_v35, %s5382_s11 }
 0xbce   : > { %1961 = vrot.lane.b32.xlu1 %v4919_v1, %s5382_s11  ;;  %s2945_s11 = scalar_lea.vmem %s2944_s26, 512 }
 0xbd1   : > { %1967 = vrot.lane.b32.xlu0 %v4917_v35, %s5383_s20 }
 0xbd2   : > { %1969 = vrot.lane.b32.xlu1 %v4919_v1, %s5383_s20 }
 0xbd5   : > { %1975 = vrot.lane.b32.xlu0 %v4917_v35, %s5499_s2 }
 0xbd6   : > { %1977 = vrot.lane.b32.xlu1 %v4919_v1, %s5499_s2  ;;  %s340_s2 = scalar_lea.vmem [#allocation13], %s5539_s1 }
 0xbd7   : > { %s2118_s30 = sshll.u32 %s340_s2, 4  ;;  %s5175_s30 = int_to_ptr.vmem [resolvable:$true] %s2118_s30 }
 0xbd8   : > { %p2946_p11 = scmp.lt.s32.totalorder %s5175_s30, %s2944_s26 }
 0xbd9   : > { %1983 = vrot.lane.b32.xlu0 %v4917_v35, %s5450_s12 }
 0xbda   : > { %1985 = vrot.lane.b32.xlu1 %v4919_v1, %s5450_s12 }
 0xbdd   : > { %1991 = vrot.lane.b32.xlu0 %v4917_v35, %s5451_s16 }
 0xbde   : > { %1993 = vrot.lane.b32.xlu1 %v4919_v1, %s5451_s16  ;;  %s2939_s16 = scalar_lea.vmem %s5175_s30, 256 }
 0xbdf   : > { %p2940_p2 = scmp.ne.s32.totalorder %s5175_s30, %s2939_s16  ;;  %p2947_p12 = scmp.lt.s32.totalorder %s2945_s11, %s2939_s16 }
 0xbe1   : > { %1999 = vrot.lane.b32.xlu0 %v4917_v35, %s5452_s0  ;;  %p2941_p10 = pnand %p2940_p2, %p5542_p7  ;;  %p2948_p13 = por %p2947_p12, %p2946_p11 }
 0xbe2   : > { %2001 = vrot.lane.b32.xlu1 %v4919_v1, %s5452_s0  ;;  %s2264_s0 = sshll.u32 %s3104_s27, 8  ;;  %s2104_s27 = scalar_lea.sflag [#allocation4], %s3319_s7 }
 0xbe3   : > { %s5173_s13 = scalar_lea.hbm %s5223_s6, %s2264_s0  ;;  %p2942_p1 = pneg %p2941_p10 }
 0xbe5   : > { %p2949_p3 = pnand %p2948_p13, %p2942_p1 }
 0xc13   : > { %v1872_v44 = vpop.permute.xlu0 %1871 }
 0xc14   : > { %v1874_v10 = vpop.permute.xlu1 %1873 }
 0xc15   : > { %v1875_v40 = vsel %vm351_vm1, %v1872_v44, %v1874_v10  ;;  %v4993_v48 = vsel %vm351_vm1, %v1874_v10, %v1872_v44  ;;  %v2756_v44 = vld [vmem:[#allocation11 + $0x20] sm:$0xff] }
 0xc16   : > { %v1877_v30 = vmul.f32 %v2750_v63, %v4993_v48  ;;  %v1878_v25 = vmul.f32 %v2751_v9, %v1875_v40  ;;  %v5002_v16 = vmul.f32 %v2752_v45, %v1875_v40  ;;  %v2757_v40 = vld [vmem:[#allocation11 + $0x28] sm:$0xff] }
 0xc17   : > { %v1880_v46 = vpop.permute.xlu0 %1879 }
 0xc18   : > { %v1882_v13 = vpop.permute.xlu1 %1881 }
 0xc19   : > { %v1883_v11 = vsel %vm362_vm0, %v1880_v46, %v1882_v13  ;;  %v5000_v26 = vsel %vm362_vm0, %v1882_v13, %v1880_v46  ;;  %v2758_v13 = vld [vmem:[#allocation11 + $0x30] sm:$0xff]  ;;  %vm5522_vm0 = vcmp.lt.s32.totalorder %v3417_v4, 7 }
 0xc1a   : > { %v1885_v42 = vmul.f32 %v2753_v39, %v5000_v26  ;;  %v1886_v52 = vmul.f32 %v2754_v14, %v1883_v11  ;;  %v5005_v27 = vmul.f32 %v2755_v22, %v1883_v11  ;;  %vm5523_vm1 = vmmov %vm5522_vm0 }
 0xc1b   : > { %v1888_v61 = vpop.permute.xlu0 %1887 }
 0xc1c   : > { %v2527_v62 = vpack.c.bf16 %v1885_v42, %v1877_v30  ;;  %v1890_v8 = vpop.permute.xlu1 %1889  ;;  %v2525_v51 = vpack.c.bf16 %v1886_v52, %v1878_v25  ;;  %v2759_v30 = vld [vmem:[#allocation11 + $0x38] sm:$0xff] }
 0xc1d   : > { %v5011_v32 = vsel %vm374_vm2, %v1888_v61, %v1890_v8  ;;  %v5015_v31 = vsel %vm374_vm2, %v1890_v8, %v1888_v61  ;;  %v2760_v8 = vld [vmem:[#allocation11 + $0x40] sm:$0xff]  ;;  %vm5524_vm2 = vcmp.lt.s32.totalorder %v3417_v4, 1 }
 0xc1e   : > { %2526 = vmatprep.subr.bf16.mxu1 %v2525_v51  ;;  %v1893_v10 = vmul.f32 %v2756_v44, %v5015_v31  ;;  %v1894_v46 = vmul.f32 %v2757_v40, %v5011_v32  ;;  %v2762_v44 = vld [vmem:[#allocation11 + $0x50] sm:$0xff]  ;;  %v2763_v40 = vld [vmem:[#allocation11 + $0x58] sm:$0xff] }
 0xc1f   : > { %2528 = vmatpush1.bf16.msra.mxu1 %v2527_v62  ;;  %v1896_v34 = vpop.permute.xlu0 %1895 }
 0xc20   : > { %v1898_v20 = vpop.permute.xlu1 %1897 }
 0xc21   : > { %v5019_v3 = vsel %vm386_vm3, %v1896_v34, %v1898_v20  ;;  %v5023_v23 = vsel %vm386_vm3, %v1898_v20, %v1896_v34  ;;  %v2761_v34 = vld [vmem:[#allocation11 + $0x48] sm:$0xff]  ;;  %vm5525_vm3 = vmmov %vm5524_vm2 }
 0xc22   : > { %v1901_v63 = vmul.f32 %v2758_v13, %v5023_v23  ;;  %v1902_v9 = vmul.f32 %v2759_v30, %v5019_v3 }
 0xc23   : > { %v1904_v25 = vpop.permute.xlu0 %1903 }
 0xc24   : > { %v2531_v11 = vpack.c.bf16 %v1901_v63, %v1893_v10  ;;  %v1906_v45 = vpop.permute.xlu1 %1905  ;;  %v2529_v39 = vpack.c.bf16 %v1902_v9, %v1894_v46 }
 0xc25   : > { %v5031_v42 = vsel %vm398_vm4, %v1904_v25, %v1906_v45  ;;  %v5035_v14 = vsel %vm398_vm4, %v1906_v45, %v1904_v25  ;;  %vm5527_vm4 = vcmp.lt.s32.totalorder %v3417_v4, 127 }
 0xc26   : > { %2530 = vmatprep.subr.bf16.mxu1 %v2529_v39  ;;  %v1909_v51 = vmul.f32 %v2760_v8, %v5035_v14  ;;  %v1910_v20 = vmul.f32 %v2761_v34, %v5031_v42  ;;  %v2764_v8 = vld [vmem:[#allocation11 + $0x60] sm:$0xff]  ;;  %v2765_v34 = vld [vmem:[#allocation11 + $0x68] sm:$0xff] }
 0xc27   : > { %2532 = vmatpush1.bf16.msra.mxu1 %v2531_v11  ;;  %v1912_v52 = vpop.permute.xlu0 %1911 }
 0xc28   : > { %v1914_v22 = vpop.permute.xlu1 %1913 }
 0xc29   : > { %v5039_v61 = vsel %vm410_vm5, %v1912_v52, %v1914_v22  ;;  %v5043_v62 = vsel %vm410_vm5, %v1914_v22, %v1912_v52  ;;  %vm5528_vm5 = vmmov %vm5527_vm4 }
 0xc2a   : > { %v1917_v10 = vmul.f32 %v2762_v44, %v5043_v62  ;;  %v1918_v46 = vmul.f32 %v2763_v40, %v5039_v61  ;;  %v2766_v44 = vld [vmem:[#allocation11 + $0x70] sm:$0xff]  ;;  %v2767_v40 = vld [vmem:[#allocation11 + $0x78] sm:$0xff] }
 0xc2b   : > { %v1920_v13 = vpop.permute.xlu0 %1919 }
 0xc2c   : > { %v2535_v63 = vpack.c.bf16 %v1917_v10, %v1909_v51  ;;  %v1922_v30 = vpop.permute.xlu1 %1921  ;;  %v2533_v9 = vpack.c.bf16 %v1918_v46, %v1910_v20 }
 0xc2d   : > { %v5051_v25 = vsel %vm422_vm6, %v1920_v13, %v1922_v30  ;;  %v5055_v11 = vsel %vm422_vm6, %v1922_v30, %v1920_v13  ;;  %vm5529_vm6 = vcmp.lt.s32.totalorder %v3417_v4, 121 }
 0xc2e   : > { %2534 = vmatprep.subr.bf16.mxu1 %v2533_v9  ;;  %v1925_v51 = vmul.f32 %v2764_v8, %v5055_v11  ;;  %v1926_v20 = vmul.f32 %v2765_v34, %v5051_v25 }
 0xc2f   : > { %2536 = vmatpush1.bf16.msra.mxu1 %v2535_v63  ;;  %v1928_v45 = vpop.permute.xlu0 %1927 }
 0xc30   : > { %v1930_v39 = vpop.permute.xlu1 %1929 }
 0xc31   : > { %v5059_v52 = vsel %vm434_vm7, %v1928_v45, %v1930_v39  ;;  %v5063_v22 = vsel %vm434_vm7, %v1930_v39, %v1928_v45  ;;  %vm5530_vm7 = vmmov %vm5529_vm6 }
 0xc32   : > { %v1933_v10 = vmul.f32 %v2766_v44, %v5063_v22  ;;  %v1934_v46 = vmul.f32 %v2767_v40, %v5059_v52 }
 0xc33   : > { %v1936_v13 = vpop.permute.xlu0 %1935 }
 0xc34   : > { %v2539_v63 = vpack.c.bf16 %v1933_v10, %v1925_v51  ;;  %v1938_v30 = vpop.permute.xlu1 %1937  ;;  %v2537_v9 = vpack.c.bf16 %v1934_v46, %v1926_v20  ;;  %v2768_v10 = vld [vmem:[#allocation11 + $0x80] sm:$0xff] }
 0xc35   : > { %v5071_v45 = vsel %vm446_vm8, %v1936_v13, %v1938_v30  ;;  %v5075_v39 = vsel %vm446_vm8, %v1938_v30, %v1936_v13  ;;  %vm5532_vm8 = vcmp.lt.s32.totalorder %v3417_v4, 120 }
 0xc36   : > { %2538 = vmatprep.subr.bf16.mxu1 %v2537_v9  ;;  %v1941_v20 = vmul.f32 %v2768_v10, %v5075_v39  ;;  %v1942_v40 = vmul.f32 %v4497_v7, %v5071_v45 }
 0xc37   : > { %2540 = vmatpush1.bf16.msra.mxu1 %v2539_v63  ;;  %v1944_v8 = vpop.permute.xlu0 %1943 }
 0xc38   : > { %v1946_v34 = vpop.permute.xlu1 %1945 }
 0xc39   : > { %v1947_v44 = vsel %vm458_vm9, %v1944_v8, %v1946_v34  ;;  %v1948_v51 = vsel %vm458_vm9, %v1946_v34, %v1944_v8  ;;  %vm5533_vm9 = vmmov %vm5532_vm8 }
 0xc3a   : > { %v1949_v46 = vmul.f32 %v4501_v38, %v1948_v51  ;;  %v1950_v13 = vmul.f32 %v4504_v59, %v1947_v44 }
 0xc3b   : > { %v1952_v30 = vpop.permute.xlu0 %1951 }
 0xc3c   : > { %v2543_v63 = vpack.c.bf16 %v1949_v46, %v1941_v20  ;;  %v1954_v9 = vpop.permute.xlu1 %1953  ;;  %v2541_v36 = vpack.c.bf16 %v1950_v13, %v1942_v40 }
 0xc3d   : > { %v1955_v2 = vsel %vm470_vm10, %v1952_v30, %v1954_v9  ;;  %v1956_v8 = vsel %vm470_vm10, %v1954_v9, %v1952_v30  ;;  %vm5535_vm10 = vcmp.lt.s32.totalorder %v3417_v4, 119  ;;  %v2012_v4 = vmul.f32 %v4591_v60, %v5015_v31 }
 0xc3e   : > { %2542 = vmatprep.subr.bf16.mxu1 %v2541_v36  ;;  %v1957_v59 = vmul.f32 %v4515_v54, %v1956_v8  ;;  %v1958_v44 = vmul.f32 %v5502_v0, %v1955_v2  ;;  %vm5536_vm13 = vmmov %vm5535_vm10  ;;  %v2015_v31 = vmul.f32 %v4622_v47, %v5031_v42  ;;  %v2024_v47 = vmul.f32 %v4638_v57, %v5075_v39 }
 0xc3f   : > { %2544 = vmatpush1.bf16.msra.mxu1 %v2543_v63  ;;  %v1960_v34 = vpop.permute.xlu0 %1959 }
 0xc40   : > { %v1962_v10 = vpop.permute.xlu1 %1961 }
 0xc41   : > { %v1963_v7 = vsel %vm5522_vm0, %v1960_v34, %v1962_v10  ;;  %v1964_v38 = vsel %vm5523_vm1, %v1962_v10, %v1960_v34  ;;  %v5526_v34 = vld [vmem:[#allocation26_spill] sm:$0xff] }
 0xc42   : > { %v1965_v36 = vmul.f32 %v4521_v28, %v1964_v38  ;;  %v1966_v51 = vmul.f32 %v4524_v18, %v1963_v7 }
 0xc43   : > { %v1968_v20 = vpop.permute.xlu0 %1967 }
 0xc44   : > { %v2547_v40 = vpack.c.bf16 %v1965_v36, %v1957_v59  ;;  %v1970_v46 = vpop.permute.xlu1 %1969  ;;  %v2545_v13 = vpack.c.bf16 %v1966_v51, %v1958_v44  ;;  %v5531_v36 = vld [vmem:[#allocation20_spill] sm:$0xff] }
 0xc45   : > { %v1971_v30 = vsel %vm5524_vm2, %v1968_v20, %v1970_v46  ;;  %v1972_v63 = vsel %vm5525_vm3, %v1970_v46, %v1968_v20 }
 0xc46   : > { %v1973_v9 = vmul.f32 %v5505_v19, %v1972_v63  ;;  %v1974_v54 = vmul.f32 %v5526_v34, %v1971_v30  ;;  %2546 = vmatprep.subr.bf16.mxu1 %v2545_v13 }
 0xc47   : > { %2548 = vmatpush1.bf16.msra.mxu1 %v2547_v40  ;;  %v1976_v2 = vpop.permute.xlu0 %1975 }
 0xc48   : > { %v2551_v28 = vpack.c.bf16 %v4917_v35, %v1973_v9  ;;  %v1978_v18 = vpop.permute.xlu1 %1977  ;;  %v2549_v0 = vpack.c.bf16 %v4919_v1, %v1974_v54 }
 0xc49   : > { %v1979_v8 = vsel %vm5527_vm4, %v1976_v2, %v1978_v18  ;;  %v1980_v10 = vsel %vm5528_vm5, %v1978_v18, %v1976_v2 }
 0xc4a   : > { %2550 = vmatprep.subr.bf16.mxu1 %v2549_v0  ;;  %v1981_v35 = vmul.f32 %v5511_v41, %v1979_v8  ;;  %v1982_v1 = vmul.f32 %v5512_v50, %v1980_v10  ;;  %v5534_v50 = vld [vmem:[#allocation23_spill] sm:$0xff]  ;;  %v2008_v8 = vmul.f32 %v4583_v5, %v4993_v48  ;;  %v2011_v5 = vmul.f32 %v4603_v24, %v5011_v32 }
 0xc4b   : > { %2552 = vmatpush1.bf16.msra.mxu1 %v2551_v28  ;;  %v1984_v7 = vpop.permute.xlu0 %1983  ;;  %v2010_v34 = vmul.f32 %v5534_v50, %v5000_v26  ;;  %v2014_v26 = vmul.f32 %v4587_v56, %v5023_v23  ;;  %v5537_v56 = vpack.c.bf16 %v5005_v27, %v5002_v16  ;;  %v2017_v48 = vmul.f32 %v4614_v43, %v5039_v61  ;;  %v2027_v23 = vld [vmem:[#allocation10 + $0x88] sm:$0xff]  ;;  %v5540_v61 = vld [vmem:[#allocation29_spill] sm:$0xff] }
 0xc4c   : > { %v1986_v19 = vpop.permute.xlu1 %1985  ;;  %v2020_v24 = vmul.f32 %v4626_v17, %v5055_v11  ;;  %v2019_v43 = vmul.f32 %v4634_v49, %v5051_v25  ;;  %v5538_v17 = vld [vmem:[#allocation27_spill] sm:$0xff]  ;;  %v5541_v25 = vld [vmem:[#allocation30_spill] sm:$0xff] }
 0xc4d   : > { %v1987_v38 = vsel %vm5529_vm6, %v1984_v7, %v1986_v19  ;;  %v1988_v59 = vsel %vm5530_vm7, %v1986_v19, %v1984_v7  ;;  %v2561_v19 = vpack.c.bf16 %v2010_v34, %v2008_v8  ;;  %v2571_v16 = vpack.c.bf16 %v2017_v48, %v2015_v31 }
 0xc4e   : > { %v1989_v44 = vmul.f32 %v4553_v33, %v1987_v38  ;;  %v1990_v51 = vmul.f32 %v5531_v36, %v1988_v59  ;;  %v2023_v32 = vmul.f32 %v5538_v17, %v5071_v45 }
 0xc4f   : > { %v1992_v20 = vpop.permute.xlu0 %1991 }
 0xc50   : > { %v2555_v40 = vpack.c.bf16 %v1989_v44, %v1981_v35  ;;  %v1994_v46 = vpop.permute.xlu1 %1993  ;;  %v2553_v13 = vpack.c.bf16 %v1990_v51, %v1982_v1 }
 0xc51   : > { %v1995_v30 = vsel %vm5532_vm8, %v1992_v20, %v1994_v46  ;;  %v1996_v63 = vsel %vm5533_vm9, %v1994_v46, %v1992_v20 }
 0xc52   : > { %2554 = vmatprep.subr.bf16.mxu1 %v2553_v13  ;;  %v1997_v2 = vmul.f32 %v4571_v58, %v1995_v30  ;;  %v1998_v28 = vmul.f32 %v5519_v12, %v1996_v63  ;;  %v2013_v58 = vmul.f32 %v4595_v6, %v5019_v3  ;;  %v2565_v12 = vpack.c.bf16 %v2014_v26, %v2012_v4  ;;  %v1869_v3 = vld [vmem:[#allocation7 + $0x20] sm:$0xff] }
 0xc53   : > { %2556 = vmatpush1.bf16.msra.mxu1 %v2555_v40  ;;  %v2000_v9 = vpop.permute.xlu0 %1999  ;;  %v2022_v6 = vmul.f32 %v4618_v55, %v5063_v22 }
 0xc54   : > { %v2002_v41 = vpop.permute.xlu1 %2001  ;;  %v2567_v60 = vpack.c.bf16 %v2013_v58, %v2011_v5 }
 0xc55   : > { %v2003_v33 = vsel %vm5535_vm10, %v2000_v9, %v2002_v41  ;;  %v2004_v54 = vsel %vm5536_vm13, %v2002_v41, %v2000_v9  ;;  %v2573_v27 = vpack.c.bf16 %v2022_v6, %v2020_v24 }
 0xc56   : > { %v2005_v18 = vmul.f32 %v4577_v37, %v2003_v33  ;;  %v2006_v0 = vmul.f32 %v5520_v29, %v2004_v54  ;;  %v2018_v37 = vmul.f32 %v4599_v53, %v5043_v62  ;;  %v2016_v29 = vmul.f32 %v4610_v15, %v5035_v14 }
 0xc57   : > { %v2021_v15 = vmul.f32 %v4630_v21, %v5059_v52  ;;  %v2026_v21 = vld [vmem:[#allocation10 + $0x80] sm:$0xff] }
 0xc58   : > { %v2559_v10 = vpack.c.bf16 %v2005_v18, %v1997_v2  ;;  %v2557_v7 = vpack.c.bf16 %v2006_v0, %v1998_v28  ;;  %v2569_v53 = vpack.c.bf16 %v2018_v37, %v2016_v29 }
 0xc59   : > { %v2575_v55 = vpack.c.bf16 %v2021_v15, %v2019_v43 }
 0xc5a   : > { %2558 = vmatprep.subr.bf16.mxu1 %v2557_v7 }
 0xc5b   : > { %2560 = vmatpush1.bf16.msra.mxu1 %v2559_v10 }
 0xc5c   : > { %2562 = vmatprep.subr.bf16.mxu1 %v2561_v19 }
 0xc5f   : > { %2564 = vmatpush1.bf16.msra.mxu1 %v5537_v56 }
 0xc60   : > { %2566 = vmatprep.subr.bf16.mxu1 %v2565_v12 }
 0xc63   : > { %2568 = vmatpush1.bf16.msra.mxu1 %v2567_v60 }
 0xc64   : > { %2570 = vmatprep.subr.bf16.mxu1 %v2569_v53 }
 0xc67   : > { %2572 = vmatpush1.bf16.msra.mxu1 %v2571_v16 }
 0xc68   : > { %2574 = vmatprep.subr.bf16.mxu1 %v2573_v27 }
 0xc6b   : > { %2576 = vmatpush1.bf16.msra.mxu1 %v2575_v55 }
 0xc6c   : > { %2080 = vmatprep.subr.mxu1 %v2024_v47 }
 0xc6f   : > { %2081 = vmatpush1.msra.mxu1 %v2023_v32 }
 0xc70   : > { %2093 = vmatmul.mubr.f32.vlgmr.msra.gmra.mrb[8].mxu1 %v1869_v3 }
 0xd43   : > { %v2094_v49 = vpop.f32.mrb[8].mxu1 }
 0xd44   : > { %v2095_v42 = vadd.f32 %v2094_v49, %v2026_v21  ;;  %v2096_v14 = vpop.f32.mrb[9].mxu1 }
 0xd45   : > { %v2097_v57 = vadd.f32 %v2096_v14, %v2027_v23 }
 0xd46   : > { %v2099_v62 = vadd.f32 %v2095_v42, %v5540_v61 }
 0xd47   : > { %v2100_v11 = vadd.f32 %v2097_v57, %v5541_v25 }
 0xd48   : > { %2101 = vst [vmem:[%s340_s2] sm:$0xff] %v2099_v62 }
 0xd49   : > { %2102 = vst [vmem:[%s340_s2 + $0x8] sm:$0xff] %v2100_v11 }
 0xd4a   : > { %2952 = shalt.err (!%p2949_p3)
}
 0xd4b   : > { %s2953_s7 = scalar_lea.hbm %s5173_s13, 256  ;;  %s2957_s14 = scalar_lea.hbm %s5223_s6, 512 }
 0xd4c   : > { %p2954_p6 = scmp.ne.s32.totalorder %s5173_s13, %s2953_s7  ;;  %p2958_p8 = scmp.lt.u32.totalorder %s5173_s13, %s5223_s6 }
 0xd4d   : > { %p2959_p0 = scmp.lt.u32.totalorder %s2957_s14, %s2953_s7  ;;  %p2961_p2 = scmp.lt.u32.totalorder %s2953_s7, %s5173_s13 }
 0xd4e   : > { %p2955_p9 = pnand %p2954_p6, %p5542_p7 }
 0xd4f   : > { %p2960_p5 = por %p2959_p0, %p2958_p8 }
 0xd50   : > { %p2956_p4 = pneg %p2955_p9 }
 0xd51   : > { %p2962_p10 = por %p2961_p2, %p2960_p5 }
 0xd53   : > { %p2963_p1 = pnand %p2962_p10, %p2956_p4 }
 0xd55   : > { %2966 = shalt.err (!%p2963_p1)
}
 0xd56   : > { %2599 = dma.vmem_to_hbm [thread:$0]  (%p5542_p7), %s5175_s30, 256, %s5173_s13, %s2104_s27  }
 0xd57 PF: > { %s2130_s10 = sand.u32 1, %s3005_s21   ;;  %p5543_p11 = scmp.ne.s32.totalorder %s5359_s8, 0 }
 0xd58   : > { %p5544_p12 = scmp.ge.s32.totalorder %s3017_s24, 2  ;;  %s2131_s0 = scalar_lea.sflag [#allocation4], %s2130_s10 }
 0xd5a   : > { %p2622_p13 = pnand %p5544_p12, %p5543_p11 }
 0xd5c   : > { %3000 = dma.done.wait (!%p2622_p13), %s2131_s0, 256  }
 0xd5d   : > { %3002 = vsyncadd (!%p2622_p13), %s2131_s0, 4294967040  ;;  %p22_p3 = scmp.ge.s32.totalorder %s3249_s15, 4   ;;  %s5545_s21 = smov %s3009_s22 }
 0xd5e   : > { %s5546_s22 = smov %s3013_s23  ;;  %s5547_s23 = smov %s3261_s17 }
 0xd5f   : > { %s5548_s24 = smov %s3249_s15  ;;  %24 = sbr.rel (!%p22_p3) target bundleno = 12 (0xc), region = 148 }
 0xd66   :  { %2136 = vsyncpa [#allocation3], 1 }
 0xd67   :  { %2138 = vsyncpa [#allocation3 + $0x1], 1 }
 0xd68   :  { %2139 = vsyncpa [#allocation6], 1 }
 0xd69   :  { %2140 = vsyncpa [#allocation9], 1 }
 0xd6a   :  { %2141 = vsyncpa [#allocation12], 1 }
 0xd6b   :  { %2142 = vsyncpa [#allocation4], 1 }
 0xd6c   :  { %2144 = vsyncpa [#allocation4 + $0x1], 1 }

</bundles_post_ra>
